<compile_context>
chip_gen: v6e
topology: v6e:2x2x1
jax: 0.10.0
libtpu: 0.0.40
codegen_flags: <defaults>
</compile_context>

<pallas_src>
import jax
import jax.numpy as jnp
from jax import lax
from jax.experimental import pallas as pl
from jax.experimental.pallas import tpu as pltpu


# ----------------------------------------------------------------------------
# in-kernel helper (operates on values, not refs)
# ----------------------------------------------------------------------------

def _layernorm(x, gamma, beta, eps=1e-5):
    mu = jnp.mean(x, axis=-1, keepdims=True)
    var = jnp.mean((x - mu) ** 2, axis=-1, keepdims=True)
    return (x - mu) * lax.rsqrt(var + eps) * gamma + beta


# ----------------------------------------------------------------------------
# Kernel 1: textCNN residual   X + relu(conv1d_same(X))   (whole batch, no grid)
# ----------------------------------------------------------------------------

def _make_textcnn_kernel(B, L, d, K):
    left = (K - 1) // 2

    def kernel(x_ref, w_ref, b_ref, o_ref, pad_sc):
        x = x_ref[...].astype(jnp.float32)                       # (B, L, d)
        pad_sc[...] = jnp.zeros_like(pad_sc)                     # per-batch zero pad
        pad_sc[:, left:left + L, :] = x
        # im2col: one (B*L, K*d) @ (K*d, d) matmul instead of K tiny matmuls
        a = jnp.concatenate([pad_sc[:, k:k + L, :] for k in range(K)], axis=-1)
        conv = (jnp.dot(a.reshape(B * L, K * d), w_ref[...],
                        preferred_element_type=jnp.float32) + b_ref[...])
        out = x + jnp.maximum(conv, 0.0).reshape(B, L, d)
        o_ref[...] = out.astype(o_ref.dtype)

    return kernel


def textcnn_residual(x, w_im2col, b, K):
    B, L, d = x.shape
    return pl.pallas_call(
        _make_textcnn_kernel(B, L, d, K),
        out_shape=jax.ShapeDtypeStruct((B, L, d), x.dtype),
        scratch_shapes=[pltpu.VMEM((B, L + K - 1, d), jnp.float32)],
    )(x, w_im2col, b)


# ----------------------------------------------------------------------------
# Kernel 2: fused Act_block
#   W_q -> per-head conv (block-diag im2col matmul) -> (F@M, transpose_output,
#   W_o folded into `wcomb`) -> ln1(.+Q) -> FFN -> ln2(.+Q)  [+ maxpool/G branch]
# ----------------------------------------------------------------------------

def _make_block_kernel(B, L, d, nh, h, m, n, l, need_g):
    left = (n - 1) // 2
    hm = h * m
    Lg = L // l

    def kernel(q_ref, wq_ref, bq_ref, wc_ref, bc_ref, wcomb_ref, bo_ref,
               ln1g_ref, ln1b_ref, ln2g_ref, ln2b_ref,
               w1_ref, b1_ref, w2_ref, b2_ref, *rest):
        if need_g:
            o_ref, g_ref, pad_sc = rest
        else:
            (o_ref, pad_sc), g_ref = rest, None

        q = q_ref[...].astype(jnp.float32)                       # (B, L, d)
        q2 = q.reshape(B * L, d)

        # Q projection
        qp = (jnp.dot(q2, wq_ref[...], preferred_element_type=jnp.float32)
              + bq_ref[...])                                     # (B*L, nh)

        # per-head conv ('same' padding) as a single im2col matmul
        pad_sc[...] = jnp.zeros_like(pad_sc)
        pad_sc[:, left:left + L, :] = qp.reshape(B, L, nh)
        a = jnp.concatenate([pad_sc[:, k:k + L, :] for k in range(n)], axis=-1)
        m_all = (jnp.dot(a.reshape(B * L, n * nh), wc_ref[...],
                         preferred_element_type=jnp.float32) + bc_ref[...])  # (B*L, h*m)

        # O = F @ M, head-concat, W_o : all folded into one matmul with wcomb
        re = (jnp.dot(m_all, wcomb_ref[...], preferred_element_type=jnp.float32)
              + bo_ref[...])                                     # (B*L, d)

        out1 = _layernorm(re + q2, ln1g_ref[...], ln1b_ref[...])        # ln1(out + Q)
        hid = jnp.maximum(jnp.dot(out1, w1_ref[...],
                                  preferred_element_type=jnp.float32) + b1_ref[...], 0.0)
        ff = jnp.dot(hid, w2_ref[...], preferred_element_type=jnp.float32) + b2_ref[...]
        out2 = _layernorm(ff + q2, ln2g_ref[...], ln2b_ref[...])        # ln2(ffn + Q)
        o_ref[...] = out2.reshape(B, L, d).astype(o_ref.dtype)

        if need_g:
            # MaxPool1d(l) on M, then the same fused (F, W_o) projection
            m_max = jnp.max(m_all.reshape(B * Lg, l, hm), axis=1)       # (B*Lg, h*m)
            g_out = (jnp.dot(m_max, wcomb_ref[...],
                             preferred_element_type=jnp.float32) + bo_ref[...])
            g_ref[...] = g_out.reshape(B, Lg, d).astype(g_ref.dtype)

    return kernel


def act_block_forward(q, bp, n, need_g, cfg):
    B, L, d = q.shape
    nh, h, m, l = cfg['num_of_hid'], cfg['h'], cfg['m'], cfg['l']
    Lg = L // l
    out_shape = [jax.ShapeDtypeStruct((B, L, d), q.dtype)]
    if need_g:
        out_shape.append(jax.ShapeDtypeStruct((B, Lg, d), q.dtype))
    outs = pl.pallas_call(
        _make_block_kernel(B, L, d, nh, h, m, n, l, need_g),
        out_shape=tuple(out_shape),
        scratch_shapes=[pltpu.VMEM((B, L + n - 1, nh), jnp.float32)],
    )(q, bp['wq_t'], bp['bq'], bp['wc_big'], bp['bc_big'], bp['wcomb'], bp['bo'],
      bp['ln1_g'], bp['ln1_b'], bp['ln2_g'], bp['ln2_b'],
      bp['ffn_w1_t'], bp['ffn_b1'], bp['ffn_w2_t'], bp['ffn_b2'])
    if need_g:
        return outs[0], outs[1]
    return outs[0], None


# ----------------------------------------------------------------------------
# Kernel 3: atten = bmm(X, G^T) fused with layerNorm(X) + residual
# ----------------------------------------------------------------------------

def _final_mix_kernel(x_ref, g_ref, res_ref, lng_ref, lnb_ref, xo_ref, at_ref):
    x = x_ref[...].astype(jnp.float32)                           # (B, L, d)
    g = g_ref[...].astype(jnp.float32)                           # (B, Lg, d)
    # atten uses X *before* the layernorm (matches the reference ordering)
    if g.shape[1] == 1:
        at = jnp.sum(x * g, axis=-1, keepdims=True)              # (B, L, 1)
    else:
        at = lax.dot_general(x, g, (((2,), (2,)), ((0,), (0,))),
                             preferred_element_type=jnp.float32)  # (B, L, Lg)
    at_ref[...] = at.astype(at_ref.dtype)
    B, L, d = x.shape
    xn = _layernorm(x.reshape(B * L, d), lng_ref[...], lnb_ref[...]).reshape(B, L, d)
    xo_ref[...] = (xn + res_ref[...].astype(jnp.float32)).astype(xo_ref.dtype)


def final_mix(x, g, residual, ln_g, ln_b):
    B, L, d = x.shape
    Lg = g.shape[1]
    return pl.pallas_call(
        _final_mix_kernel,
        out_shape=(jax.ShapeDtypeStruct((B, L, d), x.dtype),
                   jax.ShapeDtypeStruct((B, L, Lg), x.dtype)),
    )(x, g, residual, ln_g, ln_b)


# ----------------------------------------------------------------------------
# Kernel 4: one bidirectional LSTM layer
#   both directions + whole batch fused, one block-diagonal matmul per step,
#   fully unrolled time loop (static indices -> unmasked static slices/stores)
# ----------------------------------------------------------------------------

def _make_bilstm_kernel(B, T, Din, H):
    H4 = 4 * H

    def gate(pre, c):                    # PyTorch gate order: i, f, g, o
        i = jax.nn.sigmoid(pre[:, 0:H])
        f = jax.nn.sigmoid(pre[:, H:2 * H])
        g = jnp.tanh(pre[:, 2 * H:3 * H])
        o = jax.nn.sigmoid(pre[:, 3 * H:4 * H])
        c_new = f * c + i * g
        h_new = o * jnp.tanh(c_new)
        return h_new, c_new

    def kernel(x_ref, w_ref, b_ref, o_ref):
        x = x_ref[...].astype(jnp.float32)                       # (B, T, Din)
        w = w_ref[...]                                           # (2H + 2Din, 8H)
        b = b_ref[...]                                           # (1, 8H)
        h_f = jnp.zeros((B, H), jnp.float32)
        h_b = jnp.zeros((B, H), jnp.float32)
        c_f = jnp.zeros((B, H), jnp.float32)
        c_b = jnp.zeros((B, H), jnp.float32)
        for s in range(T):               # T is small & static: fully unrolled
            x_fwd = x[:, s, :]
            x_bwd = x[:, T - 1 - s, :]   # reverse direction by index math (no flip)
            inp = jnp.concatenate([h_f, h_b, x_fwd, x_bwd], axis=-1)
            pre = jnp.dot(inp, w, preferred_element_type=jnp.float32) + b   # (B, 8H)
            h_f, c_f = gate(pre[:, 0:H4], c_f)
            h_b, c_b = gate(pre[:, H4:2 * H4], c_b)
            o_ref[:, s:s + 1, 0:H] = h_f[:, None, :].astype(o_ref.dtype)
            o_ref[:, T - 1 - s:T - s, H:2 * H] = h_b[:, None, :].astype(o_ref.dtype)

    return kernel


def bilstm_layer(x, w_big, b_both, H):
    B, T, Din = x.shape
    return pl.pallas_call(
        _make_bilstm_kernel(B, T, Din, H),
        out_shape=jax.ShapeDtypeStruct((B, T, 2 * H), x.dtype),
    )(x, w_big, b_both)


# ----------------------------------------------------------------------------
# Kernel 5: AdaptiveMaxPool1d(1) + Linear(2H, 2) + Softmax
# ----------------------------------------------------------------------------

def _generator_kernel(x_ref, w_ref, b_ref, o_ref):
    x = x_ref[...].astype(jnp.float32)                           # (B, T, 2H)
    pooled = jnp.max(x, axis=1)                                  # (B, 2H)
    logits = (jnp.dot(pooled, w_ref[...], preferred_element_type=jnp.float32)
              + b_ref[...])
    o_ref[...] = jax.nn.softmax(logits, axis=-1).astype(o_ref.dtype)


def generator(x, w_t, b):
    B = x.shape[0]
    n_out = w_t.shape[1]
    return pl.pallas_call(
        _generator_kernel,
        out_shape=jax.ShapeDtypeStruct((B, n_out), x.dtype),
    )(x, w_t, b)


# ----------------------------------------------------------------------------
# Model forward: 5 kernel families, 7 pallas_calls total for this config.
# No HBM transposes / pads / flips / zeros_like between kernels.
# ----------------------------------------------------------------------------

def block_meta(cfg):
    """Static per-block (n, need_g) metadata, mirroring the PyTorch constructor."""
    num_layer = len(cfg['n_list']) * cfg['repeat_num']
    meta = []
    for i, n in enumerate(cfg['n_list']):
        for k in range(cfg['repeat_num']):
            meta.append((n, (i + 1) * (k + 1) == num_layer))
    return meta


def act_net_forward(x, params, cfg):
    B, L, d = x.shape
    assert L % cfg['l'] == 0, "MaxPool1d(l) inside Atten_Conv requires L % l == 0"

    x = textcnn_residual(x, params['textcnn_w'], params['textcnn_b'],
                         cfg['cnn_kernel_size'])
    residual = x

    g = None
    for bp, (n, need_g) in zip(params['blocks'], block_meta(cfg)):
        x, g = act_block_forward(x, bp, n, need_g, cfg)
    assert g is not None, "the last Act_block must have need_g=True"

    x, atten = final_mix(x, g, residual, params['laynorm_g'], params['laynorm_b'])

    H = cfg['lstm_hidden_dim']
    for w_big, b_both in params['lstm']:         # inter-layer dropout: identity (eval)
        x = bilstm_layer(x, w_big, b_both, H)

    out = generator(x, params['gen_w_t'], params['gen_b'])
    return out, atten


# ----------------------------------------------------------------------------
# Parameters: synthetic weights in PyTorch layout, fused/transposed once at init
# into the kernel-ready layout (never re-done per forward call).
# ----------------------------------------------------------------------------

def init_raw_params(key, cfg):
    d, m, h = cfg['d'], cfg['m'], cfg['h']
    nh, d_ff = cfg['num_of_hid'], cfg['d_ff']
    K, H = cfg['cnn_kernel_size'], cfg['lstm_hidden_dim']
    dh = nh // h
    keys = iter(jax.random.split(key, 512))

    def nrm(shape, scale=0.1):
        return scale * jax.random.normal(next(keys), shape, jnp.float32)

    raw = {
        'textcnn_w': nrm((d, d, K)),                     # Conv1d(d, d, K).weight
        'textcnn_b': nrm((d,)),
        'laynorm_g': jnp.ones((d,), jnp.float32),
        'laynorm_b': jnp.zeros((d,), jnp.float32),
        'gen_w': nrm((2, 2 * H)),                        # Linear(2H, 2).weight
        'gen_b': nrm((2,)),
        'blocks': [],
        'lstm': [],
    }
    for n, _need_g in block_meta(cfg):
        raw['blocks'].append(dict(
            wq=nrm((nh, d)), bq=nrm((nh,)),              # W_q
            wo=nrm((d, nh * n)), bo=nrm((d,)),           # W_o
            wc=nrm((m, dh, n)), bc=nrm((m,)),            # Atten_Conv.cnn
            ln1_g=jnp.ones((d,), jnp.float32), ln1_b=jnp.zeros((d,), jnp.float32),
            ln2_g=jnp.ones((d,), jnp.float32), ln2_b=jnp.zeros((d,), jnp.float32),
            w1=nrm((d_ff, d)), b1=nrm((d_ff,)),          # ffn.linear1
            w2=nrm((d, d_ff)), b2=nrm((d,)),             # ffn.linear2
        ))
    for layer in range(cfg['lstm_num_layers']):
        din = d if layer == 0 else 2 * H
        raw['lstm'].append([dict(w_ih=nrm((4 * H, din)), w_hh=nrm((4 * H, H)),
                                 b_ih=nrm((4 * H,)), b_hh=nrm((4 * H,)))
                            for _ in range(2)])          # [forward, reverse]
    return raw


def prepare_params(raw, cfg):
    d, m, h = cfg['d'], cfg['m'], cfg['h']
    nh = cfg['num_of_hid']
    K, H = cfg['cnn_kernel_size'], cfg['lstm_hidden_dim']
    dh = nh // h

    p = {
        # im2col conv weight: [k*d + cin, cout] = w[cout, cin, k]
        'textcnn_w': jnp.transpose(raw['textcnn_w'], (2, 1, 0)).reshape(K * d, d),
        'textcnn_b': raw['textcnn_b'].reshape(1, d),
        'laynorm_g': raw['laynorm_g'].reshape(1, d),
        'laynorm_b': raw['laynorm_b'].reshape(1, d),
        'gen_w_t': raw['gen_w'].T,
        'gen_b': raw['gen_b'].reshape(1, -1),
        'blocks': [],
        'lstm': [],
    }
    eye_h = jnp.eye(h, dtype=jnp.float32)
    for (n, _need_g), blk in zip(block_meta(cfg), raw['blocks']):
        wc, wo = blk['wc'], blk['wo']
        # block-diagonal (over heads) im2col conv weight: (n*nh, h*m)
        wc_knm = jnp.transpose(wc, (2, 1, 0))                         # [k, c, mm]
        wc_big = jnp.einsum('ij,kcm->kicjm', eye_h, wc_knm).reshape(n * nh, h * m)
        bc_big = jnp.tile(blk['bc'], h).reshape(1, h * m)
        # fold (F @ M) -> transpose_output -> W_o into one (h*m, d) matrix
        f_mat = jnp.transpose(wc, (1, 2, 0)).reshape(dh * n, m)       # F[c*n+k, mm]
        wo_heads = wo.reshape(d, h, dh * n)
        wcomb = jnp.einsum('jm,dhj->hmd', f_mat, wo_heads).reshape(h * m, d)
        p['blocks'].append(dict(
            wq_t=blk['wq'].T, bq=blk['bq'].reshape(1, nh),
            wc_big=wc_big, bc_big=bc_big, wcomb=wcomb, bo=blk['bo'].reshape(1, d),
            ln1_g=blk['ln1_g'].reshape(1, d), ln1_b=blk['ln1_b'].reshape(1, d),
            ln2_g=blk['ln2_g'].reshape(1, d), ln2_b=blk['ln2_b'].reshape(1, d),
            ffn_w1_t=blk['w1'].T, ffn_b1=blk['b1'].reshape(1, -1),
            ffn_w2_t=blk['w2'].T, ffn_b2=blk['b2'].reshape(1, d),
        ))
    for fwd, bwd in raw['lstm']:
        din = fwd['w_ih'].shape[1]
        zh = jnp.zeros((H, 4 * H), jnp.float32)
        zi = jnp.zeros((din, 4 * H), jnp.float32)
        # rows: [h_fwd | h_bwd | x_fwd | x_bwd] ; cols: [fwd gates (4H) | bwd gates (4H)]
        w_big = jnp.concatenate([
            jnp.concatenate([fwd['w_hh'].T, zh], axis=1),
            jnp.concatenate([zh, bwd['w_hh'].T], axis=1),
            jnp.concatenate([fwd['w_ih'].T, zi], axis=1),
            jnp.concatenate([zi, bwd['w_ih'].T], axis=1),
        ], axis=0)
        b_both = jnp.concatenate([fwd['b_ih'] + fwd['b_hh'],
                                  bwd['b_ih'] + bwd['b_hh']]).reshape(1, 8 * H)
        p['lstm'].append((w_big, b_both))
    return p


# ----------------------------------------------------------------------------

if __name__ == "__main__":
    cfg = dict(
        l=8, d=32, m=16, h=4,
        cnn_kernel_size=3,
        lstm_num_layers=2, lstm_dropout=0.0,
        n_list=[3, 5], act_dropout=0.05,
        lstm_hidden_dim=16, l_dropout=0.1,
        repeat_num=1, num_of_hid=32, d_ff=64,
    )
    B = 2
    L = cfg['l']  # sequence length == l so MaxPool1d(l) inside Atten_Conv pools to 1

    X = jax.random.normal(jax.random.PRNGKey(0), (B, L, cfg['d']), jnp.float32)
    params = prepare_params(init_raw_params(jax.random.PRNGKey(42), cfg), cfg)

    forward = jax.jit(lambda xx, pp: act_net_forward(xx, pp, cfg))
    out, atten = forward(X, params)
    jax.block_until_ready((out, atten))
    assert out.shape == (B, 2)
    assert atten.shape == (B, L, L // cfg['l'])
    print("KERNEL_OK")
</pallas_src>

<mosaic_0001>
module attributes {stable_mosaic.version = 11 : i64} {
  func.func @kernel(%arg0: memref<2x8x32xf32, #tpu.memory_space<vmem>>, %arg1: memref<96x32xf32, #tpu.memory_space<vmem>>, %arg2: memref<1x32xf32, #tpu.memory_space<vmem>>, %arg3: memref<2x8x32xf32, #tpu.memory_space<vmem>>, %arg4: memref<2x10x32xf32, #tpu.memory_space<vmem>>) attributes {dimension_semantics = [], scalar_prefetch = 0 : i64, scratch_operands = 1 : i64, tpu.core_type = #tpu.core_type<tc>} {
    %c0 = arith.constant 0 : index
    %c0_0 = arith.constant 0 : index
    %c0_1 = arith.constant 0 : index
    %0 = vector.load %arg0[%c0, %c0_0, %c0_1] : memref<2x8x32xf32, #tpu.memory_space<vmem>>, vector<2x8x32xf32>
    %cst = arith.constant 0.000000e+00 : f32
    %1 = vector.broadcast %cst : f32 to vector<2x10x32xf32>
    %c0_2 = arith.constant 0 : index
    %c0_3 = arith.constant 0 : index
    %c0_4 = arith.constant 0 : index
    %2 = vector.load %arg4[%c0_2, %c0_3, %c0_4] : memref<2x10x32xf32, #tpu.memory_space<vmem>>, vector<2x10x32xf32>
    tpu.vector_store %arg4[%c0_2, %c0_3, %c0_4], %1 {strides = array<i32>} : memref<2x10x32xf32, #tpu.memory_space<vmem>>, vector<2x10x32xf32>,
    %c0_5 = arith.constant 0 : index
    %c1 = arith.constant 1 : index
    %c0_6 = arith.constant 0 : index
    %3 = vector.load %arg4[%c0_5, %c1, %c0_6] : memref<2x10x32xf32, #tpu.memory_space<vmem>>, vector<2x8x32xf32>
    tpu.vector_store %arg4[%c0_5, %c1, %c0_6], %0 {strides = array<i32>} : memref<2x10x32xf32, #tpu.memory_space<vmem>>, vector<2x8x32xf32>,
    %c0_7 = arith.constant 0 : index
    %c0_8 = arith.constant 0 : index
    %c0_9 = arith.constant 0 : index
    %4 = vector.load %arg4[%c0_7, %c0_8, %c0_9] : memref<2x10x32xf32, #tpu.memory_space<vmem>>, vector<2x8x32xf32>
    %c0_10 = arith.constant 0 : index
    %c1_11 = arith.constant 1 : index
    %c0_12 = arith.constant 0 : index
    %5 = vector.load %arg4[%c0_10, %c1_11, %c0_12] : memref<2x10x32xf32, #tpu.memory_space<vmem>>, vector<2x8x32xf32>
    %c0_13 = arith.constant 0 : index
    %c2 = arith.constant 2 : index
    %c0_14 = arith.constant 0 : index
    %6 = vector.load %arg4[%c0_13, %c2, %c0_14] : memref<2x10x32xf32, #tpu.memory_space<vmem>>, vector<2x8x32xf32>
    %7 = tpu.concatenate %4, %5, %6 in 2 : vector<2x8x32xf32>, vector<2x8x32xf32>, vector<2x8x32xf32> -> vector<2x8x96xf32>
    %8 = vector.shape_cast %7 : vector<2x8x96xf32> to vector<16x96xf32>
    %c0_15 = arith.constant 0 : index
    %c0_16 = arith.constant 0 : index
    %9 = vector.load %arg1[%c0_15, %c0_16] : memref<96x32xf32, #tpu.memory_space<vmem>>, vector<96x32xf32>
    %cst_17 = arith.constant dense<0.000000e+00> : vector<16x32xf32>
    %10 = tpu.matmul %8, %9, %cst_17 {dimension_numbers = #tpu.dot_dimension_numbers<[1], [0], [0], [1], [0, 0, 1, 1], [], []>} : vector<16x96xf32>, vector<96x32xf32>, vector<16x32xf32> -> vector<16x32xf32>
    %c0_18 = arith.constant 0 : index
    %c0_19 = arith.constant 0 : index
    %11 = vector.load %arg2[%c0_18, %c0_19] : memref<1x32xf32, #tpu.memory_space<vmem>>, vector<1x32xf32>
    %12 = vector.broadcast %11 : vector<1x32xf32> to vector<16x32xf32>
    %13 = arith.addf %10, %12 : vector<16x32xf32>
    %cst_20 = arith.constant 0.000000e+00 : f32
    %14 = vector.broadcast %cst_20 : f32 to vector<16x32xf32>
    %15 = arith.maximumf %13, %14 : vector<16x32xf32>
    %16 = vector.shape_cast %15 : vector<16x32xf32> to vector<2x8x32xf32>
    %17 = arith.addf %0, %16 : vector<2x8x32xf32>
    %c0_21 = arith.constant 0 : index
    %c0_22 = arith.constant 0 : index
    %c0_23 = arith.constant 0 : index
    %18 = vector.load %arg3[%c0_21, %c0_22, %c0_23] : memref<2x8x32xf32, #tpu.memory_space<vmem>>, vector<2x8x32xf32>
    tpu.vector_store %arg3[%c0_21, %c0_22, %c0_23], %17 {strides = array<i32>} : memref<2x8x32xf32, #tpu.memory_space<vmem>>, vector<2x8x32xf32>,
    return
  }
}

module attributes {stable_mosaic.version = 11 : i64} {
  func.func @kernel(%arg0: memref<2x8x32xf32, #tpu.memory_space<vmem>>, %arg1: memref<32x32xf32, #tpu.memory_space<vmem>>, %arg2: memref<1x32xf32, #tpu.memory_space<vmem>>, %arg3: memref<96x64xf32, #tpu.memory_space<vmem>>, %arg4: memref<1x64xf32, #tpu.memory_space<vmem>>, %arg5: memref<64x32xf32, #tpu.memory_space<vmem>>, %arg6: memref<1x32xf32, #tpu.memory_space<vmem>>, %arg7: memref<1x32xf32, #tpu.memory_space<vmem>>, %arg8: memref<1x32xf32, #tpu.memory_space<vmem>>, %arg9: memref<1x32xf32, #tpu.memory_space<vmem>>, %arg10: memref<1x32xf32, #tpu.memory_space<vmem>>, %arg11: memref<32x64xf32, #tpu.memory_space<vmem>>, %arg12: memref<1x64xf32, #tpu.memory_space<vmem>>, %arg13: memref<64x32xf32, #tpu.memory_space<vmem>>, %arg14: memref<1x32xf32, #tpu.memory_space<vmem>>, %arg15: memref<2x8x32xf32, #tpu.memory_space<vmem>>, %arg16: memref<2x10x32xf32, #tpu.memory_space<vmem>>) attributes {dimension_semantics = [], scalar_prefetch = 0 : i64, scratch_operands = 1 : i64, tpu.core_type = #tpu.core_type<tc>} {
    %c0 = arith.constant 0 : index
    %c0_0 = arith.constant 0 : index
    %c0_1 = arith.constant 0 : index
    %0 = vector.load %arg0[%c0, %c0_0, %c0_1] : memref<2x8x32xf32, #tpu.memory_space<vmem>>, vector<2x8x32xf32>
    %1 = vector.shape_cast %0 : vector<2x8x32xf32> to vector<16x32xf32>
    %c0_2 = arith.constant 0 : index
    %c0_3 = arith.constant 0 : index
    %2 = vector.load %arg1[%c0_2, %c0_3] : memref<32x32xf32, #tpu.memory_space<vmem>>, vector<32x32xf32>
    %cst = arith.constant dense<0.000000e+00> : vector<16x32xf32>
    %3 = tpu.matmul %1, %2, %cst {dimension_numbers = #tpu.dot_dimension_numbers<[1], [0], [0], [1], [0, 0, 1, 1], [], []>} : vector<16x32xf32>, vector<32x32xf32>, vector<16x32xf32> -> vector<16x32xf32>
    %c0_4 = arith.constant 0 : index
    %c0_5 = arith.constant 0 : index
    %4 = vector.load %arg2[%c0_4, %c0_5] : memref<1x32xf32, #tpu.memory_space<vmem>>, vector<1x32xf32>
    %5 = vector.broadcast %4 : vector<1x32xf32> to vector<16x32xf32>
    %6 = arith.addf %3, %5 : vector<16x32xf32>
    %cst_6 = arith.constant 0.000000e+00 : f32
    %7 = vector.broadcast %cst_6 : f32 to vector<2x10x32xf32>
    %c0_7 = arith.constant 0 : index
    %c0_8 = arith.constant 0 : index
    %c0_9 = arith.constant 0 : index
    %8 = vector.load %arg16[%c0_7, %c0_8, %c0_9] : memref<2x10x32xf32, #tpu.memory_space<vmem>>, vector<2x10x32xf32>
    tpu.vector_store %arg16[%c0_7, %c0_8, %c0_9], %7 {strides = array<i32>} : memref<2x10x32xf32, #tpu.memory_space<vmem>>, vector<2x10x32xf32>,
    %9 = vector.shape_cast %6 : vector<16x32xf32> to vector<2x8x32xf32>
    %c0_10 = arith.constant 0 : index
    %c1 = arith.constant 1 : index
    %c0_11 = arith.constant 0 : index
    %10 = vector.load %arg16[%c0_10, %c1, %c0_11] : memref<2x10x32xf32, #tpu.memory_space<vmem>>, vector<2x8x32xf32>
    tpu.vector_store %arg16[%c0_10, %c1, %c0_11], %9 {strides = array<i32>} : memref<2x10x32xf32, #tpu.memory_space<vmem>>, vector<2x8x32xf32>,
    %c0_12 = arith.constant 0 : index
    %c0_13 = arith.constant 0 : index
    %c0_14 = arith.constant 0 : index
    %11 = vector.load %arg16[%c0_12, %c0_13, %c0_14] : memref<2x10x32xf32, #tpu.memory_space<vmem>>, vector<2x8x32xf32>
    %c0_15 = arith.constant 0 : index
    %c1_16 = arith.constant 1 : index
    %c0_17 = arith.constant 0 : index
    %12 = vector.load %arg16[%c0_15, %c1_16, %c0_17] : memref<2x10x32xf32, #tpu.memory_space<vmem>>, vector<2x8x32xf32>
    %c0_18 = arith.constant 0 : index
    %c2 = arith.constant 2 : index
    %c0_19 = arith.constant 0 : index
    %13 = vector.load %arg16[%c0_18, %c2, %c0_19] : memref<2x10x32xf32, #tpu.memory_space<vmem>>, vector<2x8x32xf32>
    %14 = tpu.concatenate %11, %12, %13 in 2 : vector<2x8x32xf32>, vector<2x8x32xf32>, vector<2x8x32xf32> -> vector<2x8x96xf32>
    %15 = vector.shape_cast %14 : vector<2x8x96xf32> to vector<16x96xf32>
    %c0_20 = arith.constant 0 : index
    %c0_21 = arith.constant 0 : index
    %16 = vector.load %arg3[%c0_20, %c0_21] : memref<96x64xf32, #tpu.memory_space<vmem>>, vector<96x64xf32>
    %cst_22 = arith.constant dense<0.000000e+00> : vector<16x64xf32>
    %17 = tpu.matmul %15, %16, %cst_22 {dimension_numbers = #tpu.dot_dimension_numbers<[1], [0], [0], [1], [0, 0, 1, 1], [], []>} : vector<16x96xf32>, vector<96x64xf32>, vector<16x64xf32> -> vector<16x64xf32>
    %c0_23 = arith.constant 0 : index
    %c0_24 = arith.constant 0 : index
    %18 = vector.load %arg4[%c0_23, %c0_24] : memref<1x64xf32, #tpu.memory_space<vmem>>, vector<1x64xf32>
    %19 = vector.broadcast %18 : vector<1x64xf32> to vector<16x64xf32>
    %20 = arith.addf %17, %19 : vector<16x64xf32>
    %c0_25 = arith.constant 0 : index
    %c0_26 = arith.constant 0 : index
    %21 = vector.load %arg5[%c0_25, %c0_26] : memref<64x32xf32, #tpu.memory_space<vmem>>, vector<64x32xf32>
    %cst_27 = arith.constant dense<0.000000e+00> : vector<16x32xf32>
    %22 = tpu.matmul %20, %21, %cst_27 {dimension_numbers = #tpu.dot_dimension_numbers<[1], [0], [0], [1], [0, 0, 1, 1], [], []>} : vector<16x64xf32>, vector<64x32xf32>, vector<16x32xf32> -> vector<16x32xf32>
    %c0_28 = arith.constant 0 : index
    %c0_29 = arith.constant 0 : index
    %23 = vector.load %arg6[%c0_28, %c0_29] : memref<1x32xf32, #tpu.memory_space<vmem>>, vector<1x32xf32>
    %24 = vector.broadcast %23 : vector<1x32xf32> to vector<16x32xf32>
    %25 = arith.addf %22, %24 : vector<16x32xf32>
    %26 = arith.addf %25, %1 : vector<16x32xf32>
    %c0_30 = arith.constant 0 : index
    %c0_31 = arith.constant 0 : index
    %27 = vector.load %arg7[%c0_30, %c0_31] : memref<1x32xf32, #tpu.memory_space<vmem>>, vector<1x32xf32>
    %c0_32 = arith.constant 0 : index
    %c0_33 = arith.constant 0 : index
    %28 = vector.load %arg8[%c0_32, %c0_33] : memref<1x32xf32, #tpu.memory_space<vmem>>, vector<1x32xf32>
    %cst_34 = arith.constant dense<0.000000e+00> : vector<16xf32>
    %29 = vector.multi_reduction <add>, %26, %cst_34 [1] : vector<16x32xf32> to vector<16xf32>
    %30 = vector.shape_cast %29 : vector<16xf32> to vector<16x1xf32>
    %cst_35 = arith.constant 3.200000e+01 : f32
    %31 = vector.broadcast %cst_35 : f32 to vector<16x1xf32>
    %32 = arith.divf %30, %31 : vector<16x1xf32>
    %33 = vector.broadcast %32 : vector<16x1xf32> to vector<16x32xf32>
    %34 = arith.subf %26, %33 : vector<16x32xf32>
    %35 = arith.mulf %34, %34 : vector<16x32xf32>
    %cst_36 = arith.constant dense<0.000000e+00> : vector<16xf32>
    %36 = vector.multi_reduction <add>, %35, %cst_36 [1] : vector<16x32xf32> to vector<16xf32>
    %37 = vector.shape_cast %36 : vector<16xf32> to vector<16x1xf32>
    %cst_37 = arith.constant 3.200000e+01 : f32
    %38 = vector.broadcast %cst_37 : f32 to vector<16x1xf32>
    %39 = arith.divf %37, %38 : vector<16x1xf32>
    %40 = vector.broadcast %32 : vector<16x1xf32> to vector<16x32xf32>
    %41 = arith.subf %26, %40 : vector<16x32xf32>
    %cst_38 = arith.constant 9.99999974E-6 : f32
    %42 = vector.broadcast %cst_38 : f32 to vector<16x1xf32>
    %43 = arith.addf %39, %42 : vector<16x1xf32>
    %44 = math.rsqrt %43 : vector<16x1xf32>
    %45 = vector.broadcast %44 : vector<16x1xf32> to vector<16x32xf32>
    %46 = arith.mulf %41, %45 : vector<16x32xf32>
    %47 = vector.broadcast %27 : vector<1x32xf32> to vector<16x32xf32>
    %48 = arith.mulf %46, %47 : vector<16x32xf32>
    %49 = vector.broadcast %28 : vector<1x32xf32> to vector<16x32xf32>
    %50 = arith.addf %48, %49 : vector<16x32xf32>
    %c0_39 = arith.constant 0 : index
    %c0_40 = arith.constant 0 : index
    %51 = vector.load %arg11[%c0_39, %c0_40] : memref<32x64xf32, #tpu.memory_space<vmem>>, vector<32x64xf32>
    %cst_41 = arith.constant dense<0.000000e+00> : vector<16x64xf32>
    %52 = tpu.matmul %50, %51, %cst_41 {dimension_numbers = #tpu.dot_dimension_numbers<[1], [0], [0], [1], [0, 0, 1, 1], [], []>} : vector<16x32xf32>, vector<32x64xf32>, vector<16x64xf32> -> vector<16x64xf32>
    %c0_42 = arith.constant 0 : index
    %c0_43 = arith.constant 0 : index
    %53 = vector.load %arg12[%c0_42, %c0_43] : memref<1x64xf32, #tpu.memory_space<vmem>>, vector<1x64xf32>
    %54 = vector.broadcast %53 : vector<1x64xf32> to vector<16x64xf32>
    %55 = arith.addf %52, %54 : vector<16x64xf32>
    %cst_44 = arith.constant 0.000000e+00 : f32
    %56 = vector.broadcast %cst_44 : f32 to vector<16x64xf32>
    %57 = arith.maximumf %55, %56 : vector<16x64xf32>
    %c0_45 = arith.constant 0 : index
    %c0_46 = arith.constant 0 : index
    %58 = vector.load %arg13[%c0_45, %c0_46] : memref<64x32xf32, #tpu.memory_space<vmem>>, vector<64x32xf32>
    %cst_47 = arith.constant dense<0.000000e+00> : vector<16x32xf32>
    %59 = tpu.matmul %57, %58, %cst_47 {dimension_numbers = #tpu.dot_dimension_numbers<[1], [0], [0], [1], [0, 0, 1, 1], [], []>} : vector<16x64xf32>, vector<64x32xf32>, vector<16x32xf32> -> vector<16x32xf32>
    %c0_48 = arith.constant 0 : index
    %c0_49 = arith.constant 0 : index
    %60 = vector.load %arg14[%c0_48, %c0_49] : memref<1x32xf32, #tpu.memory_space<vmem>>, vector<1x32xf32>
    %61 = vector.broadcast %60 : vector<1x32xf32> to vector<16x32xf32>
    %62 = arith.addf %59, %61 : vector<16x32xf32>
    %63 = arith.addf %62, %1 : vector<16x32xf32>
    %c0_50 = arith.constant 0 : index
    %c0_51 = arith.constant 0 : index
    %64 = vector.load %arg9[%c0_50, %c0_51] : memref<1x32xf32, #tpu.memory_space<vmem>>, vector<1x32xf32>
    %c0_52 = arith.constant 0 : index
    %c0_53 = arith.constant 0 : index
    %65 = vector.load %arg10[%c0_52, %c0_53] : memref<1x32xf32, #tpu.memory_space<vmem>>, vector<1x32xf32>
    %cst_54 = arith.constant dense<0.000000e+00> : vector<16xf32>
    %66 = vector.multi_reduction <add>, %63, %cst_54 [1] : vector<16x32xf32> to vector<16xf32>
    %67 = vector.shape_cast %66 : vector<16xf32> to vector<16x1xf32>
    %cst_55 = arith.constant 3.200000e+01 : f32
    %68 = vector.broadcast %cst_55 : f32 to vector<16x1xf32>
    %69 = arith.divf %67, %68 : vector<16x1xf32>
    %70 = vector.broadcast %69 : vector<16x1xf32> to vector<16x32xf32>
    %71 = arith.subf %63, %70 : vector<16x32xf32>
    %72 = arith.mulf %71, %71 : vector<16x32xf32>
    %cst_56 = arith.constant dense<0.000000e+00> : vector<16xf32>
    %73 = vector.multi_reduction <add>, %72, %cst_56 [1] : vector<16x32xf32> to vector<16xf32>
    %74 = vector.shape_cast %73 : vector<16xf32> to vector<16x1xf32>
    %cst_57 = arith.constant 3.200000e+01 : f32
    %75 = vector.broadcast %cst_57 : f32 to vector<16x1xf32>
    %76 = arith.divf %74, %75 : vector<16x1xf32>
    %77 = vector.broadcast %69 : vector<16x1xf32> to vector<16x32xf32>
    %78 = arith.subf %63, %77 : vector<16x32xf32>
    %cst_58 = arith.constant 9.99999974E-6 : f32
    %79 = vector.broadcast %cst_58 : f32 to vector<16x1xf32>
    %80 = arith.addf %76, %79 : vector<16x1xf32>
    %81 = math.rsqrt %80 : vector<16x1xf32>
    %82 = vector.broadcast %81 : vector<16x1xf32> to vector<16x32xf32>
    %83 = arith.mulf %78, %82 : vector<16x32xf32>
    %84 = vector.broadcast %64 : vector<1x32xf32> to vector<16x32xf32>
    %85 = arith.mulf %83, %84 : vector<16x32xf32>
    %86 = vector.broadcast %65 : vector<1x32xf32> to vector<16x32xf32>
    %87 = arith.addf %85, %86 : vector<16x32xf32>
    %88 = vector.shape_cast %87 : vector<16x32xf32> to vector<2x8x32xf32>
    %c0_59 = arith.constant 0 : index
    %c0_60 = arith.constant 0 : index
    %c0_61 = arith.constant 0 : index
    %89 = vector.load %arg15[%c0_59, %c0_60, %c0_61] : memref<2x8x32xf32, #tpu.memory_space<vmem>>, vector<2x8x32xf32>
    tpu.vector_store %arg15[%c0_59, %c0_60, %c0_61], %88 {strides = array<i32>} : memref<2x8x32xf32, #tpu.memory_space<vmem>>, vector<2x8x32xf32>,
    return
  }
}

module attributes {stable_mosaic.version = 11 : i64} {
  func.func @_final_mix_kernel(%arg0: memref<2x8x32xf32, #tpu.memory_space<vmem>>, %arg1: memref<2x1x32xf32, #tpu.memory_space<vmem>>, %arg2: memref<2x8x32xf32, #tpu.memory_space<vmem>>, %arg3: memref<1x32xf32, #tpu.memory_space<vmem>>, %arg4: memref<1x32xf32, #tpu.memory_space<vmem>>, %arg5: memref<2x8x32xf32, #tpu.memory_space<vmem>>, %arg6: memref<2x8x1xf32, #tpu.memory_space<vmem>>) attributes {dimension_semantics = [], scalar_prefetch = 0 : i64, scratch_operands = 0 : i64, tpu.core_type = #tpu.core_type<tc>} {
    %c0 = arith.constant 0 : index
    %c0_0 = arith.constant 0 : index
    %c0_1 = arith.constant 0 : index
    %0 = vector.load %arg0[%c0, %c0_0, %c0_1] : memref<2x8x32xf32, #tpu.memory_space<vmem>>, vector<2x8x32xf32>
    %c0_2 = arith.constant 0 : index
    %c0_3 = arith.constant 0 : index
    %c0_4 = arith.constant 0 : index
    %1 = vector.load %arg1[%c0_2, %c0_3, %c0_4] : memref<2x1x32xf32, #tpu.memory_space<vmem>>, vector<2x1x32xf32>
    %2 = vector.broadcast %1 : vector<2x1x32xf32> to vector<2x8x32xf32>
    %3 = arith.mulf %0, %2 : vector<2x8x32xf32>
    %cst = arith.constant dense<0.000000e+00> : vector<2x8xf32>
    %4 = vector.multi_reduction <add>, %3, %cst [2] : vector<2x8x32xf32> to vector<2x8xf32>
    %5 = vector.shape_cast %4 : vector<2x8xf32> to vector<2x8x1xf32>
    %c0_5 = arith.constant 0 : index
    %c0_6 = arith.constant 0 : index
    %c0_7 = arith.constant 0 : index
    %6 = vector.load %arg6[%c0_5, %c0_6, %c0_7] : memref<2x8x1xf32, #tpu.memory_space<vmem>>, vector<2x8x1xf32>
    tpu.vector_store %arg6[%c0_5, %c0_6, %c0_7], %5 {strides = array<i32>} : memref<2x8x1xf32, #tpu.memory_space<vmem>>, vector<2x8x1xf32>,
    %7 = vector.shape_cast %0 : vector<2x8x32xf32> to vector<16x32xf32>
    %c0_8 = arith.constant 0 : index
    %c0_9 = arith.constant 0 : index
    %8 = vector.load %arg3[%c0_8, %c0_9] : memref<1x32xf32, #tpu.memory_space<vmem>>, vector<1x32xf32>
    %c0_10 = arith.constant 0 : index
    %c0_11 = arith.constant 0 : index
    %9 = vector.load %arg4[%c0_10, %c0_11] : memref<1x32xf32, #tpu.memory_space<vmem>>, vector<1x32xf32>
    %cst_12 = arith.constant dense<0.000000e+00> : vector<16xf32>
    %10 = vector.multi_reduction <add>, %7, %cst_12 [1] : vector<16x32xf32> to vector<16xf32>
    %11 = vector.shape_cast %10 : vector<16xf32> to vector<16x1xf32>
    %cst_13 = arith.constant 3.200000e+01 : f32
    %12 = vector.broadcast %cst_13 : f32 to vector<16x1xf32>
    %13 = arith.divf %11, %12 : vector<16x1xf32>
    %14 = vector.broadcast %13 : vector<16x1xf32> to vector<16x32xf32>
    %15 = arith.subf %7, %14 : vector<16x32xf32>
    %16 = arith.mulf %15, %15 : vector<16x32xf32>
    %cst_14 = arith.constant dense<0.000000e+00> : vector<16xf32>
    %17 = vector.multi_reduction <add>, %16, %cst_14 [1] : vector<16x32xf32> to vector<16xf32>
    %18 = vector.shape_cast %17 : vector<16xf32> to vector<16x1xf32>
    %cst_15 = arith.constant 3.200000e+01 : f32
    %19 = vector.broadcast %cst_15 : f32 to vector<16x1xf32>
    %20 = arith.divf %18, %19 : vector<16x1xf32>
    %21 = vector.broadcast %13 : vector<16x1xf32> to vector<16x32xf32>
    %22 = arith.subf %7, %21 : vector<16x32xf32>
    %cst_16 = arith.constant 9.99999974E-6 : f32
    %23 = vector.broadcast %cst_16 : f32 to vector<16x1xf32>
    %24 = arith.addf %20, %23 : vector<16x1xf32>
    %25 = math.rsqrt %24 : vector<16x1xf32>
    %26 = vector.broadcast %25 : vector<16x1xf32> to vector<16x32xf32>
    %27 = arith.mulf %22, %26 : vector<16x32xf32>
    %28 = vector.broadcast %8 : vector<1x32xf32> to vector<16x32xf32>
    %29 = arith.mulf %27, %28 : vector<16x32xf32>
    %30 = vector.broadcast %9 : vector<1x32xf32> to vector<16x32xf32>
    %31 = arith.addf %29, %30 : vector<16x32xf32>
    %32 = vector.shape_cast %31 : vector<16x32xf32> to vector<2x8x32xf32>
    %c0_17 = arith.constant 0 : index
    %c0_18 = arith.constant 0 : index
    %c0_19 = arith.constant 0 : index
    %33 = vector.load %arg2[%c0_17, %c0_18, %c0_19] : memref<2x8x32xf32, #tpu.memory_space<vmem>>, vector<2x8x32xf32>
    %34 = arith.addf %32, %33 : vector<2x8x32xf32>
    %c0_20 = arith.constant 0 : index
    %c0_21 = arith.constant 0 : index
    %c0_22 = arith.constant 0 : index
    %35 = vector.load %arg5[%c0_20, %c0_21, %c0_22] : memref<2x8x32xf32, #tpu.memory_space<vmem>>, vector<2x8x32xf32>
    tpu.vector_store %arg5[%c0_20, %c0_21, %c0_22], %34 {strides = array<i32>} : memref<2x8x32xf32, #tpu.memory_space<vmem>>, vector<2x8x32xf32>,
    return
  }
}

module attributes {stable_mosaic.version = 11 : i64} {
  func.func @kernel(%arg0: memref<2x8x32xf32, #tpu.memory_space<vmem>>, %arg1: memref<32x32xf32, #tpu.memory_space<vmem>>, %arg2: memref<1x32xf32, #tpu.memory_space<vmem>>, %arg3: memref<160x64xf32, #tpu.memory_space<vmem>>, %arg4: memref<1x64xf32, #tpu.memory_space<vmem>>, %arg5: memref<64x32xf32, #tpu.memory_space<vmem>>, %arg6: memref<1x32xf32, #tpu.memory_space<vmem>>, %arg7: memref<1x32xf32, #tpu.memory_space<vmem>>, %arg8: memref<1x32xf32, #tpu.memory_space<vmem>>, %arg9: memref<1x32xf32, #tpu.memory_space<vmem>>, %arg10: memref<1x32xf32, #tpu.memory_space<vmem>>, %arg11: memref<32x64xf32, #tpu.memory_space<vmem>>, %arg12: memref<1x64xf32, #tpu.memory_space<vmem>>, %arg13: memref<64x32xf32, #tpu.memory_space<vmem>>, %arg14: memref<1x32xf32, #tpu.memory_space<vmem>>, %arg15: memref<2x8x32xf32, #tpu.memory_space<vmem>>, %arg16: memref<2x1x32xf32, #tpu.memory_space<vmem>>, %arg17: memref<2x12x32xf32, #tpu.memory_space<vmem>>) attributes {dimension_semantics = [], scalar_prefetch = 0 : i64, scratch_operands = 1 : i64, tpu.core_type = #tpu.core_type<tc>} {
    %c0 = arith.constant 0 : index
    %c0_0 = arith.constant 0 : index
    %c0_1 = arith.constant 0 : index
    %0 = vector.load %arg0[%c0, %c0_0, %c0_1] : memref<2x8x32xf32, #tpu.memory_space<vmem>>, vector<2x8x32xf32>
    %1 = vector.shape_cast %0 : vector<2x8x32xf32> to vector<16x32xf32>
    %c0_2 = arith.constant 0 : index
    %c0_3 = arith.constant 0 : index
    %2 = vector.load %arg1[%c0_2, %c0_3] : memref<32x32xf32, #tpu.memory_space<vmem>>, vector<32x32xf32>
    %cst = arith.constant dense<0.000000e+00> : vector<16x32xf32>
    %3 = tpu.matmul %1, %2, %cst {dimension_numbers = #tpu.dot_dimension_numbers<[1], [0], [0], [1], [0, 0, 1, 1], [], []>} : vector<16x32xf32>, vector<32x32xf32>, vector<16x32xf32> -> vector<16x32xf32>
    %c0_4 = arith.constant 0 : index
    %c0_5 = arith.constant 0 : index
    %4 = vector.load %arg2[%c0_4, %c0_5] : memref<1x32xf32, #tpu.memory_space<vmem>>, vector<1x32xf32>
    %5 = vector.broadcast %4 : vector<1x32xf32> to vector<16x32xf32>
    %6 = arith.addf %3, %5 : vector<16x32xf32>
    %cst_6 = arith.constant 0.000000e+00 : f32
    %7 = vector.broadcast %cst_6 : f32 to vector<2x12x32xf32>
    %c0_7 = arith.constant 0 : index
    %c0_8 = arith.constant 0 : index
    %c0_9 = arith.constant 0 : index
    %8 = vector.load %arg17[%c0_7, %c0_8, %c0_9] : memref<2x12x32xf32, #tpu.memory_space<vmem>>, vector<2x12x32xf32>
    tpu.vector_store %arg17[%c0_7, %c0_8, %c0_9], %7 {strides = array<i32>} : memref<2x12x32xf32, #tpu.memory_space<vmem>>, vector<2x12x32xf32>,
    %9 = vector.shape_cast %6 : vector<16x32xf32> to vector<2x8x32xf32>
    %c0_10 = arith.constant 0 : index
    %c2 = arith.constant 2 : index
    %c0_11 = arith.constant 0 : index
    %10 = vector.load %arg17[%c0_10, %c2, %c0_11] : memref<2x12x32xf32, #tpu.memory_space<vmem>>, vector<2x8x32xf32>
    tpu.vector_store %arg17[%c0_10, %c2, %c0_11], %9 {strides = array<i32>} : memref<2x12x32xf32, #tpu.memory_space<vmem>>, vector<2x8x32xf32>,
    %c0_12 = arith.constant 0 : index
    %c0_13 = arith.constant 0 : index
    %c0_14 = arith.constant 0 : index
    %11 = vector.load %arg17[%c0_12, %c0_13, %c0_14] : memref<2x12x32xf32, #tpu.memory_space<vmem>>, vector<2x8x32xf32>
    %c0_15 = arith.constant 0 : index
    %c1 = arith.constant 1 : index
    %c0_16 = arith.constant 0 : index
    %12 = vector.load %arg17[%c0_15, %c1, %c0_16] : memref<2x12x32xf32, #tpu.memory_space<vmem>>, vector<2x8x32xf32>
    %c0_17 = arith.constant 0 : index
    %c2_18 = arith.constant 2 : index
    %c0_19 = arith.constant 0 : index
    %13 = vector.load %arg17[%c0_17, %c2_18, %c0_19] : memref<2x12x32xf32, #tpu.memory_space<vmem>>, vector<2x8x32xf32>
    %c0_20 = arith.constant 0 : index
    %c3 = arith.constant 3 : index
    %c0_21 = arith.constant 0 : index
    %14 = vector.load %arg17[%c0_20, %c3, %c0_21] : memref<2x12x32xf32, #tpu.memory_space<vmem>>, vector<2x8x32xf32>
    %c0_22 = arith.constant 0 : index
    %c4 = arith.constant 4 : index
    %c0_23 = arith.constant 0 : index
    %15 = vector.load %arg17[%c0_22, %c4, %c0_23] : memref<2x12x32xf32, #tpu.memory_space<vmem>>, vector<2x8x32xf32>
    %16 = tpu.concatenate %11, %12, %13, %14, %15 in 2 : vector<2x8x32xf32>, vector<2x8x32xf32>, vector<2x8x32xf32>, vector<2x8x32xf32>, vector<2x8x32xf32> -> vector<2x8x160xf32>
    %17 = vector.shape_cast %16 : vector<2x8x160xf32> to vector<16x160xf32>
    %c0_24 = arith.constant 0 : index
    %c0_25 = arith.constant 0 : index
    %18 = vector.load %arg3[%c0_24, %c0_25] : memref<160x64xf32, #tpu.memory_space<vmem>>, vector<160x64xf32>
    %cst_26 = arith.constant dense<0.000000e+00> : vector<16x64xf32>
    %19 = tpu.matmul %17, %18, %cst_26 {dimension_numbers = #tpu.dot_dimension_numbers<[1], [0], [0], [1], [0, 0, 1, 1], [], []>} : vector<16x160xf32>, vector<160x64xf32>, vector<16x64xf32> -> vector<16x64xf32>
    %c0_27 = arith.constant 0 : index
    %c0_28 = arith.constant 0 : index
    %20 = vector.load %arg4[%c0_27, %c0_28] : memref<1x64xf32, #tpu.memory_space<vmem>>, vector<1x64xf32>
    %21 = vector.broadcast %20 : vector<1x64xf32> to vector<16x64xf32>
    %22 = arith.addf %19, %21 : vector<16x64xf32>
    %c0_29 = arith.constant 0 : index
    %c0_30 = arith.constant 0 : index
    %23 = vector.load %arg5[%c0_29, %c0_30] : memref<64x32xf32, #tpu.memory_space<vmem>>, vector<64x32xf32>
    %cst_31 = arith.constant dense<0.000000e+00> : vector<16x32xf32>
    %24 = tpu.matmul %22, %23, %cst_31 {dimension_numbers = #tpu.dot_dimension_numbers<[1], [0], [0], [1], [0, 0, 1, 1], [], []>} : vector<16x64xf32>, vector<64x32xf32>, vector<16x32xf32> -> vector<16x32xf32>
    %c0_32 = arith.constant 0 : index
    %c0_33 = arith.constant 0 : index
    %25 = vector.load %arg6[%c0_32, %c0_33] : memref<1x32xf32, #tpu.memory_space<vmem>>, vector<1x32xf32>
    %26 = vector.broadcast %25 : vector<1x32xf32> to vector<16x32xf32>
    %27 = arith.addf %24, %26 : vector<16x32xf32>
    %28 = arith.addf %27, %1 : vector<16x32xf32>
    %c0_34 = arith.constant 0 : index
    %c0_35 = arith.constant 0 : index
    %29 = vector.load %arg7[%c0_34, %c0_35] : memref<1x32xf32, #tpu.memory_space<vmem>>, vector<1x32xf32>
    %c0_36 = arith.constant 0 : index
    %c0_37 = arith.constant 0 : index
    %30 = vector.load %arg8[%c0_36, %c0_37] : memref<1x32xf32, #tpu.memory_space<vmem>>, vector<1x32xf32>
    %cst_38 = arith.constant dense<0.000000e+00> : vector<16xf32>
    %31 = vector.multi_reduction <add>, %28, %cst_38 [1] : vector<16x32xf32> to vector<16xf32>
    %32 = vector.shape_cast %31 : vector<16xf32> to vector<16x1xf32>
    %cst_39 = arith.constant 3.200000e+01 : f32
    %33 = vector.broadcast %cst_39 : f32 to vector<16x1xf32>
    %34 = arith.divf %32, %33 : vector<16x1xf32>
    %35 = vector.broadcast %34 : vector<16x1xf32> to vector<16x32xf32>
    %36 = arith.subf %28, %35 : vector<16x32xf32>
    %37 = arith.mulf %36, %36 : vector<16x32xf32>
    %cst_40 = arith.constant dense<0.000000e+00> : vector<16xf32>
    %38 = vector.multi_reduction <add>, %37, %cst_40 [1] : vector<16x32xf32> to vector<16xf32>
    %39 = vector.shape_cast %38 : vector<16xf32> to vector<16x1xf32>
    %cst_41 = arith.constant 3.200000e+01 : f32
    %40 = vector.broadcast %cst_41 : f32 to vector<16x1xf32>
    %41 = arith.divf %39, %40 : vector<16x1xf32>
    %42 = vector.broadcast %34 : vector<16x1xf32> to vector<16x32xf32>
    %43 = arith.subf %28, %42 : vector<16x32xf32>
    %cst_42 = arith.constant 9.99999974E-6 : f32
    %44 = vector.broadcast %cst_42 : f32 to vector<16x1xf32>
    %45 = arith.addf %41, %44 : vector<16x1xf32>
    %46 = math.rsqrt %45 : vector<16x1xf32>
    %47 = vector.broadcast %46 : vector<16x1xf32> to vector<16x32xf32>
    %48 = arith.mulf %43, %47 : vector<16x32xf32>
    %49 = vector.broadcast %29 : vector<1x32xf32> to vector<16x32xf32>
    %50 = arith.mulf %48, %49 : vector<16x32xf32>
    %51 = vector.broadcast %30 : vector<1x32xf32> to vector<16x32xf32>
    %52 = arith.addf %50, %51 : vector<16x32xf32>
    %c0_43 = arith.constant 0 : index
    %c0_44 = arith.constant 0 : index
    %53 = vector.load %arg11[%c0_43, %c0_44] : memref<32x64xf32, #tpu.memory_space<vmem>>, vector<32x64xf32>
    %cst_45 = arith.constant dense<0.000000e+00> : vector<16x64xf32>
    %54 = tpu.matmul %52, %53, %cst_45 {dimension_numbers = #tpu.dot_dimension_numbers<[1], [0], [0], [1], [0, 0, 1, 1], [], []>} : vector<16x32xf32>, vector<32x64xf32>, vector<16x64xf32> -> vector<16x64xf32>
    %c0_46 = arith.constant 0 : index
    %c0_47 = arith.constant 0 : index
    %55 = vector.load %arg12[%c0_46, %c0_47] : memref<1x64xf32, #tpu.memory_space<vmem>>, vector<1x64xf32>
    %56 = vector.broadcast %55 : vector<1x64xf32> to vector<16x64xf32>
    %57 = arith.addf %54, %56 : vector<16x64xf32>
    %cst_48 = arith.constant 0.000000e+00 : f32
    %58 = vector.broadcast %cst_48 : f32 to vector<16x64xf32>
    %59 = arith.maximumf %57, %58 : vector<16x64xf32>
    %c0_49 = arith.constant 0 : index
    %c0_50 = arith.constant 0 : index
    %60 = vector.load %arg13[%c0_49, %c0_50] : memref<64x32xf32, #tpu.memory_space<vmem>>, vector<64x32xf32>
    %cst_51 = arith.constant dense<0.000000e+00> : vector<16x32xf32>
    %61 = tpu.matmul %59, %60, %cst_51 {dimension_numbers = #tpu.dot_dimension_numbers<[1], [0], [0], [1], [0, 0, 1, 1], [], []>} : vector<16x64xf32>, vector<64x32xf32>, vector<16x32xf32> -> vector<16x32xf32>
    %c0_52 = arith.constant 0 : index
    %c0_53 = arith.constant 0 : index
    %62 = vector.load %arg14[%c0_52, %c0_53] : memref<1x32xf32, #tpu.memory_space<vmem>>, vector<1x32xf32>
    %63 = vector.broadcast %62 : vector<1x32xf32> to vector<16x32xf32>
    %64 = arith.addf %61, %63 : vector<16x32xf32>
    %65 = arith.addf %64, %1 : vector<16x32xf32>
    %c0_54 = arith.constant 0 : index
    %c0_55 = arith.constant 0 : index
    %66 = vector.load %arg9[%c0_54, %c0_55] : memref<1x32xf32, #tpu.memory_space<vmem>>, vector<1x32xf32>
    %c0_56 = arith.constant 0 : index
    %c0_57 = arith.constant 0 : index
    %67 = vector.load %arg10[%c0_56, %c0_57] : memref<1x32xf32, #tpu.memory_space<vmem>>, vector<1x32xf32>
    %cst_58 = arith.constant dense<0.000000e+00> : vector<16xf32>
    %68 = vector.multi_reduction <add>, %65, %cst_58 [1] : vector<16x32xf32> to vector<16xf32>
    %69 = vector.shape_cast %68 : vector<16xf32> to vector<16x1xf32>
    %cst_59 = arith.constant 3.200000e+01 : f32
    %70 = vector.broadcast %cst_59 : f32 to vector<16x1xf32>
    %71 = arith.divf %69, %70 : vector<16x1xf32>
    %72 = vector.broadcast %71 : vector<16x1xf32> to vector<16x32xf32>
    %73 = arith.subf %65, %72 : vector<16x32xf32>
    %74 = arith.mulf %73, %73 : vector<16x32xf32>
    %cst_60 = arith.constant dense<0.000000e+00> : vector<16xf32>
    %75 = vector.multi_reduction <add>, %74, %cst_60 [1] : vector<16x32xf32> to vector<16xf32>
    %76 = vector.shape_cast %75 : vector<16xf32> to vector<16x1xf32>
    %cst_61 = arith.constant 3.200000e+01 : f32
    %77 = vector.broadcast %cst_61 : f32 to vector<16x1xf32>
    %78 = arith.divf %76, %77 : vector<16x1xf32>
    %79 = vector.broadcast %71 : vector<16x1xf32> to vector<16x32xf32>
    %80 = arith.subf %65, %79 : vector<16x32xf32>
    %cst_62 = arith.constant 9.99999974E-6 : f32
    %81 = vector.broadcast %cst_62 : f32 to vector<16x1xf32>
    %82 = arith.addf %78, %81 : vector<16x1xf32>
    %83 = math.rsqrt %82 : vector<16x1xf32>
    %84 = vector.broadcast %83 : vector<16x1xf32> to vector<16x32xf32>
    %85 = arith.mulf %80, %84 : vector<16x32xf32>
    %86 = vector.broadcast %66 : vector<1x32xf32> to vector<16x32xf32>
    %87 = arith.mulf %85, %86 : vector<16x32xf32>
    %88 = vector.broadcast %67 : vector<1x32xf32> to vector<16x32xf32>
    %89 = arith.addf %87, %88 : vector<16x32xf32>
    %90 = vector.shape_cast %89 : vector<16x32xf32> to vector<2x8x32xf32>
    %c0_63 = arith.constant 0 : index
    %c0_64 = arith.constant 0 : index
    %c0_65 = arith.constant 0 : index
    %91 = vector.load %arg15[%c0_63, %c0_64, %c0_65] : memref<2x8x32xf32, #tpu.memory_space<vmem>>, vector<2x8x32xf32>
    tpu.vector_store %arg15[%c0_63, %c0_64, %c0_65], %90 {strides = array<i32>} : memref<2x8x32xf32, #tpu.memory_space<vmem>>, vector<2x8x32xf32>,
    %92 = vector.shape_cast %22 : vector<16x64xf32> to vector<2x8x64xf32>
    %cst_66 = arith.constant dense<0xFF800000> : vector<2x64xf32>
    %93 = vector.multi_reduction <maximumf>, %92, %cst_66 [1] : vector<2x8x64xf32> to vector<2x64xf32>
    %c0_67 = arith.constant 0 : index
    %c0_68 = arith.constant 0 : index
    %94 = vector.load %arg5[%c0_67, %c0_68] : memref<64x32xf32, #tpu.memory_space<vmem>>, vector<64x32xf32>
    %cst_69 = arith.constant dense<0.000000e+00> : vector<2x32xf32>
    %95 = tpu.matmul %93, %94, %cst_69 {dimension_numbers = #tpu.dot_dimension_numbers<[1], [0], [0], [1], [0, 0, 1, 1], [], []>} : vector<2x64xf32>, vector<64x32xf32>, vector<2x32xf32> -> vector<2x32xf32>
    %c0_70 = arith.constant 0 : index
    %c0_71 = arith.constant 0 : index
    %96 = vector.load %arg6[%c0_70, %c0_71] : memref<1x32xf32, #tpu.memory_space<vmem>>, vector<1x32xf32>
    %97 = vector.broadcast %96 : vector<1x32xf32> to vector<2x32xf32>
    %98 = arith.addf %95, %97 : vector<2x32xf32>
    %99 = vector.shape_cast %98 : vector<2x32xf32> to vector<2x1x32xf32>
    %c0_72 = arith.constant 0 : index
    %c0_73 = arith.constant 0 : index
    %c0_74 = arith.constant 0 : index
    %100 = vector.load %arg16[%c0_72, %c0_73, %c0_74] : memref<2x1x32xf32, #tpu.memory_space<vmem>>, vector<2x1x32xf32>
    tpu.vector_store %arg16[%c0_72, %c0_73, %c0_74], %99 {strides = array<i32>} : memref<2x1x32xf32, #tpu.memory_space<vmem>>, vector<2x1x32xf32>,
    return
  }
}

module attributes {stable_mosaic.version = 11 : i64} {
  func.func @kernel(%arg0: memref<2x8x32xf32, #tpu.memory_space<vmem>>, %arg1: memref<96x128xf32, #tpu.memory_space<vmem>>, %arg2: memref<1x128xf32, #tpu.memory_space<vmem>>, %arg3: memref<2x8x32xf32, #tpu.memory_space<vmem>>) attributes {dimension_semantics = [], scalar_prefetch = 0 : i64, scratch_operands = 0 : i64, tpu.core_type = #tpu.core_type<tc>} {
    %c0 = arith.constant 0 : index
    %c0_0 = arith.constant 0 : index
    %c0_1 = arith.constant 0 : index
    %0 = vector.load %arg0[%c0, %c0_0, %c0_1] : memref<2x8x32xf32, #tpu.memory_space<vmem>>, vector<2x8x32xf32>
    %c0_2 = arith.constant 0 : index
    %c0_3 = arith.constant 0 : index
    %1 = vector.load %arg1[%c0_2, %c0_3] : memref<96x128xf32, #tpu.memory_space<vmem>>, vector<96x128xf32>
    %c0_4 = arith.constant 0 : index
    %c0_5 = arith.constant 0 : index
    %2 = vector.load %arg2[%c0_4, %c0_5] : memref<1x128xf32, #tpu.memory_space<vmem>>, vector<1x128xf32>
    %cst = arith.constant 0.000000e+00 : f32
    %3 = vector.broadcast %cst : f32 to vector<2x16xf32>
    %cst_6 = arith.constant 0.000000e+00 : f32
    %4 = vector.broadcast %cst_6 : f32 to vector<2x16xf32>
    %cst_7 = arith.constant 0.000000e+00 : f32
    %5 = vector.broadcast %cst_7 : f32 to vector<2x16xf32>
    %cst_8 = arith.constant 0.000000e+00 : f32
    %6 = vector.broadcast %cst_8 : f32 to vector<2x16xf32>
    %7 = vector.extract_strided_slice %0 {offsets = [0, 0, 0], sizes = [2, 1, 32], strides = [1, 1, 1]} : vector<2x8x32xf32> to vector<2x1x32xf32>
    %8 = vector.shape_cast %7 : vector<2x1x32xf32> to vector<2x32xf32>
    %9 = vector.extract_strided_slice %0 {offsets = [0, 7, 0], sizes = [2, 1, 32], strides = [1, 1, 1]} : vector<2x8x32xf32> to vector<2x1x32xf32>
    %10 = vector.shape_cast %9 : vector<2x1x32xf32> to vector<2x32xf32>
    %11 = tpu.concatenate %3, %4, %8, %10 in 1 : vector<2x16xf32>, vector<2x16xf32>, vector<2x32xf32>, vector<2x32xf32> -> vector<2x96xf32>
    %cst_9 = arith.constant dense<0.000000e+00> : vector<2x128xf32>
    %12 = tpu.matmul %11, %1, %cst_9 {dimension_numbers = #tpu.dot_dimension_numbers<[1], [0], [0], [1], [0, 0, 1, 1], [], []>} : vector<2x96xf32>, vector<96x128xf32>, vector<2x128xf32> -> vector<2x128xf32>
    %13 = vector.broadcast %2 : vector<1x128xf32> to vector<2x128xf32>
    %14 = arith.addf %12, %13 : vector<2x128xf32>
    %15 = vector.extract_strided_slice %14 {offsets = [0, 0], sizes = [2, 64], strides = [1, 1]} : vector<2x128xf32> to vector<2x64xf32>
    %16 = vector.extract_strided_slice %15 {offsets = [0, 0], sizes = [2, 16], strides = [1, 1]} : vector<2x64xf32> to vector<2x16xf32>
    %17 = arith.negf %16 : vector<2x16xf32>
    %18 = math.exp %17 : vector<2x16xf32>
    %cst_10 = arith.constant 1.000000e+00 : f32
    %19 = vector.broadcast %cst_10 : f32 to vector<2x16xf32>
    %20 = arith.addf %19, %18 : vector<2x16xf32>
    %21 = arith.divf %19, %20 : vector<2x16xf32>
    %22 = vector.extract_strided_slice %15 {offsets = [0, 16], sizes = [2, 16], strides = [1, 1]} : vector<2x64xf32> to vector<2x16xf32>
    %23 = arith.negf %22 : vector<2x16xf32>
    %24 = math.exp %23 : vector<2x16xf32>
    %cst_11 = arith.constant 1.000000e+00 : f32
    %25 = vector.broadcast %cst_11 : f32 to vector<2x16xf32>
    %26 = arith.addf %25, %24 : vector<2x16xf32>
    %27 = arith.divf %25, %26 : vector<2x16xf32>
    %28 = vector.extract_strided_slice %15 {offsets = [0, 32], sizes = [2, 16], strides = [1, 1]} : vector<2x64xf32> to vector<2x16xf32>
    %29 = math.tanh %28 : vector<2x16xf32>
    %30 = vector.extract_strided_slice %15 {offsets = [0, 48], sizes = [2, 16], strides = [1, 1]} : vector<2x64xf32> to vector<2x16xf32>
    %31 = arith.negf %30 : vector<2x16xf32>
    %32 = math.exp %31 : vector<2x16xf32>
    %cst_12 = arith.constant 1.000000e+00 : f32
    %33 = vector.broadcast %cst_12 : f32 to vector<2x16xf32>
    %34 = arith.addf %33, %32 : vector<2x16xf32>
    %35 = arith.divf %33, %34 : vector<2x16xf32>
    %36 = arith.mulf %27, %5 : vector<2x16xf32>
    %37 = arith.mulf %21, %29 : vector<2x16xf32>
    %38 = arith.addf %36, %37 : vector<2x16xf32>
    %39 = math.tanh %38 : vector<2x16xf32>
    %40 = arith.mulf %35, %39 : vector<2x16xf32>
    %41 = vector.extract_strided_slice %14 {offsets = [0, 64], sizes = [2, 64], strides = [1, 1]} : vector<2x128xf32> to vector<2x64xf32>
    %42 = vector.extract_strided_slice %41 {offsets = [0, 0], sizes = [2, 16], strides = [1, 1]} : vector<2x64xf32> to vector<2x16xf32>
    %43 = arith.negf %42 : vector<2x16xf32>
    %44 = math.exp %43 : vector<2x16xf32>
    %cst_13 = arith.constant 1.000000e+00 : f32
    %45 = vector.broadcast %cst_13 : f32 to vector<2x16xf32>
    %46 = arith.addf %45, %44 : vector<2x16xf32>
    %47 = arith.divf %45, %46 : vector<2x16xf32>
    %48 = vector.extract_strided_slice %41 {offsets = [0, 16], sizes = [2, 16], strides = [1, 1]} : vector<2x64xf32> to vector<2x16xf32>
    %49 = arith.negf %48 : vector<2x16xf32>
    %50 = math.exp %49 : vector<2x16xf32>
    %cst_14 = arith.constant 1.000000e+00 : f32
    %51 = vector.broadcast %cst_14 : f32 to vector<2x16xf32>
    %52 = arith.addf %51, %50 : vector<2x16xf32>
    %53 = arith.divf %51, %52 : vector<2x16xf32>
    %54 = vector.extract_strided_slice %41 {offsets = [0, 32], sizes = [2, 16], strides = [1, 1]} : vector<2x64xf32> to vector<2x16xf32>
    %55 = math.tanh %54 : vector<2x16xf32>
    %56 = vector.extract_strided_slice %41 {offsets = [0, 48], sizes = [2, 16], strides = [1, 1]} : vector<2x64xf32> to vector<2x16xf32>
    %57 = arith.negf %56 : vector<2x16xf32>
    %58 = math.exp %57 : vector<2x16xf32>
    %cst_15 = arith.constant 1.000000e+00 : f32
    %59 = vector.broadcast %cst_15 : f32 to vector<2x16xf32>
    %60 = arith.addf %59, %58 : vector<2x16xf32>
    %61 = arith.divf %59, %60 : vector<2x16xf32>
    %62 = arith.mulf %53, %6 : vector<2x16xf32>
    %63 = arith.mulf %47, %55 : vector<2x16xf32>
    %64 = arith.addf %62, %63 : vector<2x16xf32>
    %65 = math.tanh %64 : vector<2x16xf32>
    %66 = arith.mulf %61, %65 : vector<2x16xf32>
    %67 = vector.shape_cast %40 : vector<2x16xf32> to vector<2x1x16xf32>
    %c0_16 = arith.constant 0 : index
    %c0_17 = arith.constant 0 : index
    %c0_18 = arith.constant 0 : index
    %68 = vector.load %arg3[%c0_16, %c0_17, %c0_18] : memref<2x8x32xf32, #tpu.memory_space<vmem>>, vector<2x1x16xf32>
    tpu.vector_store %arg3[%c0_16, %c0_17, %c0_18], %67 {strides = array<i32>} : memref<2x8x32xf32, #tpu.memory_space<vmem>>, vector<2x1x16xf32>,
    %69 = vector.shape_cast %66 : vector<2x16xf32> to vector<2x1x16xf32>
    %c0_19 = arith.constant 0 : index
    %c7 = arith.constant 7 : index
    %c16 = arith.constant 16 : index
    %70 = vector.load %arg3[%c0_19, %c7, %c16] : memref<2x8x32xf32, #tpu.memory_space<vmem>>, vector<2x1x16xf32>
    tpu.vector_store %arg3[%c0_19, %c7, %c16], %69 {strides = array<i32>} : memref<2x8x32xf32, #tpu.memory_space<vmem>>, vector<2x1x16xf32>,
    %71 = vector.extract_strided_slice %0 {offsets = [0, 1, 0], sizes = [2, 1, 32], strides = [1, 1, 1]} : vector<2x8x32xf32> to vector<2x1x32xf32>
    %72 = vector.shape_cast %71 : vector<2x1x32xf32> to vector<2x32xf32>
    %73 = vector.extract_strided_slice %0 {offsets = [0, 6, 0], sizes = [2, 1, 32], strides = [1, 1, 1]} : vector<2x8x32xf32> to vector<2x1x32xf32>
    %74 = vector.shape_cast %73 : vector<2x1x32xf32> to vector<2x32xf32>
    %75 = tpu.concatenate %40, %66, %72, %74 in 1 : vector<2x16xf32>, vector<2x16xf32>, vector<2x32xf32>, vector<2x32xf32> -> vector<2x96xf32>
    %cst_20 = arith.constant dense<0.000000e+00> : vector<2x128xf32>
    %76 = tpu.matmul %75, %1, %cst_20 {dimension_numbers = #tpu.dot_dimension_numbers<[1], [0], [0], [1], [0, 0, 1, 1], [], []>} : vector<2x96xf32>, vector<96x128xf32>, vector<2x128xf32> -> vector<2x128xf32>
    %77 = vector.broadcast %2 : vector<1x128xf32> to vector<2x128xf32>
    %78 = arith.addf %76, %77 : vector<2x128xf32>
    %79 = vector.extract_strided_slice %78 {offsets = [0, 0], sizes = [2, 64], strides = [1, 1]} : vector<2x128xf32> to vector<2x64xf32>
    %80 = vector.extract_strided_slice %79 {offsets = [0, 0], sizes = [2, 16], strides = [1, 1]} : vector<2x64xf32> to vector<2x16xf32>
    %81 = arith.negf %80 : vector<2x16xf32>
    %82 = math.exp %81 : vector<2x16xf32>
    %cst_21 = arith.constant 1.000000e+00 : f32
    %83 = vector.broadcast %cst_21 : f32 to vector<2x16xf32>
    %84 = arith.addf %83, %82 : vector<2x16xf32>
    %85 = arith.divf %83, %84 : vector<2x16xf32>
    %86 = vector.extract_strided_slice %79 {offsets = [0, 16], sizes = [2, 16], strides = [1, 1]} : vector<2x64xf32> to vector<2x16xf32>
    %87 = arith.negf %86 : vector<2x16xf32>
    %88 = math.exp %87 : vector<2x16xf32>
    %cst_22 = arith.constant 1.000000e+00 : f32
    %89 = vector.broadcast %cst_22 : f32 to vector<2x16xf32>
    %90 = arith.addf %89, %88 : vector<2x16xf32>
    %91 = arith.divf %89, %90 : vector<2x16xf32>
    %92 = vector.extract_strided_slice %79 {offsets = [0, 32], sizes = [2, 16], strides = [1, 1]} : vector<2x64xf32> to vector<2x16xf32>
    %93 = math.tanh %92 : vector<2x16xf32>
    %94 = vector.extract_strided_slice %79 {offsets = [0, 48], sizes = [2, 16], strides = [1, 1]} : vector<2x64xf32> to vector<2x16xf32>
    %95 = arith.negf %94 : vector<2x16xf32>
    %96 = math.exp %95 : vector<2x16xf32>
    %cst_23 = arith.constant 1.000000e+00 : f32
    %97 = vector.broadcast %cst_23 : f32 to vector<2x16xf32>
    %98 = arith.addf %97, %96 : vector<2x16xf32>
    %99 = arith.divf %97, %98 : vector<2x16xf32>
    %100 = arith.mulf %91, %38 : vector<2x16xf32>
    %101 = arith.mulf %85, %93 : vector<2x16xf32>
    %102 = arith.addf %100, %101 : vector<2x16xf32>
    %103 = math.tanh %102 : vector<2x16xf32>
    %104 = arith.mulf %99, %103 : vector<2x16xf32>
    %105 = vector.extract_strided_slice %78 {offsets = [0, 64], sizes = [2, 64], strides = [1, 1]} : vector<2x128xf32> to vector<2x64xf32>
    %106 = vector.extract_strided_slice %105 {offsets = [0, 0], sizes = [2, 16], strides = [1, 1]} : vector<2x64xf32> to vector<2x16xf32>
    %107 = arith.negf %106 : vector<2x16xf32>
    %108 = math.exp %107 : vector<2x16xf32>
    %cst_24 = arith.constant 1.000000e+00 : f32
    %109 = vector.broadcast %cst_24 : f32 to vector<2x16xf32>
    %110 = arith.addf %109, %108 : vector<2x16xf32>
    %111 = arith.divf %109, %110 : vector<2x16xf32>
    %112 = vector.extract_strided_slice %105 {offsets = [0, 16], sizes = [2, 16], strides = [1, 1]} : vector<2x64xf32> to vector<2x16xf32>
    %113 = arith.negf %112 : vector<2x16xf32>
    %114 = math.exp %113 : vector<2x16xf32>
    %cst_25 = arith.constant 1.000000e+00 : f32
    %115 = vector.broadcast %cst_25 : f32 to vector<2x16xf32>
    %116 = arith.addf %115, %114 : vector<2x16xf32>
    %117 = arith.divf %115, %116 : vector<2x16xf32>
    %118 = vector.extract_strided_slice %105 {offsets = [0, 32], sizes = [2, 16], strides = [1, 1]} : vector<2x64xf32> to vector<2x16xf32>
    %119 = math.tanh %118 : vector<2x16xf32>
    %120 = vector.extract_strided_slice %105 {offsets = [0, 48], sizes = [2, 16], strides = [1, 1]} : vector<2x64xf32> to vector<2x16xf32>
    %121 = arith.negf %120 : vector<2x16xf32>
    %122 = math.exp %121 : vector<2x16xf32>
    %cst_26 = arith.constant 1.000000e+00 : f32
    %123 = vector.broadcast %cst_26 : f32 to vector<2x16xf32>
    %124 = arith.addf %123, %122 : vector<2x16xf32>
    %125 = arith.divf %123, %124 : vector<2x16xf32>
    %126 = arith.mulf %117, %64 : vector<2x16xf32>
    %127 = arith.mulf %111, %119 : vector<2x16xf32>
    %128 = arith.addf %126, %127 : vector<2x16xf32>
    %129 = math.tanh %128 : vector<2x16xf32>
    %130 = arith.mulf %125, %129 : vector<2x16xf32>
    %131 = vector.shape_cast %104 : vector<2x16xf32> to vector<2x1x16xf32>
    %c0_27 = arith.constant 0 : index
    %c1 = arith.constant 1 : index
    %c0_28 = arith.constant 0 : index
    %132 = vector.load %arg3[%c0_27, %c1, %c0_28] : memref<2x8x32xf32, #tpu.memory_space<vmem>>, vector<2x1x16xf32>
    tpu.vector_store %arg3[%c0_27, %c1, %c0_28], %131 {strides = array<i32>} : memref<2x8x32xf32, #tpu.memory_space<vmem>>, vector<2x1x16xf32>,
    %133 = vector.shape_cast %130 : vector<2x16xf32> to vector<2x1x16xf32>
    %c0_29 = arith.constant 0 : index
    %c6 = arith.constant 6 : index
    %c16_30 = arith.constant 16 : index
    %134 = vector.load %arg3[%c0_29, %c6, %c16_30] : memref<2x8x32xf32, #tpu.memory_space<vmem>>, vector<2x1x16xf32>
    tpu.vector_store %arg3[%c0_29, %c6, %c16_30], %133 {strides = array<i32>} : memref<2x8x32xf32, #tpu.memory_space<vmem>>, vector<2x1x16xf32>,
    %135 = vector.extract_strided_slice %0 {offsets = [0, 2, 0], sizes = [2, 1, 32], strides = [1, 1, 1]} : vector<2x8x32xf32> to vector<2x1x32xf32>
    %136 = vector.shape_cast %135 : vector<2x1x32xf32> to vector<2x32xf32>
    %137 = vector.extract_strided_slice %0 {offsets = [0, 5, 0], sizes = [2, 1, 32], strides = [1, 1, 1]} : vector<2x8x32xf32> to vector<2x1x32xf32>
    %138 = vector.shape_cast %137 : vector<2x1x32xf32> to vector<2x32xf32>
    %139 = tpu.concatenate %104, %130, %136, %138 in 1 : vector<2x16xf32>, vector<2x16xf32>, vector<2x32xf32>, vector<2x32xf32> -> vector<2x96xf32>
    %cst_31 = arith.constant dense<0.000000e+00> : vector<2x128xf32>
    %140 = tpu.matmul %139, %1, %cst_31 {dimension_numbers = #tpu.dot_dimension_numbers<[1], [0], [0], [1], [0, 0, 1, 1], [], []>} : vector<2x96xf32>, vector<96x128xf32>, vector<2x128xf32> -> vector<2x128xf32>
    %141 = vector.broadcast %2 : vector<1x128xf32> to vector<2x128xf32>
    %142 = arith.addf %140, %141 : vector<2x128xf32>
    %143 = vector.extract_strided_slice %142 {offsets = [0, 0], sizes = [2, 64], strides = [1, 1]} : vector<2x128xf32> to vector<2x64xf32>
    %144 = vector.extract_strided_slice %143 {offsets = [0, 0], sizes = [2, 16], strides = [1, 1]} : vector<2x64xf32> to vector<2x16xf32>
    %145 = arith.negf %144 : vector<2x16xf32>
    %146 = math.exp %145 : vector<2x16xf32>
    %cst_32 = arith.constant 1.000000e+00 : f32
    %147 = vector.broadcast %cst_32 : f32 to vector<2x16xf32>
    %148 = arith.addf %147, %146 : vector<2x16xf32>
    %149 = arith.divf %147, %148 : vector<2x16xf32>
    %150 = vector.extract_strided_slice %143 {offsets = [0, 16], sizes = [2, 16], strides = [1, 1]} : vector<2x64xf32> to vector<2x16xf32>
    %151 = arith.negf %150 : vector<2x16xf32>
    %152 = math.exp %151 : vector<2x16xf32>
    %cst_33 = arith.constant 1.000000e+00 : f32
    %153 = vector.broadcast %cst_33 : f32 to vector<2x16xf32>
    %154 = arith.addf %153, %152 : vector<2x16xf32>
    %155 = arith.divf %153, %154 : vector<2x16xf32>
    %156 = vector.extract_strided_slice %143 {offsets = [0, 32], sizes = [2, 16], strides = [1, 1]} : vector<2x64xf32> to vector<2x16xf32>
    %157 = math.tanh %156 : vector<2x16xf32>
    %158 = vector.extract_strided_slice %143 {offsets = [0, 48], sizes = [2, 16], strides = [1, 1]} : vector<2x64xf32> to vector<2x16xf32>
    %159 = arith.negf %158 : vector<2x16xf32>
    %160 = math.exp %159 : vector<2x16xf32>
    %cst_34 = arith.constant 1.000000e+00 : f32
    %161 = vector.broadcast %cst_34 : f32 to vector<2x16xf32>
    %162 = arith.addf %161, %160 : vector<2x16xf32>
    %163 = arith.divf %161, %162 : vector<2x16xf32>
    %164 = arith.mulf %155, %102 : vector<2x16xf32>
    %165 = arith.mulf %149, %157 : vector<2x16xf32>
    %166 = arith.addf %164, %165 : vector<2x16xf32>
    %167 = math.tanh %166 : vector<2x16xf32>
    %168 = arith.mulf %163, %167 : vector<2x16xf32>
    %169 = vector.extract_strided_slice %142 {offsets = [0, 64], sizes = [2, 64], strides = [1, 1]} : vector<2x128xf32> to vector<2x64xf32>
    %170 = vector.extract_strided_slice %169 {offsets = [0, 0], sizes = [2, 16], strides = [1, 1]} : vector<2x64xf32> to vector<2x16xf32>
    %171 = arith.negf %170 : vector<2x16xf32>
    %172 = math.exp %171 : vector<2x16xf32>
    %cst_35 = arith.constant 1.000000e+00 : f32
    %173 = vector.broadcast %cst_35 : f32 to vector<2x16xf32>
    %174 = arith.addf %173, %172 : vector<2x16xf32>
    %175 = arith.divf %173, %174 : vector<2x16xf32>
    %176 = vector.extract_strided_slice %169 {offsets = [0, 16], sizes = [2, 16], strides = [1, 1]} : vector<2x64xf32> to vector<2x16xf32>
    %177 = arith.negf %176 : vector<2x16xf32>
    %178 = math.exp %177 : vector<2x16xf32>
    %cst_36 = arith.constant 1.000000e+00 : f32
    %179 = vector.broadcast %cst_36 : f32 to vector<2x16xf32>
    %180 = arith.addf %179, %178 : vector<2x16xf32>
    %181 = arith.divf %179, %180 : vector<2x16xf32>
    %182 = vector.extract_strided_slice %169 {offsets = [0, 32], sizes = [2, 16], strides = [1, 1]} : vector<2x64xf32> to vector<2x16xf32>
    %183 = math.tanh %182 : vector<2x16xf32>
    %184 = vector.extract_strided_slice %169 {offsets = [0, 48], sizes = [2, 16], strides = [1, 1]} : vector<2x64xf32> to vector<2x16xf32>
    %185 = arith.negf %184 : vector<2x16xf32>
    %186 = math.exp %185 : vector<2x16xf32>
    %cst_37 = arith.constant 1.000000e+00 : f32
    %187 = vector.broadcast %cst_37 : f32 to vector<2x16xf32>
    %188 = arith.addf %187, %186 : vector<2x16xf32>
    %189 = arith.divf %187, %188 : vector<2x16xf32>
    %190 = arith.mulf %181, %128 : vector<2x16xf32>
    %191 = arith.mulf %175, %183 : vector<2x16xf32>
    %192 = arith.addf %190, %191 : vector<2x16xf32>
    %193 = math.tanh %192 : vector<2x16xf32>
    %194 = arith.mulf %189, %193 : vector<2x16xf32>
    %195 = vector.shape_cast %168 : vector<2x16xf32> to vector<2x1x16xf32>
    %c0_38 = arith.constant 0 : index
    %c2 = arith.constant 2 : index
    %c0_39 = arith.constant 0 : index
    %196 = vector.load %arg3[%c0_38, %c2, %c0_39] : memref<2x8x32xf32, #tpu.memory_space<vmem>>, vector<2x1x16xf32>
    tpu.vector_store %arg3[%c0_38, %c2, %c0_39], %195 {strides = array<i32>} : memref<2x8x32xf32, #tpu.memory_space<vmem>>, vector<2x1x16xf32>,
    %197 = vector.shape_cast %194 : vector<2x16xf32> to vector<2x1x16xf32>
    %c0_40 = arith.constant 0 : index
    %c5 = arith.constant 5 : index
    %c16_41 = arith.constant 16 : index
    %198 = vector.load %arg3[%c0_40, %c5, %c16_41] : memref<2x8x32xf32, #tpu.memory_space<vmem>>, vector<2x1x16xf32>
    tpu.vector_store %arg3[%c0_40, %c5, %c16_41], %197 {strides = array<i32>} : memref<2x8x32xf32, #tpu.memory_space<vmem>>, vector<2x1x16xf32>,
    %199 = vector.extract_strided_slice %0 {offsets = [0, 3, 0], sizes = [2, 1, 32], strides = [1, 1, 1]} : vector<2x8x32xf32> to vector<2x1x32xf32>
    %200 = vector.shape_cast %199 : vector<2x1x32xf32> to vector<2x32xf32>
    %201 = vector.extract_strided_slice %0 {offsets = [0, 4, 0], sizes = [2, 1, 32], strides = [1, 1, 1]} : vector<2x8x32xf32> to vector<2x1x32xf32>
    %202 = vector.shape_cast %201 : vector<2x1x32xf32> to vector<2x32xf32>
    %203 = tpu.concatenate %168, %194, %200, %202 in 1 : vector<2x16xf32>, vector<2x16xf32>, vector<2x32xf32>, vector<2x32xf32> -> vector<2x96xf32>
    %cst_42 = arith.constant dense<0.000000e+00> : vector<2x128xf32>
    %204 = tpu.matmul %203, %1, %cst_42 {dimension_numbers = #tpu.dot_dimension_numbers<[1], [0], [0], [1], [0, 0, 1, 1], [], []>} : vector<2x96xf32>, vector<96x128xf32>, vector<2x128xf32> -> vector<2x128xf32>
    %205 = vector.broadcast %2 : vector<1x128xf32> to vector<2x128xf32>
    %206 = arith.addf %204, %205 : vector<2x128xf32>
    %207 = vector.extract_strided_slice %206 {offsets = [0, 0], sizes = [2, 64], strides = [1, 1]} : vector<2x128xf32> to vector<2x64xf32>
    %208 = vector.extract_strided_slice %207 {offsets = [0, 0], sizes = [2, 16], strides = [1, 1]} : vector<2x64xf32> to vector<2x16xf32>
    %209 = arith.negf %208 : vector<2x16xf32>
    %210 = math.exp %209 : vector<2x16xf32>
    %cst_43 = arith.constant 1.000000e+00 : f32
    %211 = vector.broadcast %cst_43 : f32 to vector<2x16xf32>
    %212 = arith.addf %211, %210 : vector<2x16xf32>
    %213 = arith.divf %211, %212 : vector<2x16xf32>
    %214 = vector.extract_strided_slice %207 {offsets = [0, 16], sizes = [2, 16], strides = [1, 1]} : vector<2x64xf32> to vector<2x16xf32>
    %215 = arith.negf %214 : vector<2x16xf32>
    %216 = math.exp %215 : vector<2x16xf32>
    %cst_44 = arith.constant 1.000000e+00 : f32
    %217 = vector.broadcast %cst_44 : f32 to vector<2x16xf32>
    %218 = arith.addf %217, %216 : vector<2x16xf32>
    %219 = arith.divf %217, %218 : vector<2x16xf32>
    %220 = vector.extract_strided_slice %207 {offsets = [0, 32], sizes = [2, 16], strides = [1, 1]} : vector<2x64xf32> to vector<2x16xf32>
    %221 = math.tanh %220 : vector<2x16xf32>
    %222 = vector.extract_strided_slice %207 {offsets = [0, 48], sizes = [2, 16], strides = [1, 1]} : vector<2x64xf32> to vector<2x16xf32>
    %223 = arith.negf %222 : vector<2x16xf32>
    %224 = math.exp %223 : vector<2x16xf32>
    %cst_45 = arith.constant 1.000000e+00 : f32
    %225 = vector.broadcast %cst_45 : f32 to vector<2x16xf32>
    %226 = arith.addf %225, %224 : vector<2x16xf32>
    %227 = arith.divf %225, %226 : vector<2x16xf32>
    %228 = arith.mulf %219, %166 : vector<2x16xf32>
    %229 = arith.mulf %213, %221 : vector<2x16xf32>
    %230 = arith.addf %228, %229 : vector<2x16xf32>
    %231 = math.tanh %230 : vector<2x16xf32>
    %232 = arith.mulf %227, %231 : vector<2x16xf32>
    %233 = vector.extract_strided_slice %206 {offsets = [0, 64], sizes = [2, 64], strides = [1, 1]} : vector<2x128xf32> to vector<2x64xf32>
    %234 = vector.extract_strided_slice %233 {offsets = [0, 0], sizes = [2, 16], strides = [1, 1]} : vector<2x64xf32> to vector<2x16xf32>
    %235 = arith.negf %234 : vector<2x16xf32>
    %236 = math.exp %235 : vector<2x16xf32>
    %cst_46 = arith.constant 1.000000e+00 : f32
    %237 = vector.broadcast %cst_46 : f32 to vector<2x16xf32>
    %238 = arith.addf %237, %236 : vector<2x16xf32>
    %239 = arith.divf %237, %238 : vector<2x16xf32>
    %240 = vector.extract_strided_slice %233 {offsets = [0, 16], sizes = [2, 16], strides = [1, 1]} : vector<2x64xf32> to vector<2x16xf32>
    %241 = arith.negf %240 : vector<2x16xf32>
    %242 = math.exp %241 : vector<2x16xf32>
    %cst_47 = arith.constant 1.000000e+00 : f32
    %243 = vector.broadcast %cst_47 : f32 to vector<2x16xf32>
    %244 = arith.addf %243, %242 : vector<2x16xf32>
    %245 = arith.divf %243, %244 : vector<2x16xf32>
    %246 = vector.extract_strided_slice %233 {offsets = [0, 32], sizes = [2, 16], strides = [1, 1]} : vector<2x64xf32> to vector<2x16xf32>
    %247 = math.tanh %246 : vector<2x16xf32>
    %248 = vector.extract_strided_slice %233 {offsets = [0, 48], sizes = [2, 16], strides = [1, 1]} : vector<2x64xf32> to vector<2x16xf32>
    %249 = arith.negf %248 : vector<2x16xf32>
    %250 = math.exp %249 : vector<2x16xf32>
    %cst_48 = arith.constant 1.000000e+00 : f32
    %251 = vector.broadcast %cst_48 : f32 to vector<2x16xf32>
    %252 = arith.addf %251, %250 : vector<2x16xf32>
    %253 = arith.divf %251, %252 : vector<2x16xf32>
    %254 = arith.mulf %245, %192 : vector<2x16xf32>
    %255 = arith.mulf %239, %247 : vector<2x16xf32>
    %256 = arith.addf %254, %255 : vector<2x16xf32>
    %257 = math.tanh %256 : vector<2x16xf32>
    %258 = arith.mulf %253, %257 : vector<2x16xf32>
    %259 = vector.shape_cast %232 : vector<2x16xf32> to vector<2x1x16xf32>
    %c0_49 = arith.constant 0 : index
    %c3 = arith.constant 3 : index
    %c0_50 = arith.constant 0 : index
    %260 = vector.load %arg3[%c0_49, %c3, %c0_50] : memref<2x8x32xf32, #tpu.memory_space<vmem>>, vector<2x1x16xf32>
    tpu.vector_store %arg3[%c0_49, %c3, %c0_50], %259 {strides = array<i32>} : memref<2x8x32xf32, #tpu.memory_space<vmem>>, vector<2x1x16xf32>,
    %261 = vector.shape_cast %258 : vector<2x16xf32> to vector<2x1x16xf32>
    %c0_51 = arith.constant 0 : index
    %c4 = arith.constant 4 : index
    %c16_52 = arith.constant 16 : index
    %262 = vector.load %arg3[%c0_51, %c4, %c16_52] : memref<2x8x32xf32, #tpu.memory_space<vmem>>, vector<2x1x16xf32>
    tpu.vector_store %arg3[%c0_51, %c4, %c16_52], %261 {strides = array<i32>} : memref<2x8x32xf32, #tpu.memory_space<vmem>>, vector<2x1x16xf32>,
    %263 = vector.extract_strided_slice %0 {offsets = [0, 4, 0], sizes = [2, 1, 32], strides = [1, 1, 1]} : vector<2x8x32xf32> to vector<2x1x32xf32>
    %264 = vector.shape_cast %263 : vector<2x1x32xf32> to vector<2x32xf32>
    %265 = vector.extract_strided_slice %0 {offsets = [0, 3, 0], sizes = [2, 1, 32], strides = [1, 1, 1]} : vector<2x8x32xf32> to vector<2x1x32xf32>
    %266 = vector.shape_cast %265 : vector<2x1x32xf32> to vector<2x32xf32>
    %267 = tpu.concatenate %232, %258, %264, %266 in 1 : vector<2x16xf32>, vector<2x16xf32>, vector<2x32xf32>, vector<2x32xf32> -> vector<2x96xf32>
    %cst_53 = arith.constant dense<0.000000e+00> : vector<2x128xf32>
    %268 = tpu.matmul %267, %1, %cst_53 {dimension_numbers = #tpu.dot_dimension_numbers<[1], [0], [0], [1], [0, 0, 1, 1], [], []>} : vector<2x96xf32>, vector<96x128xf32>, vector<2x128xf32> -> vector<2x128xf32>
    %269 = vector.broadcast %2 : vector<1x128xf32> to vector<2x128xf32>
    %270 = arith.addf %268, %269 : vector<2x128xf32>
    %271 = vector.extract_strided_slice %270 {offsets = [0, 0], sizes = [2, 64], strides = [1, 1]} : vector<2x128xf32> to vector<2x64xf32>
    %272 = vector.extract_strided_slice %271 {offsets = [0, 0], sizes = [2, 16], strides = [1, 1]} : vector<2x64xf32> to vector<2x16xf32>
    %273 = arith.negf %272 : vector<2x16xf32>
    %274 = math.exp %273 : vector<2x16xf32>
    %cst_54 = arith.constant 1.000000e+00 : f32
    %275 = vector.broadcast %cst_54 : f32 to vector<2x16xf32>
    %276 = arith.addf %275, %274 : vector<2x16xf32>
    %277 = arith.divf %275, %276 : vector<2x16xf32>
    %278 = vector.extract_strided_slice %271 {offsets = [0, 16], sizes = [2, 16], strides = [1, 1]} : vector<2x64xf32> to vector<2x16xf32>
    %279 = arith.negf %278 : vector<2x16xf32>
    %280 = math.exp %279 : vector<2x16xf32>
    %cst_55 = arith.constant 1.000000e+00 : f32
    %281 = vector.broadcast %cst_55 : f32 to vector<2x16xf32>
    %282 = arith.addf %281, %280 : vector<2x16xf32>
    %283 = arith.divf %281, %282 : vector<2x16xf32>
    %284 = vector.extract_strided_slice %271 {offsets = [0, 32], sizes = [2, 16], strides = [1, 1]} : vector<2x64xf32> to vector<2x16xf32>
    %285 = math.tanh %284 : vector<2x16xf32>
    %286 = vector.extract_strided_slice %271 {offsets = [0, 48], sizes = [2, 16], strides = [1, 1]} : vector<2x64xf32> to vector<2x16xf32>
    %287 = arith.negf %286 : vector<2x16xf32>
    %288 = math.exp %287 : vector<2x16xf32>
    %cst_56 = arith.constant 1.000000e+00 : f32
    %289 = vector.broadcast %cst_56 : f32 to vector<2x16xf32>
    %290 = arith.addf %289, %288 : vector<2x16xf32>
    %291 = arith.divf %289, %290 : vector<2x16xf32>
    %292 = arith.mulf %283, %230 : vector<2x16xf32>
    %293 = arith.mulf %277, %285 : vector<2x16xf32>
    %294 = arith.addf %292, %293 : vector<2x16xf32>
    %295 = math.tanh %294 : vector<2x16xf32>
    %296 = arith.mulf %291, %295 : vector<2x16xf32>
    %297 = vector.extract_strided_slice %270 {offsets = [0, 64], sizes = [2, 64], strides = [1, 1]} : vector<2x128xf32> to vector<2x64xf32>
    %298 = vector.extract_strided_slice %297 {offsets = [0, 0], sizes = [2, 16], strides = [1, 1]} : vector<2x64xf32> to vector<2x16xf32>
    %299 = arith.negf %298 : vector<2x16xf32>
    %300 = math.exp %299 : vector<2x16xf32>
    %cst_57 = arith.constant 1.000000e+00 : f32
    %301 = vector.broadcast %cst_57 : f32 to vector<2x16xf32>
    %302 = arith.addf %301, %300 : vector<2x16xf32>
    %303 = arith.divf %301, %302 : vector<2x16xf32>
    %304 = vector.extract_strided_slice %297 {offsets = [0, 16], sizes = [2, 16], strides = [1, 1]} : vector<2x64xf32> to vector<2x16xf32>
    %305 = arith.negf %304 : vector<2x16xf32>
    %306 = math.exp %305 : vector<2x16xf32>
    %cst_58 = arith.constant 1.000000e+00 : f32
    %307 = vector.broadcast %cst_58 : f32 to vector<2x16xf32>
    %308 = arith.addf %307, %306 : vector<2x16xf32>
    %309 = arith.divf %307, %308 : vector<2x16xf32>
    %310 = vector.extract_strided_slice %297 {offsets = [0, 32], sizes = [2, 16], strides = [1, 1]} : vector<2x64xf32> to vector<2x16xf32>
    %311 = math.tanh %310 : vector<2x16xf32>
    %312 = vector.extract_strided_slice %297 {offsets = [0, 48], sizes = [2, 16], strides = [1, 1]} : vector<2x64xf32> to vector<2x16xf32>
    %313 = arith.negf %312 : vector<2x16xf32>
    %314 = math.exp %313 : vector<2x16xf32>
    %cst_59 = arith.constant 1.000000e+00 : f32
    %315 = vector.broadcast %cst_59 : f32 to vector<2x16xf32>
    %316 = arith.addf %315, %314 : vector<2x16xf32>
    %317 = arith.divf %315, %316 : vector<2x16xf32>
    %318 = arith.mulf %309, %256 : vector<2x16xf32>
    %319 = arith.mulf %303, %311 : vector<2x16xf32>
    %320 = arith.addf %318, %319 : vector<2x16xf32>
    %321 = math.tanh %320 : vector<2x16xf32>
    %322 = arith.mulf %317, %321 : vector<2x16xf32>
    %323 = vector.shape_cast %296 : vector<2x16xf32> to vector<2x1x16xf32>
    %c0_60 = arith.constant 0 : index
    %c4_61 = arith.constant 4 : index
    %c0_62 = arith.constant 0 : index
    %324 = vector.load %arg3[%c0_60, %c4_61, %c0_62] : memref<2x8x32xf32, #tpu.memory_space<vmem>>, vector<2x1x16xf32>
    tpu.vector_store %arg3[%c0_60, %c4_61, %c0_62], %323 {strides = array<i32>} : memref<2x8x32xf32, #tpu.memory_space<vmem>>, vector<2x1x16xf32>,
    %325 = vector.shape_cast %322 : vector<2x16xf32> to vector<2x1x16xf32>
    %c0_63 = arith.constant 0 : index
    %c3_64 = arith.constant 3 : index
    %c16_65 = arith.constant 16 : index
    %326 = vector.load %arg3[%c0_63, %c3_64, %c16_65] : memref<2x8x32xf32, #tpu.memory_space<vmem>>, vector<2x1x16xf32>
    tpu.vector_store %arg3[%c0_63, %c3_64, %c16_65], %325 {strides = array<i32>} : memref<2x8x32xf32, #tpu.memory_space<vmem>>, vector<2x1x16xf32>,
    %327 = vector.extract_strided_slice %0 {offsets = [0, 5, 0], sizes = [2, 1, 32], strides = [1, 1, 1]} : vector<2x8x32xf32> to vector<2x1x32xf32>
    %328 = vector.shape_cast %327 : vector<2x1x32xf32> to vector<2x32xf32>
    %329 = vector.extract_strided_slice %0 {offsets = [0, 2, 0], sizes = [2, 1, 32], strides = [1, 1, 1]} : vector<2x8x32xf32> to vector<2x1x32xf32>
    %330 = vector.shape_cast %329 : vector<2x1x32xf32> to vector<2x32xf32>
    %331 = tpu.concatenate %296, %322, %328, %330 in 1 : vector<2x16xf32>, vector<2x16xf32>, vector<2x32xf32>, vector<2x32xf32> -> vector<2x96xf32>
    %cst_66 = arith.constant dense<0.000000e+00> : vector<2x128xf32>
    %332 = tpu.matmul %331, %1, %cst_66 {dimension_numbers = #tpu.dot_dimension_numbers<[1], [0], [0], [1], [0, 0, 1, 1], [], []>} : vector<2x96xf32>, vector<96x128xf32>, vector<2x128xf32> -> vector<2x128xf32>
    %333 = vector.broadcast %2 : vector<1x128xf32> to vector<2x128xf32>
    %334 = arith.addf %332, %333 : vector<2x128xf32>
    %335 = vector.extract_strided_slice %334 {offsets = [0, 0], sizes = [2, 64], strides = [1, 1]} : vector<2x128xf32> to vector<2x64xf32>
    %336 = vector.extract_strided_slice %335 {offsets = [0, 0], sizes = [2, 16], strides = [1, 1]} : vector<2x64xf32> to vector<2x16xf32>
    %337 = arith.negf %336 : vector<2x16xf32>
    %338 = math.exp %337 : vector<2x16xf32>
    %cst_67 = arith.constant 1.000000e+00 : f32
    %339 = vector.broadcast %cst_67 : f32 to vector<2x16xf32>
    %340 = arith.addf %339, %338 : vector<2x16xf32>
    %341 = arith.divf %339, %340 : vector<2x16xf32>
    %342 = vector.extract_strided_slice %335 {offsets = [0, 16], sizes = [2, 16], strides = [1, 1]} : vector<2x64xf32> to vector<2x16xf32>
    %343 = arith.negf %342 : vector<2x16xf32>
    %344 = math.exp %343 : vector<2x16xf32>
    %cst_68 = arith.constant 1.000000e+00 : f32
    %345 = vector.broadcast %cst_68 : f32 to vector<2x16xf32>
    %346 = arith.addf %345, %344 : vector<2x16xf32>
    %347 = arith.divf %345, %346 : vector<2x16xf32>
    %348 = vector.extract_strided_slice %335 {offsets = [0, 32], sizes = [2, 16], strides = [1, 1]} : vector<2x64xf32> to vector<2x16xf32>
    %349 = math.tanh %348 : vector<2x16xf32>
    %350 = vector.extract_strided_slice %335 {offsets = [0, 48], sizes = [2, 16], strides = [1, 1]} : vector<2x64xf32> to vector<2x16xf32>
    %351 = arith.negf %350 : vector<2x16xf32>
    %352 = math.exp %351 : vector<2x16xf32>
    %cst_69 = arith.constant 1.000000e+00 : f32
    %353 = vector.broadcast %cst_69 : f32 to vector<2x16xf32>
    %354 = arith.addf %353, %352 : vector<2x16xf32>
    %355 = arith.divf %353, %354 : vector<2x16xf32>
    %356 = arith.mulf %347, %294 : vector<2x16xf32>
    %357 = arith.mulf %341, %349 : vector<2x16xf32>
    %358 = arith.addf %356, %357 : vector<2x16xf32>
    %359 = math.tanh %358 : vector<2x16xf32>
    %360 = arith.mulf %355, %359 : vector<2x16xf32>
    %361 = vector.extract_strided_slice %334 {offsets = [0, 64], sizes = [2, 64], strides = [1, 1]} : vector<2x128xf32> to vector<2x64xf32>
    %362 = vector.extract_strided_slice %361 {offsets = [0, 0], sizes = [2, 16], strides = [1, 1]} : vector<2x64xf32> to vector<2x16xf32>
    %363 = arith.negf %362 : vector<2x16xf32>
    %364 = math.exp %363 : vector<2x16xf32>
    %cst_70 = arith.constant 1.000000e+00 : f32
    %365 = vector.broadcast %cst_70 : f32 to vector<2x16xf32>
    %366 = arith.addf %365, %364 : vector<2x16xf32>
    %367 = arith.divf %365, %366 : vector<2x16xf32>
    %368 = vector.extract_strided_slice %361 {offsets = [0, 16], sizes = [2, 16], strides = [1, 1]} : vector<2x64xf32> to vector<2x16xf32>
    %369 = arith.negf %368 : vector<2x16xf32>
    %370 = math.exp %369 : vector<2x16xf32>
    %cst_71 = arith.constant 1.000000e+00 : f32
    %371 = vector.broadcast %cst_71 : f32 to vector<2x16xf32>
    %372 = arith.addf %371, %370 : vector<2x16xf32>
    %373 = arith.divf %371, %372 : vector<2x16xf32>
    %374 = vector.extract_strided_slice %361 {offsets = [0, 32], sizes = [2, 16], strides = [1, 1]} : vector<2x64xf32> to vector<2x16xf32>
    %375 = math.tanh %374 : vector<2x16xf32>
    %376 = vector.extract_strided_slice %361 {offsets = [0, 48], sizes = [2, 16], strides = [1, 1]} : vector<2x64xf32> to vector<2x16xf32>
    %377 = arith.negf %376 : vector<2x16xf32>
    %378 = math.exp %377 : vector<2x16xf32>
    %cst_72 = arith.constant 1.000000e+00 : f32
    %379 = vector.broadcast %cst_72 : f32 to vector<2x16xf32>
    %380 = arith.addf %379, %378 : vector<2x16xf32>
    %381 = arith.divf %379, %380 : vector<2x16xf32>
    %382 = arith.mulf %373, %320 : vector<2x16xf32>
    %383 = arith.mulf %367, %375 : vector<2x16xf32>
    %384 = arith.addf %382, %383 : vector<2x16xf32>
    %385 = math.tanh %384 : vector<2x16xf32>
    %386 = arith.mulf %381, %385 : vector<2x16xf32>
    %387 = vector.shape_cast %360 : vector<2x16xf32> to vector<2x1x16xf32>
    %c0_73 = arith.constant 0 : index
    %c5_74 = arith.constant 5 : index
    %c0_75 = arith.constant 0 : index
    %388 = vector.load %arg3[%c0_73, %c5_74, %c0_75] : memref<2x8x32xf32, #tpu.memory_space<vmem>>, vector<2x1x16xf32>
    tpu.vector_store %arg3[%c0_73, %c5_74, %c0_75], %387 {strides = array<i32>} : memref<2x8x32xf32, #tpu.memory_space<vmem>>, vector<2x1x16xf32>,
    %389 = vector.shape_cast %386 : vector<2x16xf32> to vector<2x1x16xf32>
    %c0_76 = arith.constant 0 : index
    %c2_77 = arith.constant 2 : index
    %c16_78 = arith.constant 16 : index
    %390 = vector.load %arg3[%c0_76, %c2_77, %c16_78] : memref<2x8x32xf32, #tpu.memory_space<vmem>>, vector<2x1x16xf32>
    tpu.vector_store %arg3[%c0_76, %c2_77, %c16_78], %389 {strides = array<i32>} : memref<2x8x32xf32, #tpu.memory_space<vmem>>, vector<2x1x16xf32>,
    %391 = vector.extract_strided_slice %0 {offsets = [0, 6, 0], sizes = [2, 1, 32], strides = [1, 1, 1]} : vector<2x8x32xf32> to vector<2x1x32xf32>
    %392 = vector.shape_cast %391 : vector<2x1x32xf32> to vector<2x32xf32>
    %393 = vector.extract_strided_slice %0 {offsets = [0, 1, 0], sizes = [2, 1, 32], strides = [1, 1, 1]} : vector<2x8x32xf32> to vector<2x1x32xf32>
    %394 = vector.shape_cast %393 : vector<2x1x32xf32> to vector<2x32xf32>
    %395 = tpu.concatenate %360, %386, %392, %394 in 1 : vector<2x16xf32>, vector<2x16xf32>, vector<2x32xf32>, vector<2x32xf32> -> vector<2x96xf32>
    %cst_79 = arith.constant dense<0.000000e+00> : vector<2x128xf32>
    %396 = tpu.matmul %395, %1, %cst_79 {dimension_numbers = #tpu.dot_dimension_numbers<[1], [0], [0], [1], [0, 0, 1, 1], [], []>} : vector<2x96xf32>, vector<96x128xf32>, vector<2x128xf32> -> vector<2x128xf32>
    %397 = vector.broadcast %2 : vector<1x128xf32> to vector<2x128xf32>
    %398 = arith.addf %396, %397 : vector<2x128xf32>
    %399 = vector.extract_strided_slice %398 {offsets = [0, 0], sizes = [2, 64], strides = [1, 1]} : vector<2x128xf32> to vector<2x64xf32>
    %400 = vector.extract_strided_slice %399 {offsets = [0, 0], sizes = [2, 16], strides = [1, 1]} : vector<2x64xf32> to vector<2x16xf32>
    %401 = arith.negf %400 : vector<2x16xf32>
    %402 = math.exp %401 : vector<2x16xf32>
    %cst_80 = arith.constant 1.000000e+00 : f32
    %403 = vector.broadcast %cst_80 : f32 to vector<2x16xf32>
    %404 = arith.addf %403, %402 : vector<2x16xf32>
    %405 = arith.divf %403, %404 : vector<2x16xf32>
    %406 = vector.extract_strided_slice %399 {offsets = [0, 16], sizes = [2, 16], strides = [1, 1]} : vector<2x64xf32> to vector<2x16xf32>
    %407 = arith.negf %406 : vector<2x16xf32>
    %408 = math.exp %407 : vector<2x16xf32>
    %cst_81 = arith.constant 1.000000e+00 : f32
    %409 = vector.broadcast %cst_81 : f32 to vector<2x16xf32>
    %410 = arith.addf %409, %408 : vector<2x16xf32>
    %411 = arith.divf %409, %410 : vector<2x16xf32>
    %412 = vector.extract_strided_slice %399 {offsets = [0, 32], sizes = [2, 16], strides = [1, 1]} : vector<2x64xf32> to vector<2x16xf32>
    %413 = math.tanh %412 : vector<2x16xf32>
    %414 = vector.extract_strided_slice %399 {offsets = [0, 48], sizes = [2, 16], strides = [1, 1]} : vector<2x64xf32> to vector<2x16xf32>
    %415 = arith.negf %414 : vector<2x16xf32>
    %416 = math.exp %415 : vector<2x16xf32>
    %cst_82 = arith.constant 1.000000e+00 : f32
    %417 = vector.broadcast %cst_82 : f32 to vector<2x16xf32>
    %418 = arith.addf %417, %416 : vector<2x16xf32>
    %419 = arith.divf %417, %418 : vector<2x16xf32>
    %420 = arith.mulf %411, %358 : vector<2x16xf32>
    %421 = arith.mulf %405, %413 : vector<2x16xf32>
    %422 = arith.addf %420, %421 : vector<2x16xf32>
    %423 = math.tanh %422 : vector<2x16xf32>
    %424 = arith.mulf %419, %423 : vector<2x16xf32>
    %425 = vector.extract_strided_slice %398 {offsets = [0, 64], sizes = [2, 64], strides = [1, 1]} : vector<2x128xf32> to vector<2x64xf32>
    %426 = vector.extract_strided_slice %425 {offsets = [0, 0], sizes = [2, 16], strides = [1, 1]} : vector<2x64xf32> to vector<2x16xf32>
    %427 = arith.negf %426 : vector<2x16xf32>
    %428 = math.exp %427 : vector<2x16xf32>
    %cst_83 = arith.constant 1.000000e+00 : f32
    %429 = vector.broadcast %cst_83 : f32 to vector<2x16xf32>
    %430 = arith.addf %429, %428 : vector<2x16xf32>
    %431 = arith.divf %429, %430 : vector<2x16xf32>
    %432 = vector.extract_strided_slice %425 {offsets = [0, 16], sizes = [2, 16], strides = [1, 1]} : vector<2x64xf32> to vector<2x16xf32>
    %433 = arith.negf %432 : vector<2x16xf32>
    %434 = math.exp %433 : vector<2x16xf32>
    %cst_84 = arith.constant 1.000000e+00 : f32
    %435 = vector.broadcast %cst_84 : f32 to vector<2x16xf32>
    %436 = arith.addf %435, %434 : vector<2x16xf32>
    %437 = arith.divf %435, %436 : vector<2x16xf32>
    %438 = vector.extract_strided_slice %425 {offsets = [0, 32], sizes = [2, 16], strides = [1, 1]} : vector<2x64xf32> to vector<2x16xf32>
    %439 = math.tanh %438 : vector<2x16xf32>
    %440 = vector.extract_strided_slice %425 {offsets = [0, 48], sizes = [2, 16], strides = [1, 1]} : vector<2x64xf32> to vector<2x16xf32>
    %441 = arith.negf %440 : vector<2x16xf32>
    %442 = math.exp %441 : vector<2x16xf32>
    %cst_85 = arith.constant 1.000000e+00 : f32
    %443 = vector.broadcast %cst_85 : f32 to vector<2x16xf32>
    %444 = arith.addf %443, %442 : vector<2x16xf32>
    %445 = arith.divf %443, %444 : vector<2x16xf32>
    %446 = arith.mulf %437, %384 : vector<2x16xf32>
    %447 = arith.mulf %431, %439 : vector<2x16xf32>
    %448 = arith.addf %446, %447 : vector<2x16xf32>
    %449 = math.tanh %448 : vector<2x16xf32>
    %450 = arith.mulf %445, %449 : vector<2x16xf32>
    %451 = vector.shape_cast %424 : vector<2x16xf32> to vector<2x1x16xf32>
    %c0_86 = arith.constant 0 : index
    %c6_87 = arith.constant 6 : index
    %c0_88 = arith.constant 0 : index
    %452 = vector.load %arg3[%c0_86, %c6_87, %c0_88] : memref<2x8x32xf32, #tpu.memory_space<vmem>>, vector<2x1x16xf32>
    tpu.vector_store %arg3[%c0_86, %c6_87, %c0_88], %451 {strides = array<i32>} : memref<2x8x32xf32, #tpu.memory_space<vmem>>, vector<2x1x16xf32>,
    %453 = vector.shape_cast %450 : vector<2x16xf32> to vector<2x1x16xf32>
    %c0_89 = arith.constant 0 : index
    %c1_90 = arith.constant 1 : index
    %c16_91 = arith.constant 16 : index
    %454 = vector.load %arg3[%c0_89, %c1_90, %c16_91] : memref<2x8x32xf32, #tpu.memory_space<vmem>>, vector<2x1x16xf32>
    tpu.vector_store %arg3[%c0_89, %c1_90, %c16_91], %453 {strides = array<i32>} : memref<2x8x32xf32, #tpu.memory_space<vmem>>, vector<2x1x16xf32>,
    %455 = vector.extract_strided_slice %0 {offsets = [0, 7, 0], sizes = [2, 1, 32], strides = [1, 1, 1]} : vector<2x8x32xf32> to vector<2x1x32xf32>
    %456 = vector.shape_cast %455 : vector<2x1x32xf32> to vector<2x32xf32>
    %457 = vector.extract_strided_slice %0 {offsets = [0, 0, 0], sizes = [2, 1, 32], strides = [1, 1, 1]} : vector<2x8x32xf32> to vector<2x1x32xf32>
    %458 = vector.shape_cast %457 : vector<2x1x32xf32> to vector<2x32xf32>
    %459 = tpu.concatenate %424, %450, %456, %458 in 1 : vector<2x16xf32>, vector<2x16xf32>, vector<2x32xf32>, vector<2x32xf32> -> vector<2x96xf32>
    %cst_92 = arith.constant dense<0.000000e+00> : vector<2x128xf32>
    %460 = tpu.matmul %459, %1, %cst_92 {dimension_numbers = #tpu.dot_dimension_numbers<[1], [0], [0], [1], [0, 0, 1, 1], [], []>} : vector<2x96xf32>, vector<96x128xf32>, vector<2x128xf32> -> vector<2x128xf32>
    %461 = vector.broadcast %2 : vector<1x128xf32> to vector<2x128xf32>
    %462 = arith.addf %460, %461 : vector<2x128xf32>
    %463 = vector.extract_strided_slice %462 {offsets = [0, 0], sizes = [2, 64], strides = [1, 1]} : vector<2x128xf32> to vector<2x64xf32>
    %464 = vector.extract_strided_slice %463 {offsets = [0, 0], sizes = [2, 16], strides = [1, 1]} : vector<2x64xf32> to vector<2x16xf32>
    %465 = arith.negf %464 : vector<2x16xf32>
    %466 = math.exp %465 : vector<2x16xf32>
    %cst_93 = arith.constant 1.000000e+00 : f32
    %467 = vector.broadcast %cst_93 : f32 to vector<2x16xf32>
    %468 = arith.addf %467, %466 : vector<2x16xf32>
    %469 = arith.divf %467, %468 : vector<2x16xf32>
    %470 = vector.extract_strided_slice %463 {offsets = [0, 16], sizes = [2, 16], strides = [1, 1]} : vector<2x64xf32> to vector<2x16xf32>
    %471 = arith.negf %470 : vector<2x16xf32>
    %472 = math.exp %471 : vector<2x16xf32>
    %cst_94 = arith.constant 1.000000e+00 : f32
    %473 = vector.broadcast %cst_94 : f32 to vector<2x16xf32>
    %474 = arith.addf %473, %472 : vector<2x16xf32>
    %475 = arith.divf %473, %474 : vector<2x16xf32>
    %476 = vector.extract_strided_slice %463 {offsets = [0, 32], sizes = [2, 16], strides = [1, 1]} : vector<2x64xf32> to vector<2x16xf32>
    %477 = math.tanh %476 : vector<2x16xf32>
    %478 = vector.extract_strided_slice %463 {offsets = [0, 48], sizes = [2, 16], strides = [1, 1]} : vector<2x64xf32> to vector<2x16xf32>
    %479 = arith.negf %478 : vector<2x16xf32>
    %480 = math.exp %479 : vector<2x16xf32>
    %cst_95 = arith.constant 1.000000e+00 : f32
    %481 = vector.broadcast %cst_95 : f32 to vector<2x16xf32>
    %482 = arith.addf %481, %480 : vector<2x16xf32>
    %483 = arith.divf %481, %482 : vector<2x16xf32>
    %484 = arith.mulf %475, %422 : vector<2x16xf32>
    %485 = arith.mulf %469, %477 : vector<2x16xf32>
    %486 = arith.addf %484, %485 : vector<2x16xf32>
    %487 = math.tanh %486 : vector<2x16xf32>
    %488 = arith.mulf %483, %487 : vector<2x16xf32>
    %489 = vector.extract_strided_slice %462 {offsets = [0, 64], sizes = [2, 64], strides = [1, 1]} : vector<2x128xf32> to vector<2x64xf32>
    %490 = vector.extract_strided_slice %489 {offsets = [0, 0], sizes = [2, 16], strides = [1, 1]} : vector<2x64xf32> to vector<2x16xf32>
    %491 = arith.negf %490 : vector<2x16xf32>
    %492 = math.exp %491 : vector<2x16xf32>
    %cst_96 = arith.constant 1.000000e+00 : f32
    %493 = vector.broadcast %cst_96 : f32 to vector<2x16xf32>
    %494 = arith.addf %493, %492 : vector<2x16xf32>
    %495 = arith.divf %493, %494 : vector<2x16xf32>
    %496 = vector.extract_strided_slice %489 {offsets = [0, 16], sizes = [2, 16], strides = [1, 1]} : vector<2x64xf32> to vector<2x16xf32>
    %497 = arith.negf %496 : vector<2x16xf32>
    %498 = math.exp %497 : vector<2x16xf32>
    %cst_97 = arith.constant 1.000000e+00 : f32
    %499 = vector.broadcast %cst_97 : f32 to vector<2x16xf32>
    %500 = arith.addf %499, %498 : vector<2x16xf32>
    %501 = arith.divf %499, %500 : vector<2x16xf32>
    %502 = vector.extract_strided_slice %489 {offsets = [0, 32], sizes = [2, 16], strides = [1, 1]} : vector<2x64xf32> to vector<2x16xf32>
    %503 = math.tanh %502 : vector<2x16xf32>
    %504 = vector.extract_strided_slice %489 {offsets = [0, 48], sizes = [2, 16], strides = [1, 1]} : vector<2x64xf32> to vector<2x16xf32>
    %505 = arith.negf %504 : vector<2x16xf32>
    %506 = math.exp %505 : vector<2x16xf32>
    %cst_98 = arith.constant 1.000000e+00 : f32
    %507 = vector.broadcast %cst_98 : f32 to vector<2x16xf32>
    %508 = arith.addf %507, %506 : vector<2x16xf32>
    %509 = arith.divf %507, %508 : vector<2x16xf32>
    %510 = arith.mulf %501, %448 : vector<2x16xf32>
    %511 = arith.mulf %495, %503 : vector<2x16xf32>
    %512 = arith.addf %510, %511 : vector<2x16xf32>
    %513 = math.tanh %512 : vector<2x16xf32>
    %514 = arith.mulf %509, %513 : vector<2x16xf32>
    %515 = vector.shape_cast %488 : vector<2x16xf32> to vector<2x1x16xf32>
    %c0_99 = arith.constant 0 : index
    %c7_100 = arith.constant 7 : index
    %c0_101 = arith.constant 0 : index
    %516 = vector.load %arg3[%c0_99, %c7_100, %c0_101] : memref<2x8x32xf32, #tpu.memory_space<vmem>>, vector<2x1x16xf32>
    tpu.vector_store %arg3[%c0_99, %c7_100, %c0_101], %515 {strides = array<i32>} : memref<2x8x32xf32, #tpu.memory_space<vmem>>, vector<2x1x16xf32>,
    %517 = vector.shape_cast %514 : vector<2x16xf32> to vector<2x1x16xf32>
    %c0_102 = arith.constant 0 : index
    %c0_103 = arith.constant 0 : index
    %c16_104 = arith.constant 16 : index
    %518 = vector.load %arg3[%c0_102, %c0_103, %c16_104] : memref<2x8x32xf32, #tpu.memory_space<vmem>>, vector<2x1x16xf32>
    tpu.vector_store %arg3[%c0_102, %c0_103, %c16_104], %517 {strides = array<i32>} : memref<2x8x32xf32, #tpu.memory_space<vmem>>, vector<2x1x16xf32>,
    return
  }
}

module attributes {stable_mosaic.version = 11 : i64} {
  func.func @_generator_kernel(%arg0: memref<2x8x32xf32, #tpu.memory_space<vmem>>, %arg1: memref<32x2xf32, #tpu.memory_space<vmem>>, %arg2: memref<1x2xf32, #tpu.memory_space<vmem>>, %arg3: memref<2x2xf32, #tpu.memory_space<vmem>>) attributes {dimension_semantics = [], scalar_prefetch = 0 : i64, scratch_operands = 0 : i64, tpu.core_type = #tpu.core_type<tc>} {
    %c0 = arith.constant 0 : index
    %c0_0 = arith.constant 0 : index
    %c0_1 = arith.constant 0 : index
    %0 = vector.load %arg0[%c0, %c0_0, %c0_1] : memref<2x8x32xf32, #tpu.memory_space<vmem>>, vector<2x8x32xf32>
    %cst = arith.constant dense<0xFF800000> : vector<2x32xf32>
    %1 = vector.multi_reduction <maximumf>, %0, %cst [1] : vector<2x8x32xf32> to vector<2x32xf32>
    %c0_2 = arith.constant 0 : index
    %c0_3 = arith.constant 0 : index
    %2 = vector.load %arg1[%c0_2, %c0_3] : memref<32x2xf32, #tpu.memory_space<vmem>>, vector<32x2xf32>
    %cst_4 = arith.constant dense<0.000000e+00> : vector<2x2xf32>
    %3 = tpu.matmul %1, %2, %cst_4 {dimension_numbers = #tpu.dot_dimension_numbers<[1], [0], [0], [1], [0, 0, 1, 1], [], []>} : vector<2x32xf32>, vector<32x2xf32>, vector<2x2xf32> -> vector<2x2xf32>
    %c0_5 = arith.constant 0 : index
    %c0_6 = arith.constant 0 : index
    %4 = vector.load %arg2[%c0_5, %c0_6] : memref<1x2xf32, #tpu.memory_space<vmem>>, vector<1x2xf32>
    %5 = vector.broadcast %4 : vector<1x2xf32> to vector<2x2xf32>
    %6 = arith.addf %3, %5 : vector<2x2xf32>
    %cst_7 = arith.constant dense<0xFF800000> : vector<2xf32>
    %7 = vector.multi_reduction <maximumf>, %6, %cst_7 [1] : vector<2x2xf32> to vector<2xf32>
    %cst_8 = arith.constant 0xFF800000 : f32
    %8 = vector.broadcast %cst_8 : f32 to vector<2xf32>
    %9 = arith.maximumf %8, %7 : vector<2xf32>
    %10 = vector.shape_cast %9 : vector<2xf32> to vector<2x1xf32>
    %11 = vector.broadcast %10 : vector<2x1xf32> to vector<2x2xf32>
    %12 = arith.subf %6, %11 : vector<2x2xf32>
    %13 = math.exp %12 : vector<2x2xf32>
    %cst_9 = arith.constant dense<0.000000e+00> : vector<2xf32>
    %14 = vector.multi_reduction <add>, %13, %cst_9 [1] : vector<2x2xf32> to vector<2xf32>
    %15 = vector.shape_cast %14 : vector<2xf32> to vector<2x1xf32>
    %16 = vector.broadcast %15 : vector<2x1xf32> to vector<2x2xf32>
    %17 = arith.divf %13, %16 : vector<2x2xf32>
    %c0_10 = arith.constant 0 : index
    %c0_11 = arith.constant 0 : index
    %18 = vector.load %arg3[%c0_10, %c0_11] : memref<2x2xf32, #tpu.memory_space<vmem>>, vector<2x2xf32>
    tpu.vector_store %arg3[%c0_10, %c0_11], %17 {strides = array<i32>} : memref<2x2xf32, #tpu.memory_space<vmem>>, vector<2x2xf32>,
    return
  }
}

</mosaic_0001>

<bundles_post_ra>
// kernel: _lambda_.7
= control target key start
LH: loop header
LB: loop body
LE: loop exit
PB: predicated region body
PF: predicated region fallthrough
CT: control target
= control target key end

     0   :  { %vm16_vm0 = vcmask 261120   ;;  %vm18_vm1 = vcmask 254976   ;;  %v209_v1 = vmov 0.0   ;;  %s210_s25 = smov 32   ;;  %s211_s26 = smov 64   ;;  %vm48_vm2 = vcmask 523264   ;;  %s299_s0 = inlined_call_operand.vmem [shape: f32[2,8,32], index: 0, kind: input, shape index: {}]   ;;  %s300_s1 = inlined_call_operand.vmem [shape: f32[96,32], index: 1, kind: input, shape index: {}]   ;;  %s301_s2 = inlined_call_operand.vmem [shape: f32[1,32], index: 2, kind: input, shape index: {}]   ;;  %s302_s3 = inlined_call_operand.vmem [shape: f32[2,8,32], index: 3, kind: output, shape index: {}]  }
   0x1   :  { %v235_v0 = vld [vmem:[%s299_s0] sm:$0xff]  ;;  %17 = vst.msk [vmem:[#allocation2] sm:$0xff] %vm16_vm0, %v209_v1  ;;  %20 = vst.msk [vmem:[#allocation2 + $0x10] sm:$0xff] %vm16_vm0, %v209_v1  ;;  %v242_v2 = vld [vmem:[%s299_s0 + $0x8] sm:$0xff]  ;;  %vm70_vm3 = vcmask 785408  }
   0x2   :  { %19 = vst.msk [vmem:[#allocation2 + $0x8] sm:$0x3] %vm18_vm1, %v209_v1  ;;  %21 = vst.msk [vmem:[#allocation2 + $0x18] sm:$0x3] %vm18_vm1, %v209_v1  ;;  %v62_v3 = vld [vmem:[%s300_s1 + $0x58] sm:$0xff]  ;;  %v61_v4 = vld [vmem:[%s300_s1 + $0x50] sm:$0xff] }
   0x3   :  { %22 = vst.msk [vmem:[#allocation2 + $0x1] sm:$0xff] %vm16_vm0, %v235_v0  ;;  %23 = vst.msk [vmem:[#allocation2 + $0x11] sm:$0xff] %vm16_vm0, %v242_v2  ;;  %179 = vmatprep.subr.mxu0 %v62_v3  ;;  %v60_v5 = vld [vmem:[%s300_s1 + $0x48] sm:$0xff]  ;;  %v59_v6 = vld [vmem:[%s300_s1 + $0x40] sm:$0xff] }
   0x4   :  { %180 = vmatpush3.msra.mxu0 %v62_v3  ;;  %v58_v7 = vld [vmem:[%s300_s1 + $0x38] sm:$0xff]  ;;  %v57_v10 = vld [vmem:[%s300_s1 + $0x30] sm:$0xff]  ;;  %v56_v13 = vld [vmem:[%s300_s1 + $0x28] sm:$0xff] }
   0x5   :  { %181 = vmatprep.subr.mxu0 %v61_v4  ;;  %v55_v14 = vld [vmem:[%s300_s1 + $0x20] sm:$0xff]  ;;  %v54_v15 = vld [vmem:[%s300_s1 + $0x18] sm:$0xff]  ;;  %v53_v16 = vld [vmem:[%s300_s1 + $0x10] sm:$0xff] }
   0x6   :  { %182 = vmatpush3.msra.mxu0 %v61_v4  ;;  %v52_v17 = vld [vmem:[%s300_s1 + $0x8] sm:$0xff]  ;;  %v51_v18 = vld [vmem:[%s300_s1] sm:$0xff] }
   0x7   :  { %183 = vmatprep.subr.mxu0 %v60_v5  ;;  %v162_v29 = vld [vmem:[%s301_s2] ss:$0 sm:$0xff] }
   0x8   :  { %184 = vmatpush3.msra.mxu0 %v60_v5 }
   0x9   :  { %185 = vmatprep.subr.mxu0 %v59_v6 }
   0xa   :  { %v26_v8 = vld [vmem:[#allocation2 + $0x1] sm:$0xff]  ;;  %186 = vmatpush3.msra.mxu0 %v59_v6  ;;  %v27_v11 = vld [vmem:[#allocation2 + $0x11] sm:$0xff] }
   0xb   :  { %v28_v9 = vld [vmem:[#allocation2 + $0x2] sm:$0xff]  ;;  %32 = vrot.lane.b32.xlu0 %v26_v8, %s210_s25  ;;  %v29_v12 = vld [vmem:[#allocation2 + $0x12] sm:$0xff]  ;;  %187 = vmatprep.subr.mxu0 %v58_v7 }
   0xc   :  { %40 = vrot.lane.b32.xlu1 %v28_v9, %s211_s26  ;;  %188 = vmatpush3.msra.mxu0 %v58_v7  ;;  %v24_v19 = vld [vmem:[#allocation2] sm:$0xff]  ;;  %v25_v24 = vld [vmem:[#allocation2 + $0x10] sm:$0xff] }
   0xd   :  { %189 = vmatprep.subr.mxu0 %v57_v10 }
   0xe   :  { %190 = vmatpush3.msra.mxu0 %v57_v10 }
   0xf   :  { %34 = vrot.lane.b32.xlu0 %v27_v11, %s210_s25  ;;  %191 = vmatprep.subr.mxu0 %v56_v13 }
  0x10   :  { %42 = vrot.lane.b32.xlu1 %v29_v12, %s211_s26  ;;  %192 = vmatpush3.msra.mxu0 %v56_v13 }
  0x11   :  { %193 = vmatprep.subr.mxu0 %v55_v14 }
  0x12   :  { %194 = vmatpush3.msra.mxu0 %v55_v14 }
  0x13   :  { %195 = vmatprep.subr.mxu0 %v54_v15 }
  0x14   :  { %196 = vmatpush3.msra.mxu0 %v54_v15 }
  0x15   :  { %197 = vmatprep.subr.mxu0 %v53_v16 }
  0x16   :  { %198 = vmatpush3.msra.mxu0 %v53_v16 }
  0x17   :  { %199 = vmatprep.subr.mxu0 %v52_v17 }
  0x18   :  { %200 = vmatpush3.msra.mxu0 %v52_v17 }
  0x19   :  { %201 = vmatprep.subr.mxu0 %v51_v18 }
  0x1a   :  { %202 = vmatpush3.msra.mxu0 %v51_v18 }
  0x7d   :  { %v33_v20 = vpop.permute.xlu0 %32 }
  0x7e   :  { %v41_v21 = vpop.permute.xlu1 %40  ;;  %v46_v22 = vsel %vm16_vm0, %v24_v19, %v33_v20 }
  0x7f   :  { %v49_v23 = vsel %vm48_vm2, %v46_v22, %v41_v21 }
  0x80   :  { %203 = vmatprep.mubr.msk.f32.mxu0 %vm70_vm3, %v49_v23 }
  0x81   :  { %v35_v25 = vpop.permute.xlu0 %34 }
  0x82   :  { %v43_v26 = vpop.permute.xlu1 %42  ;;  %v47_v27 = vsel %vm16_vm0, %v25_v24, %v35_v25 }
  0x83   :  { %v50_v28 = vsel %vm48_vm2, %v47_v27, %v43_v26 }
  0x84   :  { %204 = vmatmul.mubr.msk.f32.vlgmr.msra.gmra.mxu0 %vm70_vm3, %v50_v28 }
 0x144   :  { %v205_v30 = vpop.f32.mrf.mxu0 }
 0x145   :  { %v149_v31 = vadd.f32 %v205_v30, %v162_v29 }
 0x146   :  { %v143_v32 = vpop.f32.mrf.mxu0 }
 0x147   :  { %v153_v33 = vmax.f32 %v149_v31, 0.0  ;;  %v144_v34 = vadd.f32 %v162_v29, %v143_v32 }
 0x149   :  { %v155_v35 = vadd.f32 %v153_v33, %v242_v2  ;;  %v152_v36 = vmax.f32 %v144_v34, 0.0 }
 0x14b   :  { %157 = vst.msk [vmem:[%s302_s3 + $0x8] sm:$0xff] %vm16_vm0, %v155_v35  ;;  %v154_v37 = vadd.f32 %v152_v36, %v235_v0 }
 0x14d   :  { %156 = vst.msk [vmem:[%s302_s3] sm:$0xff] %vm16_vm0, %v154_v37 }

// kernel: _lambda_.10
= control target key start
LH: loop header
LB: loop body
LE: loop exit
PB: predicated region body
PF: predicated region fallthrough
CT: control target
= control target key end

     0   :  { %vm40_vm0 = vcmask 261120   ;;  %vm47_vm1 = vcmask 7168   ;;  %s196_s0 = inlined_call_operand.vmem [shape: f32[2,8,32], index: 0, kind: input, shape index: {}]   ;;  %s197_s1 = inlined_call_operand.vmem [shape: f32[2,1,32], index: 1, kind: input, shape index: {}]   ;;  %s198_s6 = inlined_call_operand.vmem [shape: f32[2,8,1], index: 6, kind: output, shape index: {1}]   ;;  %s199_s3 = inlined_call_operand.vmem [shape: f32[1,32], index: 3, kind: input, shape index: {}]   ;;  %s200_s4 = inlined_call_operand.vmem [shape: f32[1,32], index: 4, kind: input, shape index: {}]   ;;  %s201_s2 = inlined_call_operand.vmem [shape: f32[2,8,32], index: 2, kind: input, shape index: {}]   ;;  %s202_s5 = inlined_call_operand.vmem [shape: f32[2,8,32], index: 5, kind: output, shape index: {0}]  }
   0x1   :  { %v22_v0 = vld [vmem:[%s196_s0] sm:$0xff]  ;;  %v23_v1 = vld [vmem:[%s196_s0 + $0x8] sm:$0xff] }
   0x2   :  { %v52_v2 = vsel %vm40_vm0, %v22_v0, 0.0  ;;  %v55_v3 = vsel %vm40_vm0, %v23_v1, 0.0  ;;  %v109_v4 = vld [vmem:[%s197_s1] ss:$0 sm:$0xff]  ;;  %v110_v13 = vld [vmem:[%s197_s1 + $0x1] ss:$0 sm:$0xff] }
   0x3   :  { %53 = vadd.xlane.f32.xlu0 %v52_v2  ;;  %v38_v5 = vmul.f32 %v109_v4, %v22_v0  ;;  %v39_v17 = vmul.f32 %v110_v13, %v23_v1  ;;  %v111_v29 = vld [vmem:[%s199_s3] ss:$0 sm:$0xff]  ;;  %v96_v39 = vld [vmem:[%s201_s2 + $0x8] sm:$0xff] }
   0x4   :  { %v112_v31 = vld [vmem:[%s200_s4] ss:$0 sm:$0xff] }
   0x5   :  { %v41_v6 = vsel %vm40_vm0, %v38_v5, 0.0  ;;  %v44_v19 = vsel %vm40_vm0, %v39_v17, 0.0  ;;  %v95_v34 = vld [vmem:[%s201_s2] sm:$0xff] }
   0x7   :  { %56 = vadd.xlane.f32.xlu0 %v55_v3 }
   0xb   :  { %42 = vadd.xlane.f32.xlu0 %v41_v6 }
  0x8c   :  { %v54_v7 = vpop.xlane.xlu0 %53 }
  0x8d   :  { %v59_v8 = vmul.f32 0.03125, %v54_v7 }
  0x8f   :  { %v61_v9 = vsub.f32 %v22_v0, %v59_v8 }
  0x90   :  { %v57_v10 = vpop.xlane.xlu0 %56 }
  0x91   :  { %v60_v11 = vmul.f32 0.03125, %v57_v10  ;;  %v63_v12 = vmul.f32 %v61_v9, %v61_v9 }
  0x93   :  { %v62_v14 = vsub.f32 %v23_v1, %v60_v11  ;;  %v65_v15 = vsel %vm40_vm0, %v63_v12, 0.0 }
  0x94   :  { %66 = vadd.xlane.f32.xlu1 %v65_v15  ;;  %v43_v20 = vpop.xlane.xlu0 %42 }
  0x95   :  { %v64_v16 = vmul.f32 %v62_v14, %v62_v14  ;;  %48 = vst.msk [vmem:[%s198_s6] sm:$0xff] %vm47_vm1, %v43_v20 }
  0x97   :  { %v68_v18 = vsel %vm40_vm0, %v64_v16, 0.0 }
  0x98   :  { %69 = vadd.xlane.f32.xlu1 %v68_v18 }
  0x9c   :  { %45 = vadd.xlane.f32.xlu1 %v44_v19 }
 0x11d   :  { %v67_v21 = vpop.xlane.xlu1 %66 }
 0x11e   :  { %v71_v22 = vmul.f32 0.03125, %v67_v21 }
 0x120   :  { %v73_v23 = vadd.f32 1e-05, %v71_v22 }
 0x121   :  { %v70_v24 = vpop.xlane.xlu1 %69 }
 0x122   :  { %113 = vrsqrt.f32 %v73_v23  ;;  %v72_v25 = vmul.f32 0.03125, %v70_v24 }
 0x124   :  { %v74_v26 = vadd.f32 1e-05, %v72_v25 }
 0x125   :  { %v46_v27 = vpop.xlane.xlu1 %45 }
 0x126   :  { %115 = vrsqrt.f32 %v74_v26  ;;  %49 = vst.msk [vmem:[%s198_s6 + $0x8] sm:$0xff] %vm47_vm1, %v46_v27 }
 0x12f   :  { %v114_v28 = vpop.eup %113 }
 0x130   :  { %v77_v30 = vmul.f32 %v114_v28, %v61_v9 }
 0x132   :  { %v85_v32 = vmul.f32 %v111_v29, %v77_v30 }
 0x133   :  { %v116_v33 = vpop.eup %115 }
 0x134   :  { %v93_v35 = vadd.f32 %v112_v31, %v85_v32  ;;  %v78_v36 = vmul.f32 %v116_v33, %v62_v14 }
 0x136   :  { %v97_v37 = vadd.f32 %v95_v34, %v93_v35  ;;  %v86_v38 = vmul.f32 %v111_v29, %v78_v36 }
 0x138   :  { %99 = vst.msk [vmem:[%s202_s5] sm:$0xff] %vm40_vm0, %v97_v37  ;;  %v94_v40 = vadd.f32 %v112_v31, %v86_v38 }
 0x13a   :  { %v98_v41 = vadd.f32 %v96_v39, %v94_v40 }
 0x13c   :  { %100 = vst.msk [vmem:[%s202_s5 + $0x8] sm:$0xff] %vm40_vm0, %v98_v41 }

// kernel: _lambda_.8
= control target key start
LH: loop header
LB: loop body
LE: loop exit
PB: predicated region body
PF: predicated region fallthrough
CT: control target
= control target key end

     0   :  { %vm63_vm0 = vcmask 261120   ;;  %vm146_vm1 = vcmask 254976   ;;  %v828_v6 = vmov 0.0   ;;  %s829_s28 = smov 64   ;;  %s830_s29 = smov 32   ;;  %vm176_vm2 = vcmask 523264   ;;  %s1094_s1 = inlined_call_operand.vmem [shape: f32[32,32], index: 1, kind: input, shape index: {}]   ;;  %s1095_s0 = inlined_call_operand.vmem [shape: f32[2,8,32], index: 0, kind: input, shape index: {}]   ;;  %s1096_s3 = inlined_call_operand.vmem [shape: f32[96,64], index: 3, kind: input, shape index: {}]   ;;  %s1097_s2 = inlined_call_operand.vmem [shape: f32[1,32], index: 2, kind: input, shape index: {}]   ;;  %s1098_s5 = inlined_call_operand.vmem [shape: f32[64,32], index: 5, kind: input, shape index: {}]   ;;  %s1099_s4 = inlined_call_operand.vmem [shape: f32[1,64], index: 4, kind: input, shape index: {}]   ;;  %s1100_s6 = inlined_call_operand.vmem [shape: f32[1,32], index: 6, kind: input, shape index: {}]   ;;  %s1101_s11 = inlined_call_operand.vmem [shape: f32[32,64], index: 11, kind: input, shape index: {}]   ;;  %s1102_s13 = inlined_call_operand.vmem [shape: f32[64,32], index: 13, kind: input, shape index: {}]   ;;  %s1103_s7 = inlined_call_operand.vmem [shape: f32[1,32], index: 7, kind: input, shape index: {}]   ;;  %s1104_s8 = inlined_call_operand.vmem [shape: f32[1,32], index: 8, kind: input, shape index: {}]   ;;  %s1105_s12 = inlined_call_operand.vmem [shape: f32[1,64], index: 12, kind: input, shape index: {}]   ;;  %s1106_s14 = inlined_call_operand.vmem [shape: f32[1,32], index: 14, kind: input, shape index: {}]   ;;  %s1107_s9 = inlined_call_operand.vmem [shape: f32[1,32], index: 9, kind: input, shape index: {}]   ;;  %s1108_s10 = inlined_call_operand.vmem [shape: f32[1,32], index: 10, kind: input, shape index: {}]   ;;  %s1109_s15 = inlined_call_operand.vmem [shape: f32[2,8,32], index: 15, kind: output, shape index: {}]  }
   0x1   :  { %v55_v0 = vld [vmem:[%s1094_s1 + $0x18] sm:$0xff]  ;;  %v54_v1 = vld [vmem:[%s1094_s1 + $0x10] sm:$0xff]  ;;  %v920_v2 = vld [vmem:[%s1095_s0] sm:$0xff]  ;;  %148 = vst.msk [vmem:[#allocation2 + $0x10] sm:$0xff] %vm63_vm0, %v828_v6  ;;  %vm198_vm3 = vcmask 785408  }
   0x2   :  { %730 = vmatprep.subr.mxu0 %v55_v0  ;;  %v53_v3 = vld [vmem:[%s1094_s1 + $0x8] sm:$0xff]  ;;  %738 = vmatprep.mubr.msk.f32.mxu0 %vm63_vm0, %v920_v2  ;;  %v52_v4 = vld [vmem:[%s1094_s1] sm:$0xff]  ;;  %149 = vst.msk [vmem:[#allocation2 + $0x18] sm:$0x3] %vm146_vm1, %v828_v6  ;;  %147 = vst.msk [vmem:[#allocation2 + $0x8] sm:$0x3] %vm146_vm1, %v828_v6 }
   0x3   :  { %731 = vmatpush3.msra.mxu0 %v55_v0  ;;  %v933_v5 = vld [vmem:[%s1095_s0 + $0x8] sm:$0xff]  ;;  %145 = vst.msk [vmem:[#allocation2] sm:$0xff] %vm63_vm0, %v828_v6  ;;  %v190_v7 = vld [vmem:[%s1096_s3 + $0x58] sm:$0xff]  ;;  %v189_v8 = vld [vmem:[%s1096_s3 + $0x50] sm:$0xff] }
   0x4   :  { %732 = vmatprep.subr.mxu0 %v54_v1  ;;  %741 = vmatprep.subr.mxu1 %v190_v7  ;;  %v188_v9 = vld [vmem:[%s1096_s3 + $0x48] sm:$0xff]  ;;  %v187_v10 = vld [vmem:[%s1096_s3 + $0x40] sm:$0xff]  ;;  %v186_v11 = vld [vmem:[%s1096_s3 + $0x38] sm:$0xff] }
   0x5   :  { %733 = vmatpush3.msra.mxu0 %v54_v1  ;;  %742 = vmatpush3.msra.mxu1 %v190_v7  ;;  %v185_v12 = vld [vmem:[%s1096_s3 + $0x30] sm:$0xff]  ;;  %v184_v13 = vld [vmem:[%s1096_s3 + $0x28] sm:$0xff]  ;;  %v183_v14 = vld [vmem:[%s1096_s3 + $0x20] sm:$0xff] }
   0x6   :  { %734 = vmatprep.subr.mxu0 %v53_v3  ;;  %743 = vmatprep.subr.mxu1 %v189_v8  ;;  %v182_v15 = vld [vmem:[%s1096_s3 + $0x18] sm:$0xff]  ;;  %v665_v16 = vld [vmem:[%s1097_s2] ss:$0 sm:$0xff]  ;;  %v181_v17 = vld [vmem:[%s1096_s3 + $0x10] sm:$0xff] }
   0x7   :  { %735 = vmatpush3.msra.mxu0 %v53_v3  ;;  %744 = vmatpush3.msra.mxu1 %v189_v8  ;;  %v180_v19 = vld [vmem:[%s1096_s3 + $0x8] sm:$0xff]  ;;  %v179_v23 = vld [vmem:[%s1096_s3] sm:$0xff]  ;;  %v287_v24 = vld [vmem:[%s1098_s5 + $0x38] sm:$0xff] }
   0x8   :  { %736 = vmatprep.subr.mxu0 %v52_v4  ;;  %745 = vmatprep.subr.mxu1 %v188_v9  ;;  %v286_v25 = vld [vmem:[%s1098_s5 + $0x30] sm:$0xff]  ;;  %v285_v26 = vld [vmem:[%s1098_s5 + $0x28] sm:$0xff]  ;;  %v284_v29 = vld [vmem:[%s1098_s5 + $0x20] sm:$0xff] }
   0x9   :  { %737 = vmatpush3.msra.mxu0 %v52_v4  ;;  %746 = vmatpush3.msra.mxu1 %v188_v9  ;;  %v283_v30 = vld [vmem:[%s1098_s5 + $0x18] sm:$0xff]  ;;  %v282_v43 = vld [vmem:[%s1098_s5 + $0x10] sm:$0xff]  ;;  %v281_v44 = vld [vmem:[%s1098_s5 + $0x8] sm:$0xff] }
   0xa   :  { %739 = vmatmul.mubr.msk.f32.vlgmr.msra.gmra.mxu0 %vm63_vm0, %v933_v5  ;;  %747 = vmatprep.subr.mxu1 %v187_v10  ;;  %v280_v45 = vld [vmem:[%s1098_s5] sm:$0xff]  ;;  %v426_v8 = vld [vmem:[%s1101_s11 + $0x18] sm:$0xff]  ;;  %v425_v9 = vld [vmem:[%s1101_s11 + $0x10] sm:$0xff] }
   0xb   :  { %748 = vmatpush3.msra.mxu1 %v187_v10  ;;  %768 = vmatprep.subr.mxu0 %v287_v24  ;;  %v668_v47 = vld [vmem:[%s1099_s4] ss:$0 sm:$0xff]  ;;  %v424_v10 = vld [vmem:[%s1101_s11 + $0x8] sm:$0xff] }
   0xc   :  { %749 = vmatprep.subr.mxu1 %v186_v11  ;;  %769 = vmatpush3.msra.mxu0 %v287_v24  ;;  %v671_v51 = vld [vmem:[%s1100_s6] ss:$0 sm:$0xff] }
   0xd   :  { %750 = vmatpush3.msra.mxu1 %v186_v11  ;;  %770 = vmatprep.subr.mxu0 %v286_v25  ;;  %v423_v11 = vld [vmem:[%s1101_s11] sm:$0xff] }
   0xe   :  { %751 = vmatprep.subr.mxu1 %v185_v12  ;;  %771 = vmatpush3.msra.mxu0 %v286_v25  ;;  %v675_v25 = vld [vmem:[%s1104_s8] ss:$0 sm:$0xff] }
   0xf   :  { %752 = vmatpush3.msra.mxu1 %v185_v12  ;;  %772 = vmatprep.subr.mxu0 %v285_v26  ;;  %v524_v12 = vld [vmem:[%s1102_s13 + $0x38] sm:$0xff] }
  0x10   :  { %753 = vmatprep.subr.mxu1 %v184_v13  ;;  %773 = vmatpush3.msra.mxu0 %v285_v26 }
  0x11   :  { %754 = vmatpush3.msra.mxu1 %v184_v13  ;;  %774 = vmatprep.subr.mxu0 %v284_v29  ;;  %v523_v13 = vld [vmem:[%s1102_s13 + $0x30] sm:$0xff] }
  0x12   :  { %755 = vmatprep.subr.mxu1 %v183_v14  ;;  %775 = vmatpush3.msra.mxu0 %v284_v29 }
  0x13   :  { %756 = vmatpush3.msra.mxu1 %v183_v14  ;;  %776 = vmatprep.subr.mxu0 %v283_v30  ;;  %v522_v14 = vld [vmem:[%s1102_s13 + $0x28] sm:$0xff] }
  0x14   :  { %757 = vmatprep.subr.mxu1 %v182_v15  ;;  %777 = vmatpush3.msra.mxu0 %v283_v30 }
  0x15   :  { %758 = vmatpush3.msra.mxu1 %v182_v15  ;;  %778 = vmatprep.subr.mxu0 %v282_v43  ;;  %v521_v15 = vld [vmem:[%s1102_s13 + $0x20] sm:$0xff] }
  0x16   :  { %759 = vmatprep.subr.mxu1 %v181_v17  ;;  %779 = vmatpush3.msra.mxu0 %v282_v43  ;;  %v679_v43 = vld [vmem:[%s1106_s14] ss:$0 sm:$0xff] }
  0x17   :  { %760 = vmatpush3.msra.mxu1 %v181_v17  ;;  %780 = vmatprep.subr.mxu0 %v281_v44 }
  0x18   :  { %761 = vmatprep.subr.mxu1 %v180_v19  ;;  %781 = vmatpush3.msra.mxu0 %v281_v44 }
  0x19   :  { %762 = vmatpush3.msra.mxu1 %v180_v19  ;;  %782 = vmatprep.subr.mxu0 %v280_v45 }
  0x1a   :  { %763 = vmatprep.subr.mxu1 %v179_v23  ;;  %783 = vmatpush3.msra.mxu0 %v280_v45 }
  0x1b   :  { %764 = vmatpush3.msra.mxu1 %v179_v23  ;;  %787 = vmatprep.subr.mxu0 %v426_v8  ;;  %v674_v23 = vld [vmem:[%s1103_s7] ss:$0 sm:$0xff] }
  0x1c   :  { %798 = vmatprep.subr.mxu1 %v524_v12 }
  0xca   :  { %v740_v18 = vpop.f32.mrf.mxu0 }
  0xcb   :  { %v142_v20 = vadd.f32 %v740_v18, %v665_v16 }
  0xcc   :  { %v136_v21 = vpop.f32.mrf.mxu0 }
  0xcd   :  { %151 = vst.msk [vmem:[#allocation2 + $0x11] sm:$0xff] %vm63_vm0, %v142_v20  ;;  %v137_v22 = vadd.f32 %v665_v16, %v136_v21 }
  0xcf   :  { %150 = vst.msk [vmem:[#allocation2 + $0x1] sm:$0xff] %vm63_vm0, %v137_v22 }
  0xd4   :  { %v157_v31 = vld [vmem:[#allocation2 + $0x12] sm:$0xff] }
  0xd5   :  { %v155_v32 = vld [vmem:[#allocation2 + $0x11] sm:$0xff] }
  0xd6   :  { %v156_v27 = vld [vmem:[#allocation2 + $0x2] sm:$0xff]  ;;  %v153_v39 = vld [vmem:[#allocation2 + $0x10] sm:$0xff] }
  0xd7   :  { %v154_v28 = vld [vmem:[#allocation2 + $0x1] sm:$0xff]  ;;  %168 = vrot.lane.b32.xlu1 %v156_v27, %s829_s28 }
  0xd8   :  { %160 = vrot.lane.b32.xlu0 %v154_v28, %s830_s29  ;;  %v152_v35 = vld [vmem:[#allocation2] sm:$0xff] }
  0xdb   :  { %170 = vrot.lane.b32.xlu1 %v157_v31, %s829_s28 }
  0xdc   :  { %162 = vrot.lane.b32.xlu0 %v155_v32, %s830_s29  ;;  %v520_v32 = vld [vmem:[%s1102_s13 + $0x18] sm:$0xff] }
 0x149   :  { %v169_v33 = vpop.permute.xlu1 %168 }
 0x14a   :  { %v161_v34 = vpop.permute.xlu0 %160 }
 0x14b   :  { %v174_v36 = vsel %vm63_vm0, %v152_v35, %v161_v34  ;;  %v518_v34 = vld [vmem:[%s1102_s13 + $0x8] sm:$0xff]  ;;  %v517_v35 = vld [vmem:[%s1102_s13] sm:$0xff] }
 0x14c   :  { %v177_v37 = vsel %vm176_vm2, %v174_v36, %v169_v33  ;;  %v519_v33 = vld [vmem:[%s1102_s13 + $0x10] sm:$0xff]  ;;  %v676_v36 = vld [vmem:[%s1105_s12] ss:$0 sm:$0xff] }
 0x14d   :  { %765 = vmatprep.mubr.msk.f32.mxu1 %vm198_vm3, %v177_v37  ;;  %v171_v38 = vpop.permute.xlu1 %170 }
 0x14e   :  { %v163_v40 = vpop.permute.xlu0 %162 }
 0x14f   :  { %v175_v41 = vsel %vm63_vm0, %v153_v39, %v163_v40 }
 0x150   :  { %v178_v42 = vsel %vm176_vm2, %v175_v41, %v171_v38 }
 0x151   :  { %766 = vmatmul.mubr.msk.f32.vlgmr.msra.gmra.mxu1 %vm198_vm3, %v178_v42 }
 0x152   :  { %799 = vmatpush3.msra.mxu1 %v524_v12 }
 0x153   :  { %800 = vmatprep.subr.mxu1 %v523_v13 }
 0x154   :  { %801 = vmatpush3.msra.mxu1 %v523_v13 }
 0x155   :  { %802 = vmatprep.subr.mxu1 %v522_v14 }
 0x156   :  { %803 = vmatpush3.msra.mxu1 %v522_v14 }
 0x157   :  { %804 = vmatprep.subr.mxu1 %v521_v15 }
 0x158   :  { %805 = vmatpush3.msra.mxu1 %v521_v15 }
 0x159   :  { %806 = vmatprep.subr.mxu1 %v520_v32 }
 0x15a   :  { %807 = vmatpush3.msra.mxu1 %v520_v32 }
 0x15b   :  { %808 = vmatprep.subr.mxu1 %v519_v33 }
 0x15c   :  { %809 = vmatpush3.msra.mxu1 %v519_v33 }
 0x15d   :  { %810 = vmatprep.subr.mxu1 %v518_v34 }
 0x15e   :  { %811 = vmatpush3.msra.mxu1 %v518_v34 }
 0x15f   :  { %812 = vmatprep.subr.mxu1 %v517_v35 }
 0x160   :  { %813 = vmatpush3.msra.mxu1 %v517_v35 }
 0x211   :  { %v767_v46 = vpop.f32.mrf.mxu1 }
 0x212   :  { %v277_v50 = vadd.f32 %v767_v46, %v668_v47 }
 0x213   :  { %v271_v48 = vpop.f32.mrf.mxu1 }
 0x214   :  { %v272_v49 = vadd.f32 %v668_v47, %v271_v48 }
 0x216   :  { %784 = vmatprep.mubr.msk.f32.mxu0 %vm176_vm2, %v272_v49 }
 0x217   :  { %785 = vmatmul.mubr.msk.f32.vlgmr.msra.gmra.mxu0 %vm176_vm2, %v277_v50 }
 0x218   :  { %788 = vmatpush3.msra.mxu0 %v426_v8  ;;  %v683_v8 = vld [vmem:[%s1108_s10] ss:$0 sm:$0xff] }
 0x219   :  { %789 = vmatprep.subr.mxu0 %v425_v9 }
 0x21a   :  { %790 = vmatpush3.msra.mxu0 %v425_v9 }
 0x21b   :  { %791 = vmatprep.subr.mxu0 %v424_v10 }
 0x21c   :  { %792 = vmatpush3.msra.mxu0 %v424_v10 }
 0x21d   :  { %793 = vmatprep.subr.mxu0 %v423_v11 }
 0x21e   :  { %794 = vmatpush3.msra.mxu0 %v423_v11 }
 0x2d7   :  { %v786_v52 = vpop.f32.mrf.mxu0 }
 0x2d8   :  { %v373_v53 = vadd.f32 %v786_v52, %v671_v51 }
 0x2d9   :  { %v367_v54 = vpop.f32.mrf.mxu0 }
 0x2da   :  { %v368_v55 = vadd.f32 %v671_v51, %v367_v54  ;;  %v377_v56 = vadd.f32 %v373_v53, %v933_v5 }
 0x2dc   :  { %v383_v57 = vsel %vm63_vm0, %v377_v56, 0.0  ;;  %v376_v58 = vadd.f32 %v368_v55, %v920_v2 }
 0x2dd   :  { %384 = vadd.xlane.f32.xlu1 %v383_v57 }
 0x2de   :  { %v380_v59 = vsel %vm63_vm0, %v376_v58, 0.0 }
 0x2df   :  { %381 = vadd.xlane.f32.xlu0 %v380_v59 }
 0x366   :  { %v385_v60 = vpop.xlane.xlu1 %384 }
 0x367   :  { %v388_v61 = vmul.f32 0.03125, %v385_v60 }
 0x368   :  { %v382_v62 = vpop.xlane.xlu0 %381 }
 0x369   :  { %v387_v63 = vmul.f32 0.03125, %v382_v62  ;;  %v390_v0 = vsub.f32 %v377_v56, %v388_v61 }
 0x36b   :  { %v389_v1 = vsub.f32 %v376_v58, %v387_v63  ;;  %v392_v6 = vmul.f32 %v390_v0, %v390_v0 }
 0x36d   :  { %v391_v3 = vmul.f32 %v389_v1, %v389_v1  ;;  %v396_v7 = vsel %vm63_vm0, %v392_v6, 0.0 }
 0x36f   :  { %v393_v4 = vsel %vm63_vm0, %v391_v3, 0.0 }
 0x370   :  { %394 = vadd.xlane.f32.xlu0 %v393_v4  ;;  %v682_v4 = vld [vmem:[%s1107_s9] ss:$0 sm:$0xff] }
 0x374   :  { %397 = vadd.xlane.f32.xlu0 %v396_v7 }
 0x3f9   :  { %v395_v16 = vpop.xlane.xlu0 %394 }
 0x3fa   :  { %v399_v17 = vmul.f32 0.03125, %v395_v16 }
 0x3fc   :  { %v401_v18 = vadd.f32 1e-05, %v399_v17 }
 0x3fd   :  { %v398_v19 = vpop.xlane.xlu0 %397 }
 0x3fe   :  { %820 = vrsqrt.f32 %v401_v18  ;;  %v400_v20 = vmul.f32 0.03125, %v398_v19 }
 0x400   :  { %v402_v21 = vadd.f32 1e-05, %v400_v20 }
 0x402   :  { %822 = vrsqrt.f32 %v402_v21 }
 0x40b   :  { %v821_v22 = vpop.eup %820 }
 0x40c   :  { %v405_v24 = vmul.f32 %v821_v22, %v389_v1 }
 0x40e   :  { %v413_v26 = vmul.f32 %v674_v23, %v405_v24 }
 0x40f   :  { %v823_v27 = vpop.eup %822 }
 0x410   :  { %v406_v28 = vmul.f32 %v823_v27, %v390_v0  ;;  %v421_v29 = vadd.f32 %v675_v25, %v413_v26 }
 0x412   :  { %v414_v30 = vmul.f32 %v674_v23, %v406_v28  ;;  %795 = vmatprep.mubr.msk.f32.mxu0 %vm63_vm0, %v421_v29 }
 0x414   :  { %v422_v31 = vadd.f32 %v675_v25, %v414_v30 }
 0x416   :  { %796 = vmatmul.mubr.msk.f32.vlgmr.msra.gmra.mxu0 %vm63_vm0, %v422_v31 }
 0x4d6   :  { %v797_v37 = vpop.f32.mrf.mxu0 }
 0x4d7   :  { %v512_v38 = vadd.f32 %v797_v37, %v676_v36 }
 0x4d8   :  { %v506_v39 = vpop.f32.mrf.mxu0 }
 0x4d9   :  { %v507_v40 = vadd.f32 %v676_v36, %v506_v39  ;;  %v516_v42 = vmax.f32 %v512_v38, 0.0 }
 0x4db   :  { %v515_v41 = vmax.f32 %v507_v40, 0.0 }
 0x4dd   :  { %814 = vmatprep.mubr.msk.f32.mxu1 %vm176_vm2, %v515_v41 }
 0x4de   :  { %815 = vmatmul.mubr.msk.f32.vlgmr.msra.gmra.mxu1 %vm176_vm2, %v516_v42 }
 0x59e   :  { %v816_v44 = vpop.f32.mrf.mxu1 }
 0x59f   :  { %v610_v45 = vadd.f32 %v816_v44, %v679_v43 }
 0x5a0   :  { %v604_v46 = vpop.f32.mrf.mxu1 }
 0x5a1   :  { %v605_v47 = vadd.f32 %v679_v43, %v604_v46  ;;  %v614_v48 = vadd.f32 %v610_v45, %v933_v5 }
 0x5a3   :  { %v620_v49 = vsel %vm63_vm0, %v614_v48, 0.0  ;;  %v613_v50 = vadd.f32 %v605_v47, %v920_v2 }
 0x5a4   :  { %621 = vadd.xlane.f32.xlu0 %v620_v49 }
 0x5a5   :  { %v617_v51 = vsel %vm63_vm0, %v613_v50, 0.0 }
 0x5a6   :  { %618 = vadd.xlane.f32.xlu1 %v617_v51 }
 0x62d   :  { %v622_v52 = vpop.xlane.xlu0 %621 }
 0x62e   :  { %v624_v53 = vmul.f32 0.03125, %v622_v52 }
 0x62f   :  { %v619_v54 = vpop.xlane.xlu1 %618 }
 0x630   :  { %v626_v55 = vsub.f32 %v614_v48, %v624_v53  ;;  %v623_v56 = vmul.f32 0.03125, %v619_v54 }
 0x632   :  { %v625_v57 = vsub.f32 %v613_v50, %v623_v56  ;;  %v628_v58 = vmul.f32 %v626_v55, %v626_v55 }
 0x634   :  { %v632_v59 = vsel %vm63_vm0, %v628_v58, 0.0  ;;  %v627_v60 = vmul.f32 %v625_v57, %v625_v57 }
 0x635   :  { %633 = vadd.xlane.f32.xlu0 %v632_v59 }
 0x636   :  { %v629_v5 = vsel %vm63_vm0, %v627_v60, 0.0 }
 0x637   :  { %630 = vadd.xlane.f32.xlu1 %v629_v5 }
 0x6be   :  { %v634_v61 = vpop.xlane.xlu0 %633 }
 0x6bf   :  { %v636_v2 = vmul.f32 0.03125, %v634_v61 }
 0x6c0   :  { %v631_v62 = vpop.xlane.xlu1 %630 }
 0x6c1   :  { %v638_v63 = vadd.f32 1e-05, %v636_v2  ;;  %v635_v0 = vmul.f32 0.03125, %v631_v62 }
 0x6c3   :  { %824 = vrsqrt.f32 %v638_v63  ;;  %v637_v1 = vadd.f32 1e-05, %v635_v0 }
 0x6c5   :  { %826 = vrsqrt.f32 %v637_v1 }
 0x6d0   :  { %v825_v3 = vpop.eup %824 }
 0x6d1   :  { %v642_v6 = vmul.f32 %v825_v3, %v626_v55 }
 0x6d2   :  { %v827_v7 = vpop.eup %826 }
 0x6d3   :  { %v650_v9 = vmul.f32 %v682_v4, %v642_v6  ;;  %v641_v10 = vmul.f32 %v827_v7, %v625_v57 }
 0x6d5   :  { %v658_v11 = vadd.f32 %v683_v8, %v650_v9  ;;  %v649_v12 = vmul.f32 %v682_v4, %v641_v10 }
 0x6d7   :  { %660 = vst.msk [vmem:[%s1109_s15 + $0x8] sm:$0xff] %vm63_vm0, %v658_v11  ;;  %v657_v13 = vadd.f32 %v683_v8, %v649_v12 }
 0x6d9   :  { %659 = vst.msk [vmem:[%s1109_s15] sm:$0xff] %vm63_vm0, %v657_v13 }

// kernel: _lambda_.9
= control target key start
LH: loop header
LB: loop body
LE: loop exit
PB: predicated region body
PF: predicated region fallthrough
CT: control target
= control target key end

     0   :  { %vm65_vm0 = vcmask 261120   ;;  %vm148_vm1 = vcmask 257024   ;;  %v981_v6 = vmov 0.0   ;;  %s982_s27 = smov 32   ;;  %s983_s18 = smov 96   ;;  %vm190_vm2 = vcmask 523264   ;;  %s1323_s1 = inlined_call_operand.vmem [shape: f32[32,32], index: 1, kind: input, shape index: {}]   ;;  %s1324_s0 = inlined_call_operand.vmem [shape: f32[2,8,32], index: 0, kind: input, shape index: {}]   ;;  %s1325_s3 = inlined_call_operand.vmem [shape: f32[160,64], index: 3, kind: input, shape index: {}]   ;;  %s1326_s2 = inlined_call_operand.vmem [shape: f32[1,32], index: 2, kind: input, shape index: {}]   ;;  %s1327_s5 = inlined_call_operand.vmem [shape: f32[64,32], index: 5, kind: input, shape index: {}]   ;;  %s1328_s4 = inlined_call_operand.vmem [shape: f32[1,64], index: 4, kind: input, shape index: {}]   ;;  %s1329_s6 = inlined_call_operand.vmem [shape: f32[1,32], index: 6, kind: input, shape index: {}]   ;;  %s1330_s16 = inlined_call_operand.vmem [shape: f32[2,1,32], index: 16, kind: output, shape index: {1}]   ;;  %s1331_s11 = inlined_call_operand.vmem [shape: f32[32,64], index: 11, kind: input, shape index: {}]   ;;  %s1332_s13 = inlined_call_operand.vmem [shape: f32[64,32], index: 13, kind: input, shape index: {}]   ;;  %s1333_s7 = inlined_call_operand.vmem [shape: f32[1,32], index: 7, kind: input, shape index: {}]   ;;  %s1334_s8 = inlined_call_operand.vmem [shape: f32[1,32], index: 8, kind: input, shape index: {}]   ;;  %s1335_s12 = inlined_call_operand.vmem [shape: f32[1,64], index: 12, kind: input, shape index: {}]   ;;  %s1336_s14 = inlined_call_operand.vmem [shape: f32[1,32], index: 14, kind: input, shape index: {}]   ;;  %s1337_s9 = inlined_call_operand.vmem [shape: f32[1,32], index: 9, kind: input, shape index: {}]   ;;  %s1338_s10 = inlined_call_operand.vmem [shape: f32[1,32], index: 10, kind: input, shape index: {}]   ;;  %s1339_s15 = inlined_call_operand.vmem [shape: f32[2,8,32], index: 15, kind: output, shape index: {0}]  }
   0x1   :  { %1341 = sst [smem:[#allocation3_spill]] %s1323_s1  ;;  %v1081_v2 = vld [vmem:[%s1324_s0] sm:$0xff]  ;;  %v1094_v5 = vld [vmem:[%s1324_s0 + $0x8] sm:$0xff]  ;;  %150 = vst.msk [vmem:[#allocation2 + $0x10] sm:$0xff] %vm65_vm0, %v981_v6  ;;  %147 = vst.msk [vmem:[#allocation2] sm:$0xff] %vm65_vm0, %v981_v6  ;;  %229 = vmatprep.subr.mxu1 %v981_v6  ;;  %s984_s20 = smov 64  }
   0x2   :  { %s1342_s23 = sld [smem:[#allocation3_spill]]  ;;  %896 = vmatprep.mubr.msk.f32.mxu0 %vm65_vm0, %v1081_v2  ;;  %151 = vst.msk [vmem:[#allocation2 + $0x18] sm:$0xf] %vm148_vm1, %v981_v6  ;;  %149 = vst.msk [vmem:[#allocation2 + $0x8] sm:$0xf] %vm148_vm1, %v981_v6  ;;  %v211_v7 = vld [vmem:[%s1325_s3 + $0x78] sm:$0xff] }
   0x3   :  { %v210_v8 = vld [vmem:[%s1325_s3 + $0x70] sm:$0xff]  ;;  %230 = vmatpush1.msra.mxu1 %v211_v7  ;;  %v209_v9 = vld [vmem:[%s1325_s3 + $0x68] sm:$0xff]  ;;  %v208_v10 = vld [vmem:[%s1325_s3 + $0x60] sm:$0xff]  ;;  %vm193_vm3 = vcmask 785408   ;;  %vm985_vm4 = vmmov 0   ;;  %vm716_vm5 = vcmask 1041409  }
   0x4   :  { %231 = vmatprep.subr.mxu1 %v981_v6  ;;  %v207_v11 = vld [vmem:[%s1325_s3 + $0x58] sm:$0xff]  ;;  %v206_v12 = vld [vmem:[%s1325_s3 + $0x50] sm:$0xff]  ;;  %v205_v13 = vld [vmem:[%s1325_s3 + $0x48] sm:$0xff]  ;;  %vm815_vm6 = vcmask 253952  }
   0x5   :  { %232 = vmatpush1.msra.mxu1 %v210_v8  ;;  %v204_v14 = vld [vmem:[%s1325_s3 + $0x40] sm:$0xff]  ;;  %v203_v15 = vld [vmem:[%s1325_s3 + $0x38] sm:$0xff]  ;;  %v202_v16 = vld [vmem:[%s1325_s3 + $0x30] sm:$0xff] }
   0x6   :  { %233 = vmatprep.subr.mxu1 %v981_v6  ;;  %v201_v17 = vld [vmem:[%s1325_s3 + $0x28] sm:$0xff]  ;;  %v200_v18 = vld [vmem:[%s1325_s3 + $0x20] sm:$0xff]  ;;  %v199_v19 = vld [vmem:[%s1325_s3 + $0x18] sm:$0xff] }
   0x7   :  { %234 = vmatpush1.msra.mxu1 %v209_v9  ;;  %v198_v20 = vld [vmem:[%s1325_s3 + $0x10] sm:$0xff]  ;;  %v197_v21 = vld [vmem:[%s1325_s3 + $0x8] sm:$0xff]  ;;  %v196_v22 = vld [vmem:[%s1325_s3] sm:$0xff] }
   0x8   :  { %v57_v0 = vld [vmem:[%s1342_s23 + $0x18] sm:$0xff]  ;;  %v56_v1 = vld [vmem:[%s1342_s23 + $0x10] sm:$0xff]  ;;  %v55_v3 = vld [vmem:[%s1342_s23 + $0x8] sm:$0xff]  ;;  %235 = vmatprep.subr.mxu1 %v981_v6 }
   0x9   :  { %888 = vmatprep.subr.mxu0 %v57_v0  ;;  %v54_v4 = vld [vmem:[%s1342_s23] sm:$0xff]  ;;  %236 = vmatpush1.msra.mxu1 %v208_v10  ;;  %v215_v24 = vld [vmem:[%s1325_s3 + $0x98] sm:$0xff]  ;;  %v214_v26 = vld [vmem:[%s1325_s3 + $0x90] sm:$0xff] }
   0xa   :  { %889 = vmatpush3.msra.mxu0 %v57_v0  ;;  %237 = vmatprep.subr.mxu1 %v981_v6  ;;  %v826_v23 = vld [vmem:[%s1326_s2] ss:$0 sm:$0xff]  ;;  %v213_v28 = vld [vmem:[%s1325_s3 + $0x88] sm:$0xff]  ;;  %v311_v33 = vld [vmem:[%s1327_s5 + $0x38] sm:$0xff] }
   0xb   :  { %890 = vmatprep.subr.mxu0 %v56_v1  ;;  %238 = vmatpush1.msra.mxu1 %v207_v11  ;;  %v212_v31 = vld [vmem:[%s1325_s3 + $0x80] sm:$0xff]  ;;  %v310_v36 = vld [vmem:[%s1327_s5 + $0x30] sm:$0xff]  ;;  %v309_v38 = vld [vmem:[%s1327_s5 + $0x28] sm:$0xff] }
   0xc   :  { %891 = vmatpush3.msra.mxu0 %v56_v1  ;;  %239 = vmatprep.subr.mxu1 %v981_v6  ;;  %v308_v40 = vld [vmem:[%s1327_s5 + $0x20] sm:$0xff]  ;;  %v307_v42 = vld [vmem:[%s1327_s5 + $0x18] sm:$0xff]  ;;  %v306_v59 = vld [vmem:[%s1327_s5 + $0x10] sm:$0xff] }
   0xd   :  { %892 = vmatprep.subr.mxu0 %v55_v3  ;;  %240 = vmatpush1.msra.mxu1 %v206_v12  ;;  %v305_v60 = vld [vmem:[%s1327_s5 + $0x8] sm:$0xff]  ;;  %v304_v61 = vld [vmem:[%s1327_s5] sm:$0xff] }
   0xe   :  { %893 = vmatpush3.msra.mxu0 %v55_v3  ;;  %241 = vmatprep.subr.mxu1 %v981_v6  ;;  %v829_v62 = vld [vmem:[%s1328_s4] ss:$0 sm:$0xff] }
   0xf   :  { %894 = vmatprep.subr.mxu0 %v54_v4  ;;  %242 = vmatpush1.msra.mxu1 %v205_v13 }
  0x10   :  { %895 = vmatpush3.msra.mxu0 %v54_v4  ;;  %243 = vmatprep.subr.mxu1 %v981_v6 }
  0x11   :  { %897 = vmatmul.mubr.msk.f32.vlgmr.msra.gmra.mxu0 %vm65_vm0, %v1094_v5  ;;  %244 = vmatpush1.msra.mxu1 %v204_v14 }
  0x12   :  { %245 = vmatprep.subr.mxu1 %v981_v6  ;;  %899 = vmatprep.subr.mxu0 %v311_v33 }
  0x13   :  { %246 = vmatpush1.msra.mxu1 %v203_v15  ;;  %900 = vmatpush3.msra.mxu0 %v311_v33 }
  0x14   :  { %247 = vmatprep.subr.mxu1 %v981_v6  ;;  %901 = vmatprep.subr.mxu0 %v310_v36 }
  0x15   :  { %248 = vmatpush1.msra.mxu1 %v202_v16  ;;  %902 = vmatpush3.msra.mxu0 %v310_v36 }
  0x16   :  { %249 = vmatprep.subr.mxu1 %v981_v6  ;;  %903 = vmatprep.subr.mxu0 %v309_v38 }
  0x17   :  { %250 = vmatpush1.msra.mxu1 %v201_v17  ;;  %904 = vmatpush3.msra.mxu0 %v309_v38 }
  0x18   :  { %251 = vmatprep.subr.mxu1 %v981_v6  ;;  %905 = vmatprep.subr.mxu0 %v308_v40 }
  0x19   :  { %252 = vmatpush1.msra.mxu1 %v200_v18  ;;  %906 = vmatpush3.msra.mxu0 %v308_v40 }
  0x1a   :  { %253 = vmatprep.subr.mxu1 %v981_v6  ;;  %907 = vmatprep.subr.mxu0 %v307_v42 }
  0x1b   :  { %254 = vmatpush1.msra.mxu1 %v199_v19  ;;  %908 = vmatpush3.msra.mxu0 %v307_v42 }
  0x1c   :  { %255 = vmatprep.subr.mxu1 %v981_v6  ;;  %909 = vmatprep.subr.mxu0 %v306_v59 }
  0x1d   :  { %256 = vmatpush1.msra.mxu1 %v198_v20  ;;  %910 = vmatpush3.msra.mxu0 %v306_v59 }
  0x1e   :  { %257 = vmatprep.subr.mxu1 %v981_v6  ;;  %911 = vmatprep.subr.mxu0 %v305_v60 }
  0x1f   :  { %258 = vmatpush1.msra.mxu1 %v197_v21  ;;  %912 = vmatpush3.msra.mxu0 %v305_v60 }
  0x20   :  { %259 = vmatprep.subr.mxu1 %v981_v6  ;;  %913 = vmatprep.subr.mxu0 %v304_v61 }
  0x21   :  { %260 = vmatpush1.msra.mxu1 %v196_v22  ;;  %914 = vmatpush3.msra.mxu0 %v304_v61  ;;  %v832_v22 = vld [vmem:[%s1329_s6] ss:$0 sm:$0xff] }
  0x22   :  { %285 = vmatprep.subr.mxu1 %v981_v6 }
  0x23   :  { %286 = vmatpush2.msra.mxu1 %v215_v24 }
  0x24   :  { %287 = vmatprep.subr.mxu1 %v981_v6 }
  0x25   :  { %288 = vmatpush2.msra.mxu1 %v214_v26 }
  0x26   :  { %289 = vmatprep.subr.mxu1 %v981_v6 }
  0x27   :  { %290 = vmatpush2.msra.mxu1 %v213_v28 }
  0x28   :  { %291 = vmatprep.subr.mxu1 %v981_v6 }
  0x29   :  { %292 = vmatpush2.msra.mxu1 %v212_v31 }
  0x2a   :  { %948 = vmatprep.subr.mxu1 %v981_v6 }
  0xd1   :  { %v898_v25 = vpop.f32.mrf.mxu0 }
  0xd2   :  { %v144_v27 = vadd.f32 %v898_v25, %v826_v23 }
  0xd3   :  { %v138_v29 = vpop.f32.mrf.mxu0 }
  0xd4   :  { %153 = vst.msk [vmem:[#allocation2 + $0x12] sm:$0xff] %vm65_vm0, %v144_v27  ;;  %v139_v30 = vadd.f32 %v826_v23, %v138_v29 }
  0xd6   :  { %152 = vst.msk [vmem:[#allocation2 + $0x2] sm:$0xff] %vm65_vm0, %v139_v30  ;;  %v986_v30 = vmov 1966171168  }
  0xd7   :  { %v792_v31 = vunpack.c.l.s4 %v986_v30 }
  0xdb   :  { %v157_v32 = vld [vmem:[#allocation2 + $0x11] sm:$0xff] }
  0xdc   :  { %168 = vrot.lane.b32.xlu1 %v157_v32, %s982_s27  ;;  %v161_v41 = vld [vmem:[#allocation2 + $0x13] sm:$0xff]  ;;  %v794_v32 = vlaneseq }
  0xdd   :  { %v162_v34 = vld [vmem:[#allocation2 + $0x4] sm:$0xff]  ;;  %v159_v43 = vld [vmem:[#allocation2 + $0x12] sm:$0xff] }
  0xde   :  { %v156_v35 = vld [vmem:[#allocation2 + $0x1] sm:$0xff]  ;;  %830 = vmatprep.mubr.msk.f32.mxu1 %vm65_vm0, %v162_v34  ;;  %v155_v52 = vld [vmem:[#allocation2 + $0x10] sm:$0xff]  ;;  %v793_v34 = vunpack.c.0.s8 %v792_v31 }
  0xdf   :  { %166 = vrot.lane.b32.xlu0 %v156_v35, %s982_s27  ;;  %v160_v37 = vld [vmem:[#allocation2 + $0x3] sm:$0xff]  ;;  %v163_v53 = vld [vmem:[#allocation2 + $0x14] sm:$0xff]  ;;  %v795_v35 = vshrl.u32 %v794_v32, 7 }
  0xe0   :  { %182 = vrot.lane.b32.xlu1 %v160_v37, %s983_s18  ;;  %v158_v39 = vld [vmem:[#allocation2 + $0x2] sm:$0xff] }
  0xe1   :  { %v154_v46 = vld [vmem:[#allocation2] sm:$0xff] }
  0xe3   :  { %174 = vrot.lane.b32.xlu0 %v158_v39, %s984_s20 }
  0xe4   :  { %184 = vrot.lane.b32.xlu1 %v161_v41, %s983_s18 }
  0xe7   :  { %176 = vrot.lane.b32.xlu0 %v159_v43, %s984_s20 }
 0x14e   :  { %v169_v44 = vpop.permute.xlu1 %168 }
 0x14f   :  { %v189_v54 = vsel %vm65_vm0, %v155_v52, %v169_v44 }
 0x151   :  { %v167_v45 = vpop.permute.xlu0 %166 }
 0x152   :  { %v183_v47 = vpop.permute.xlu1 %182  ;;  %v188_v48 = vsel %vm65_vm0, %v154_v46, %v167_v45 }
 0x155   :  { %v175_v49 = vpop.permute.xlu0 %174 }
 0x156   :  { %v191_v50 = vsel %vm190_vm2, %v188_v48, %v175_v49  ;;  %v185_v56 = vpop.permute.xlu1 %184 }
 0x157   :  { %v194_v51 = vsel %vm193_vm3, %v191_v50, %v183_v47 }
 0x158   :  { %294 = vmatmul.mubr.f32.vlgmr.msra.gmra.mxu1 %v194_v51 }
 0x159   :  { %v177_v55 = vpop.permute.xlu0 %176  ;;  %831 = vmatprep.mubr.msk.f32.mxu1 %vm65_vm0, %v163_v53  ;;  %949 = vmatpush3.msra.mxu1 %v311_v33 }
 0x15a   :  { %v192_v57 = vsel %vm190_vm2, %v189_v54, %v177_v55  ;;  %950 = vmatprep.subr.mxu1 %v981_v6  ;;  %v450_v54 = vld [vmem:[%s1331_s11 + $0x18] sm:$0xff]  ;;  %v449_v55 = vld [vmem:[%s1331_s11 + $0x10] sm:$0xff] }
 0x15b   :  { %v195_v58 = vsel %vm193_vm3, %v192_v57, %v185_v56  ;;  %951 = vmatpush3.msra.mxu1 %v310_v36  ;;  %v796_v36 = vsub.s32 %v793_v34, %v795_v35  ;;  %918 = vmatprep.subr.mxu0 %v450_v54  ;;  %v448_v56 = vld [vmem:[%s1331_s11 + $0x8] sm:$0xff]  ;;  %v447_v57 = vld [vmem:[%s1331_s11] sm:$0xff] }
 0x15c   :  { %299 = vmatmul.mubr.f32.gmra.mxu1 %v195_v58  ;;  %952 = vmatprep.subr.mxu1 %v981_v6  ;;  %v548_v58 = vld [vmem:[%s1332_s13 + $0x38] sm:$0xff] }
 0x15d   :  { %953 = vmatpush3.msra.mxu1 %v309_v38  ;;  %964 = vmatprep.mubr.msk.f32.mxu1 %vm985_vm4, %v981_v6 }
 0x15e   :  { %954 = vmatprep.subr.mxu1 %v981_v6 }
 0x15f   :  { %955 = vmatpush3.msra.mxu1 %v308_v40 }
 0x160   :  { %956 = vmatprep.subr.mxu1 %v981_v6 }
 0x161   :  { %957 = vmatpush3.msra.mxu1 %v307_v42 }
 0x162   :  { %958 = vmatprep.subr.mxu1 %v981_v6 }
 0x163   :  { %959 = vmatpush3.msra.mxu1 %v306_v59 }
 0x164   :  { %960 = vmatprep.subr.mxu1 %v981_v6 }
 0x165   :  { %961 = vmatpush3.msra.mxu1 %v305_v60 }
 0x166   :  { %962 = vmatprep.subr.mxu1 %v981_v6 }
 0x167   :  { %963 = vmatpush3.msra.mxu1 %v304_v61 }
 0x218   :  { %v295_v63 = vpop.f32.mrf.mxu1 }
 0x219   :  { %v296_v0 = vadd.f32 %v829_v62, %v295_v63 }
 0x21a   :  { %v297_v1 = vpop.f32.mrf.mxu1 }
 0x21b   :  { %v685_v3 = vsel %vm190_vm2, %v296_v0, -inf  ;;  %915 = vmatprep.mubr.msk.f32.mxu0 %vm190_vm2, %v296_v0 }
 0x21c   :  { %v686_v4 = vrot.slane %v685_v3, 4  ;;  %v300_v7 = vpop.f32.mrf.mxu1 }
 0x21d   :  { %v301_v8 = vadd.f32 %v829_v62, %v300_v7  ;;  %v836_v7 = vld [vmem:[%s1334_s8] ss:$0 sm:$0xff] }
 0x21e   :  { %v687_v9 = vmax.f32 %v685_v3, %v686_v4  ;;  %v302_v10 = vpop.f32.mrf.mxu1  ;;  %v835_v3 = vld [vmem:[%s1333_s7] ss:$0 sm:$0xff] }
 0x21f   :  { %v692_v11 = vsel %vm190_vm2, %v301_v8, -inf  ;;  %916 = vmatmul.mubr.msk.f32.vlgmr.msra.gmra.mxu0 %vm190_vm2, %v301_v8 }
 0x220   :  { %v688_v6 = vrot.slane %v687_v9, 2  ;;  %v693_v12 = vrot.slane %v692_v11, 4  ;;  %919 = vmatpush3.msra.mxu0 %v450_v54  ;;  %v844_v54 = vld [vmem:[%s1338_s10] ss:$0 sm:$0xff] }
 0x221   :  { %920 = vmatprep.subr.mxu0 %v449_v55 }
 0x222   :  { %v689_v13 = vmax.f32 %v687_v9, %v688_v6  ;;  %v694_v14 = vmax.f32 %v692_v11, %v693_v12  ;;  %921 = vmatpush3.msra.mxu0 %v449_v55 }
 0x223   :  { %922 = vmatprep.subr.mxu0 %v448_v56 }
 0x224   :  { %v695_v15 = vrot.slane %v694_v14, 2  ;;  %v690_v16 = vrot.slane %v689_v13, 1  ;;  %923 = vmatpush3.msra.mxu0 %v448_v56 }
 0x225   :  { %924 = vmatprep.subr.mxu0 %v447_v57 }
 0x226   :  { %v696_v17 = vmax.f32 %v694_v14, %v695_v15  ;;  %v691_v19 = vmax.f32 %v689_v13, %v690_v16  ;;  %925 = vmatpush3.msra.mxu0 %v447_v57  ;;  %v547_v13 = vld [vmem:[%s1332_s13 + $0x30] sm:$0xff]  ;;  %v546_v14 = vld [vmem:[%s1332_s13 + $0x28] sm:$0xff]  ;;  %v545_v15 = vld [vmem:[%s1332_s13 + $0x20] sm:$0xff] }
 0x227   :  { %929 = vmatprep.subr.mxu0 %v548_v58  ;;  %v544_v16 = vld [vmem:[%s1332_s13 + $0x18] sm:$0xff] }
 0x228   :  { %v697_v18 = vrot.slane %v696_v17, 1 }
 0x22a   :  { %v698_v20 = vmax.f32 %v696_v17, %v697_v18  ;;  %v543_v17 = vld [vmem:[%s1332_s13 + $0x10] sm:$0xff]  ;;  %v542_v18 = vld [vmem:[%s1332_s13 + $0x8] sm:$0xff] }
 0x22c   :  { %v717_v21 = vsel %vm716_vm5, %v698_v20, %v691_v19  ;;  %v541_v19 = vld [vmem:[%s1332_s13] sm:$0xff] }
 0x22d   :  { %965 = vmatmul.mubr.msk.f32.vlgmr.msra.gmra.mxu1 %vm190_vm2, %v717_v21  ;;  %v837_v20 = vld [vmem:[%s1335_s12] ss:$0 sm:$0xff] }
 0x2df   :  { %v917_v23 = vpop.f32.mrf.mxu0 }
 0x2e0   :  { %v397_v24 = vadd.f32 %v917_v23, %v832_v22 }
 0x2e1   :  { %v391_v25 = vpop.f32.mrf.mxu0 }
 0x2e2   :  { %v392_v26 = vadd.f32 %v832_v22, %v391_v25  ;;  %v401_v27 = vadd.f32 %v397_v24, %v1094_v5 }
 0x2e4   :  { %v407_v28 = vsel %vm65_vm0, %v401_v27, 0.0  ;;  %v400_v29 = vadd.f32 %v392_v26, %v1081_v2 }
 0x2e5   :  { %408 = vadd.xlane.f32.xlu1 %v407_v28 }
 0x2e6   :  { %v404_v33 = vsel %vm65_vm0, %v400_v29, 0.0 }
 0x2e7   :  { %405 = vadd.xlane.f32.xlu0 %v404_v33 }
 0x2ed   :  { %v786_v37 = vpop.f32.mrf.mxu1 }
 0x2ee   :  { %v787_v38 = vadd.f32 %v832_v22, %v786_v37 }
 0x2ef   :  { %v966_v39 = vpop.f32.mrf.mxu1 }
 0x2f0   :  { %v797_v40 = vrot.slane %v787_v38, %v796_v36 }
 0x2f2   :  { %v798_v41 = vcombine.high %v797_v40, %v797_v40  ;;  %v805_v42 = vrot.slane %v797_v40, %v796_v36 }
 0x2f4   :  { %v812_v43 = vrot.slane %v798_v41, %v796_v36  ;;  %816 = vst.msk [vmem:[%s1330_s16] sm:$0x1] %vm815_vm6, %v805_v42 }
 0x2f6   :  { %817 = vst.msk [vmem:[%s1330_s16 + $0x1] sm:$0x1] %vm815_vm6, %v812_v43 }
 0x36e   :  { %v409_v44 = vpop.xlane.xlu1 %408 }
 0x36f   :  { %v412_v45 = vmul.f32 0.03125, %v409_v44 }
 0x370   :  { %v406_v46 = vpop.xlane.xlu0 %405 }
 0x371   :  { %v411_v47 = vmul.f32 0.03125, %v406_v46  ;;  %v414_v48 = vsub.f32 %v401_v27, %v412_v45  ;;  %v840_v27 = vld [vmem:[%s1336_s14] ss:$0 sm:$0xff] }
 0x373   :  { %v413_v49 = vsub.f32 %v400_v29, %v411_v47  ;;  %v416_v52 = vmul.f32 %v414_v48, %v414_v48 }
 0x375   :  { %v415_v50 = vmul.f32 %v413_v49, %v413_v49  ;;  %v420_v53 = vsel %vm65_vm0, %v416_v52, 0.0 }
 0x377   :  { %v417_v51 = vsel %vm65_vm0, %v415_v50, 0.0 }
 0x378   :  { %418 = vadd.xlane.f32.xlu0 %v417_v51  ;;  %v843_v51 = vld [vmem:[%s1337_s9] ss:$0 sm:$0xff] }
 0x37c   :  { %421 = vadd.xlane.f32.xlu0 %v420_v53 }
 0x401   :  { %v419_v59 = vpop.xlane.xlu0 %418 }
 0x402   :  { %v423_v60 = vmul.f32 0.03125, %v419_v59 }
 0x404   :  { %v425_v61 = vadd.f32 1e-05, %v423_v60 }
 0x405   :  { %v422_v62 = vpop.xlane.xlu0 %421 }
 0x406   :  { %973 = vrsqrt.f32 %v425_v61  ;;  %v424_v63 = vmul.f32 0.03125, %v422_v62 }
 0x408   :  { %v426_v0 = vadd.f32 1e-05, %v424_v63 }
 0x40a   :  { %975 = vrsqrt.f32 %v426_v0 }
 0x413   :  { %v974_v1 = vpop.eup %973 }
 0x414   :  { %v429_v4 = vmul.f32 %v974_v1, %v413_v49 }
 0x416   :  { %v437_v8 = vmul.f32 %v835_v3, %v429_v4 }
 0x417   :  { %v976_v9 = vpop.eup %975 }
 0x418   :  { %v430_v10 = vmul.f32 %v976_v9, %v414_v48  ;;  %v445_v11 = vadd.f32 %v836_v7, %v437_v8 }
 0x41a   :  { %v438_v6 = vmul.f32 %v835_v3, %v430_v10  ;;  %926 = vmatprep.mubr.msk.f32.mxu0 %vm65_vm0, %v445_v11 }
 0x41c   :  { %v446_v12 = vadd.f32 %v836_v7, %v438_v6 }
 0x41e   :  { %927 = vmatmul.mubr.msk.f32.vlgmr.msra.gmra.mxu0 %vm65_vm0, %v446_v12 }
 0x41f   :  { %930 = vmatpush3.msra.mxu0 %v548_v58 }
 0x420   :  { %931 = vmatprep.subr.mxu0 %v547_v13 }
 0x421   :  { %932 = vmatpush3.msra.mxu0 %v547_v13 }
 0x422   :  { %933 = vmatprep.subr.mxu0 %v546_v14 }
 0x423   :  { %934 = vmatpush3.msra.mxu0 %v546_v14 }
 0x424   :  { %935 = vmatprep.subr.mxu0 %v545_v15 }
 0x425   :  { %936 = vmatpush3.msra.mxu0 %v545_v15 }
 0x426   :  { %937 = vmatprep.subr.mxu0 %v544_v16 }
 0x427   :  { %938 = vmatpush3.msra.mxu0 %v544_v16 }
 0x428   :  { %939 = vmatprep.subr.mxu0 %v543_v17 }
 0x429   :  { %940 = vmatpush3.msra.mxu0 %v543_v17 }
 0x42a   :  { %941 = vmatprep.subr.mxu0 %v542_v18 }
 0x42b   :  { %942 = vmatpush3.msra.mxu0 %v542_v18 }
 0x42c   :  { %943 = vmatprep.subr.mxu0 %v541_v19 }
 0x42d   :  { %944 = vmatpush3.msra.mxu0 %v541_v19 }
 0x4de   :  { %v928_v21 = vpop.f32.mrf.mxu0 }
 0x4df   :  { %v536_v22 = vadd.f32 %v928_v21, %v837_v20 }
 0x4e0   :  { %v530_v23 = vpop.f32.mrf.mxu0 }
 0x4e1   :  { %v531_v24 = vadd.f32 %v837_v20, %v530_v23  ;;  %v540_v26 = vmax.f32 %v536_v22, 0.0 }
 0x4e3   :  { %v539_v25 = vmax.f32 %v531_v24, 0.0 }
 0x4e5   :  { %945 = vmatprep.mubr.msk.f32.mxu0 %vm190_vm2, %v539_v25 }
 0x4e6   :  { %946 = vmatmul.mubr.msk.f32.vlgmr.msra.gmra.mxu0 %vm190_vm2, %v540_v26 }
 0x5a6   :  { %v947_v28 = vpop.f32.mrf.mxu0 }
 0x5a7   :  { %v634_v29 = vadd.f32 %v947_v28, %v840_v27 }
 0x5a8   :  { %v628_v30 = vpop.f32.mrf.mxu0 }
 0x5a9   :  { %v629_v31 = vadd.f32 %v840_v27, %v628_v30  ;;  %v638_v32 = vadd.f32 %v634_v29, %v1094_v5 }
 0x5ab   :  { %v644_v33 = vsel %vm65_vm0, %v638_v32, 0.0  ;;  %v637_v34 = vadd.f32 %v629_v31, %v1081_v2 }
 0x5ac   :  { %645 = vadd.xlane.f32.xlu0 %v644_v33 }
 0x5ad   :  { %v641_v35 = vsel %vm65_vm0, %v637_v34, 0.0 }
 0x5ae   :  { %642 = vadd.xlane.f32.xlu1 %v641_v35 }
 0x635   :  { %v646_v36 = vpop.xlane.xlu0 %645 }
 0x636   :  { %v648_v37 = vmul.f32 0.03125, %v646_v36 }
 0x637   :  { %v643_v38 = vpop.xlane.xlu1 %642 }
 0x638   :  { %v650_v39 = vsub.f32 %v638_v32, %v648_v37  ;;  %v647_v40 = vmul.f32 0.03125, %v643_v38 }
 0x63a   :  { %v649_v41 = vsub.f32 %v637_v34, %v647_v40  ;;  %v652_v42 = vmul.f32 %v650_v39, %v650_v39 }
 0x63c   :  { %v656_v43 = vsel %vm65_vm0, %v652_v42, 0.0  ;;  %v651_v44 = vmul.f32 %v649_v41, %v649_v41 }
 0x63d   :  { %657 = vadd.xlane.f32.xlu0 %v656_v43 }
 0x63e   :  { %v653_v5 = vsel %vm65_vm0, %v651_v44, 0.0 }
 0x63f   :  { %654 = vadd.xlane.f32.xlu1 %v653_v5 }
 0x6c6   :  { %v658_v45 = vpop.xlane.xlu0 %657 }
 0x6c7   :  { %v660_v2 = vmul.f32 0.03125, %v658_v45 }
 0x6c8   :  { %v655_v46 = vpop.xlane.xlu1 %654 }
 0x6c9   :  { %v662_v47 = vadd.f32 1e-05, %v660_v2  ;;  %v659_v48 = vmul.f32 0.03125, %v655_v46 }
 0x6cb   :  { %977 = vrsqrt.f32 %v662_v47  ;;  %v661_v49 = vadd.f32 1e-05, %v659_v48 }
 0x6cd   :  { %979 = vrsqrt.f32 %v661_v49 }
 0x6d8   :  { %v978_v50 = vpop.eup %977 }
 0x6d9   :  { %v666_v52 = vmul.f32 %v978_v50, %v650_v39 }
 0x6da   :  { %v980_v53 = vpop.eup %979 }
 0x6db   :  { %v674_v55 = vmul.f32 %v843_v51, %v666_v52  ;;  %v665_v56 = vmul.f32 %v980_v53, %v649_v41 }
 0x6dd   :  { %v682_v57 = vadd.f32 %v844_v54, %v674_v55  ;;  %v673_v58 = vmul.f32 %v843_v51, %v665_v56 }
 0x6df   :  { %684 = vst.msk [vmem:[%s1339_s15 + $0x8] sm:$0xff] %vm65_vm0, %v682_v57  ;;  %v681_v59 = vadd.f32 %v844_v54, %v673_v58 }
 0x6e1   :  { %683 = vst.msk [vmem:[%s1339_s15] sm:$0xff] %vm65_vm0, %v681_v59 }

// kernel: _lambda_.13
= control target key start
LH: loop header
LB: loop body
LE: loop exit
PB: predicated region body
PF: predicated region fallthrough
CT: control target
= control target key end

     0   :  { %vm17_vm0 = vcmask 261120   ;;  %v193_v1 = vmov 0.0   ;;  %vm194_vm1 = vmmov 0   ;;  %s246_s0 = inlined_call_operand.vmem [shape: f32[2,8,32], index: 0, kind: input, shape index: {}]   ;;  %s247_s1 = inlined_call_operand.vmem [shape: f32[32,2], index: 1, kind: input, shape index: {}]   ;;  %s248_s2 = inlined_call_operand.vmem [shape: f32[1,2], index: 2, kind: input, shape index: {}]   ;;  %s249_s3 = inlined_call_operand.hbm [shape: f32[2,2], index: 3, kind: output, shape index: {}]  }
   0x1   :  { %v35_v0 = vld [vmem:[%s247_s1 + $0x18] sm:$0xff]  ;;  %153 = vmatprep.subr.mxu0 %v193_v1  ;;  %v34_v2 = vld [vmem:[%s247_s1 + $0x10] sm:$0xff]  ;;  %161 = vmatprep.mubr.msk.f32.mxu0 %vm194_vm1, %v193_v1  ;;  %v15_v3 = vld [vmem:[%s246_s0] sm:$0xff] }
   0x2   :  { %v16_v4 = vld [vmem:[%s246_s0 + $0x8] sm:$0xff]  ;;  %154 = vmatpush3.msra.mxu0 %v35_v0  ;;  %v18_v5 = vsel %vm17_vm0, %v15_v3, -inf }
   0x3   :  { %v25_v6 = vsel %vm17_vm0, %v16_v4, -inf }
   0x4   :  { %8 = vsyncpa [#allocation3], 0  ;;  %155 = vmatprep.subr.mxu0 %v193_v1  ;;  %v33_v7 = vld [vmem:[%s247_s1 + $0x8] sm:$0xff]  ;;  %v19_v8 = vrot.slane %v18_v5, 4  ;;  %v26_v9 = vrot.slane %v25_v6, 4  ;;  %v32_v10 = vld [vmem:[%s247_s1] sm:$0xff] }
   0x5   :  { %156 = vmatpush3.msra.mxu0 %v34_v2  ;;  %vm45_vm2 = vcmask 1041409   ;;  %v146_v22 = vld [vmem:[%s248_s2] ss:$0 sm:$0xff]  ;;  %vm119_vm3 = vcmask 9216   ;;  %s195_s1 = smov [#allocation2]  }
   0x6   :  { %157 = vmatprep.subr.mxu0 %v193_v1  ;;  %v20_v11 = vmax.f32 %v18_v5, %v19_v8  ;;  %v27_v12 = vmax.f32 %v25_v6, %v26_v9  ;;  %s138_s25 = sshll.u32 %s195_s1, 4  ;;  %s139_s25 = int_to_ptr.vmem [resolvable:$true] %s138_s25 }
   0x7   :  { %158 = vmatpush3.msra.mxu0 %v33_v7  ;;  %s171_s2 = scalar_lea.vmem %s139_s25, 32  ;;  %p176_p1 = scmp.lt.s32.totalorder %s139_s25, %s139_s25 }
   0x8   :  { %159 = vmatprep.subr.mxu0 %v193_v1  ;;  %v21_v13 = vrot.slane %v20_v11, 2  ;;  %v28_v14 = vrot.slane %v27_v12, 2  ;;  %p172_p0 = scmp.ne.s32.totalorder %s139_s25, %s171_s2  ;;  %p177_p2 = scmp.lt.s32.totalorder %s171_s2, %s171_s2 }
   0x9   :  { %160 = vmatpush3.msra.mxu0 %v32_v10 }
   0xa   :  { %v22_v15 = vmax.f32 %v20_v11, %v21_v13  ;;  %v29_v16 = vmax.f32 %v27_v12, %v28_v14  ;;  %p178_p3 = por %p177_p2, %p176_p1 }
   0xc   :  { %v23_v17 = vrot.slane %v22_v15, 1  ;;  %v30_v18 = vrot.slane %v29_v16, 1  ;;  %p179_p4 = pnand %p178_p3, %p172_p0 }
   0xe   :  { %v24_v19 = vmax.f32 %v22_v15, %v23_v17  ;;  %v31_v20 = vmax.f32 %v29_v16, %v30_v18 }
  0x10   :  { %v46_v21 = vsel %vm45_vm2, %v31_v20, %v24_v19 }
  0x11   :  { %162 = vmatmul.mubr.msk.f32.vlgmr.msra.gmra.mxu0 %vm17_vm0, %v46_v21 }
  0xd1   :  { %v115_v23 = vpop.f32.mrf.mxu0 }
  0xd2   :  { %v116_v24 = vadd.f32 %v146_v22, %v115_v23 }
  0xd3   :  { %v163_v25 = vpop.f32.mrf.mxu0 }
  0xd4   :  { %v120_v26 = vsel %vm119_vm3, %v116_v24, -inf }
  0xd5   :  { %121 = vmax.xlane.f32.xlu0 %v120_v26 }
 0x15e   :  { %v122_v27 = vpop.xlane.xlu0 %121 }
 0x15f   :  { %v123_v28 = vsub.f32 %v116_v24, %v122_v27 }
 0x161   :  { %v124_v29 = vmul.f32 1.442695, %v123_v28 }
 0x163   :  { %167 = vpow2.f32 %v124_v29 }
 0x170   :  { %v168_v30 = vpop.eup %167 }
 0x171   :  { %v126_v31 = vsel %vm119_vm3, %v168_v30, 0.0 }
 0x172   :  { %127 = vadd.xlane.f32.xlu0 %v126_v31 }
 0x1fb   :  { %v128_v32 = vpop.xlane.xlu0 %127 }
 0x1fc   :  { %169 = vrcp.f32 %v128_v32 }
 0x209   :  { %v170_v33 = vpop.eup %169 }
 0x20a   :  { %v130_v34 = vmul.f32 %v170_v33, %v168_v30 }
 0x20c   :  { %131 = vst.msk [vmem:[#allocation2] sm:$0x3] %vm119_vm3, %v130_v34 }
 0x20d   :  { %182 = shalt.err (!%p179_p4)
}
 0x20e   :  { %141 = dma.vmem_to_hbm [thread:$0]  %s139_s25, 32, %s249_s3, [#allocation3]  }
 0x20f   :  { %191 = dma.done.wait [#allocation3], 32  }
 0x210   :  { %192 = vsyncadd [#allocation3], 4294967264 }
 0x211   :  { %145 = vsyncpa [#allocation3], 1 }

// kernel: _lambda_.11
= control target key start
LH: loop header
LB: loop body
LE: loop exit
PB: predicated region body
PF: predicated region fallthrough
CT: control target
= control target key end

     0   :  { %vm32_vm0 = vcmask 1041409   ;;  %v1744_v2 = vmov 0.0   ;;  %vm1745_vm1 = vmmov 0   ;;  %s1746_s21 = smov 32   ;;  %s1747_s26 = smov 64   ;;  %vm43_vm2 = vcmask 261120   ;;  %s2471_s0 = inlined_call_operand.vmem [shape: f32[2,8,32], index: 0, kind: input, shape index: {}]   ;;  %s2472_s1 = inlined_call_operand.vmem [shape: f32[96,128], index: 1, kind: input, shape index: {}]   ;;  %s2473_s2 = inlined_call_operand.vmem [shape: f32[1,128], index: 2, kind: input, shape index: {}]   ;;  %s2474_s3 = inlined_call_operand.vmem [shape: f32[2,8,32], index: 3, kind: output, shape index: {}]  }
   0x1   :  { %v1775_v0 = vld [vmem:[%s2471_s0] sm:$0xff]  ;;  %v1780_v1 = vld [vmem:[%s2471_s0 + $0x8] sm:$0xff]  ;;  %1456 = vmatprep.subr.mxu0 %v1744_v2  ;;  %v1786_v3 = vld [vmem:[%s2472_s1 + $0x58] sm:$0xff]  ;;  %1483 = vmatprep.subr.mxu1 %v1744_v2  ;;  %vm45_vm3 = vcmask 523264   ;;  %vm53_vm4 = vcmask 785408   ;;  %s1748_s15 = smov 96  }
   0x2   :  { %v31_v4 = vrot.slane %v1780_v1, 7  ;;  %v37_v5 = vrot.slane %v1775_v0, 7  ;;  %v38_v6 = vrot.slane %v1780_v1, 6  ;;  %1457 = vmatpush3.msra.mxu0 %v1786_v3  ;;  %v1796_v7 = vld [vmem:[%s2472_s1 + $0x50] sm:$0xff]  ;;  %1480 = vmatprep.mubr.msk.f32.mxu0 %vm1745_vm1, %v1744_v2  ;;  %v1804_v8 = vld [vmem:[%s2472_s1 + $0x48] sm:$0xff]  ;;  %v1819_v10 = vld [vmem:[%s2472_s1 + $0x40] sm:$0xff] }
   0x3   :  { %1458 = vmatprep.subr.mxu0 %v1744_v2  ;;  %1484 = vmatpush3.msra.mxu1 %v1786_v3  ;;  %v1830_v12 = vld [vmem:[%s2472_s1 + $0x38] sm:$0xff]  ;;  %v1841_v13 = vld [vmem:[%s2472_s1 + $0x30] sm:$0xff]  ;;  %v1849_v14 = vld [vmem:[%s2472_s1 + $0x28] sm:$0xff]  ;;  %s1749_s16 = smov 16   ;;  %v206_v40 = vrot.slane %v1775_v0, 1  ;;  %v211_v41 = vrot.slane %v1775_v0, 6 }
   0x4   :  { %v1809_v9 = vsel %vm32_vm0, %v31_v4, %v1775_v0  ;;  %1459 = vmatpush3.msra.mxu0 %v1796_v7  ;;  %1485 = vmatprep.subr.mxu1 %v1744_v2  ;;  %v1822_v11 = vsel %vm32_vm0, %v38_v6, %v37_v5  ;;  %v1858_v15 = vld [vmem:[%s2472_s1 + $0x20] sm:$0xff]  ;;  %v1867_v16 = vld [vmem:[%s2472_s1 + $0x18] sm:$0xff]  ;;  %v1876_v17 = vld [vmem:[%s2472_s1 + $0x10] sm:$0xff]  ;;  %v212_v42 = vrot.slane %v1780_v1, 5  ;;  %vm217_vm5 = vcmask 130048  }
   0x5   :  { %34 = vrot.lane.b32.xlu0 %v1809_v9, %s1746_s21  ;;  %1460 = vmatprep.subr.mxu0 %v1744_v2  ;;  %v1885_v18 = vld [vmem:[%s2472_s1 + $0x8] sm:$0xff]  ;;  %v1894_v19 = vld [vmem:[%s2472_s1] sm:$0xff]  ;;  %v1962_v44 = vsel %vm32_vm0, %v1780_v1, %v206_v40  ;;  %vm188_vm6 = vcmask 122880   ;;  %vm197_vm7 = vcmask 254080  }
   0x6   :  { %1461 = vmatpush3.msra.mxu0 %v1804_v8  ;;  %1486 = vmatpush3.msra.mxu1 %v1796_v7  ;;  %v1942_v24 = vld [vmem:[%s2473_s2] ss:$0 sm:$0xff]  ;;  %s1750_s2 = smov 80   ;;  %v1965_v45 = vsel %vm32_vm0, %v212_v42, %v211_v41 }
   0x7   :  { %1462 = vmatprep.subr.mxu0 %v1744_v2  ;;  %1487 = vmatprep.subr.mxu1 %v1744_v2 }
   0x8   :  { %1463 = vmatpush3.msra.mxu0 %v1819_v10  ;;  %1488 = vmatpush3.msra.mxu1 %v1804_v8 }
   0x9   :  { %40 = vrot.lane.b32.xlu0 %v1822_v11, %s1747_s26  ;;  %1464 = vmatprep.subr.mxu0 %v1744_v2 }
   0xa   :  { %1465 = vmatpush3.msra.mxu0 %v1830_v12  ;;  %1489 = vmatprep.subr.mxu1 %v1744_v2 }
   0xb   :  { %1466 = vmatprep.subr.mxu0 %v1744_v2  ;;  %1490 = vmatpush3.msra.mxu1 %v1819_v10 }
   0xc   :  { %1467 = vmatpush3.msra.mxu0 %v1841_v13  ;;  %1491 = vmatprep.subr.mxu1 %v1744_v2 }
   0xd   :  { %1468 = vmatprep.subr.mxu0 %v1744_v2  ;;  %1492 = vmatpush3.msra.mxu1 %v1830_v12 }
   0xe   :  { %1469 = vmatpush3.msra.mxu0 %v1849_v14  ;;  %1493 = vmatprep.subr.mxu1 %v1744_v2 }
   0xf   :  { %1470 = vmatprep.subr.mxu0 %v1744_v2  ;;  %1494 = vmatpush3.msra.mxu1 %v1841_v13 }
  0x10   :  { %1471 = vmatpush3.msra.mxu0 %v1858_v15  ;;  %1495 = vmatprep.subr.mxu1 %v1744_v2 }
  0x11   :  { %1472 = vmatprep.subr.mxu0 %v1744_v2  ;;  %1496 = vmatpush3.msra.mxu1 %v1849_v14 }
  0x12   :  { %1473 = vmatpush3.msra.mxu0 %v1867_v16  ;;  %1497 = vmatprep.subr.mxu1 %v1744_v2 }
  0x13   :  { %1474 = vmatprep.subr.mxu0 %v1744_v2  ;;  %1498 = vmatpush3.msra.mxu1 %v1858_v15 }
  0x14   :  { %1475 = vmatpush3.msra.mxu0 %v1876_v17  ;;  %1499 = vmatprep.subr.mxu1 %v1744_v2 }
  0x15   :  { %1476 = vmatprep.subr.mxu0 %v1744_v2  ;;  %1500 = vmatpush3.msra.mxu1 %v1867_v16 }
  0x16   :  { %1477 = vmatpush3.msra.mxu0 %v1885_v18  ;;  %1501 = vmatprep.subr.mxu1 %v1744_v2 }
  0x17   :  { %1478 = vmatprep.subr.mxu0 %v1744_v2  ;;  %1502 = vmatpush3.msra.mxu1 %v1876_v17 }
  0x18   :  { %1479 = vmatpush3.msra.mxu0 %v1894_v19  ;;  %1503 = vmatprep.subr.mxu1 %v1744_v2 }
  0x19   :  { %1504 = vmatpush3.msra.mxu1 %v1885_v18  ;;  %1507 = vmatprep.mubr.msk.f32.mxu1 %vm1745_vm1, %v1744_v2 }
  0x1a   :  { %1505 = vmatprep.subr.mxu1 %v1744_v2  ;;  %1510 = vmatprep.subr.mxu0 %v1744_v2 }
  0x1b   :  { %1506 = vmatpush3.msra.mxu1 %v1894_v19 }
  0x1c   :  { %1537 = vmatprep.subr.mxu1 %v1744_v2 }
  0x77   :  { %v35_v20 = vpop.permute.xlu0 %34 }
  0x78   :  { %v44_v21 = vsel %vm43_vm2, 0.0, %v35_v20 }
  0x7b   :  { %v41_v22 = vpop.permute.xlu0 %40 }
  0x7c   :  { %v46_v23 = vsel %vm45_vm3, %v44_v21, %v41_v22  ;;  %v371_v21 = vrot.slane %v1775_v0, 2  ;;  %v372_v22 = vrot.slane %v1780_v1, 1 }
  0x7d   :  { %1481 = vmatmul.mubr.msk.f32.vlgmr.msra.gmra.mxu0 %vm53_vm4, %v46_v23  ;;  %v377_v23 = vrot.slane %v1775_v0, 5 }
  0x7e   :  { %1511 = vmatpush3.msra.mxu0 %v1786_v3  ;;  %1534 = vmatprep.mubr.msk.f32.mxu0 %vm1745_vm1, %v1744_v2 }
  0x7f   :  { %1512 = vmatprep.subr.mxu0 %v1744_v2 }
  0x80   :  { %1513 = vmatpush3.msra.mxu0 %v1796_v7 }
  0x81   :  { %1514 = vmatprep.subr.mxu0 %v1744_v2 }
  0x82   :  { %1515 = vmatpush3.msra.mxu0 %v1804_v8 }
  0x83   :  { %1516 = vmatprep.subr.mxu0 %v1744_v2 }
  0x84   :  { %1517 = vmatpush3.msra.mxu0 %v1819_v10 }
  0x85   :  { %1518 = vmatprep.subr.mxu0 %v1744_v2 }
  0x86   :  { %1519 = vmatpush3.msra.mxu0 %v1830_v12 }
  0x87   :  { %1520 = vmatprep.subr.mxu0 %v1744_v2 }
  0x88   :  { %1521 = vmatpush3.msra.mxu0 %v1841_v13 }
  0x89   :  { %1522 = vmatprep.subr.mxu0 %v1744_v2 }
  0x8a   :  { %1523 = vmatpush3.msra.mxu0 %v1849_v14 }
  0x8b   :  { %1524 = vmatprep.subr.mxu0 %v1744_v2 }
  0x8c   :  { %1525 = vmatpush3.msra.mxu0 %v1858_v15 }
  0x8d   :  { %1526 = vmatprep.subr.mxu0 %v1744_v2 }
  0x8e   :  { %1527 = vmatpush3.msra.mxu0 %v1867_v16 }
  0x8f   :  { %1528 = vmatprep.subr.mxu0 %v1744_v2 }
  0x90   :  { %1529 = vmatpush3.msra.mxu0 %v1876_v17 }
  0x91   :  { %1530 = vmatprep.subr.mxu0 %v1744_v2 }
  0x92   :  { %1531 = vmatpush3.msra.mxu0 %v1885_v18 }
  0x93   :  { %1532 = vmatprep.subr.mxu0 %v1744_v2 }
  0x94   :  { %1533 = vmatpush3.msra.mxu0 %v1894_v19 }
  0x95   :  { %1564 = vmatprep.subr.mxu0 %v1744_v2 }
 0x13d   :  { %v123_v25 = vpop.f32.mrf.mxu0 }
 0x13e   :  { %v124_v26 = vadd.f32 %v1942_v24, %v123_v25  ;;  %v378_v25 = vrot.slane %v1780_v1, 4 }
 0x13f   :  { %v1482_v27 = vpop.f32.mrf.mxu0 }
 0x140   :  { %1680 = vtanh.f32 %v124_v26  ;;  %v1337_v29 = vmul.f32 -1.442695, %v124_v26  ;;  %v2020_v27 = vsel %vm32_vm0, %v372_v22, %v371_v21 }
 0x142   :  { %1682 = vpow2.f32 %v1337_v29 }
 0x14d   :  { %v1681_v28 = vpop.eup %1680 }
 0x14e   :  { %136 = vrot.lane.b32.xlu1 %v1681_v28, %s1748_s15  ;;  %v2023_v28 = vsel %vm32_vm0, %v378_v25, %v377_v23 }
 0x14f   :  { %v1683_v30 = vpop.eup %1682 }
 0x150   :  { %v130_v31 = vadd.f32 1.0, %v1683_v30 }
 0x152   :  { %1684 = vrcp.f32 %v130_v31 }
 0x15f   :  { %v1685_v32 = vpop.eup %1684 }
 0x160   :  { %v134_v35 = vmul.f32 0.0, %v1685_v32 }
 0x1c0   :  { %v137_v33 = vpop.permute.xlu1 %136 }
 0x1c1   :  { %v139_v34 = vmul.f32 %v1685_v32, %v137_v33 }
 0x1c3   :  { %141 = vrot.lane.b32.xlu1 %v139_v34, %s1749_s16 }
 0x235   :  { %v142_v36 = vpop.permute.xlu1 %141 }
 0x236   :  { %v1947_v37 = vadd.f32 %v142_v36, %v134_v35 }
 0x238   :  { %1686 = vtanh.f32 %v1947_v37 }
 0x245   :  { %v1687_v38 = vpop.eup %1686 }
 0x246   :  { %147 = vrot.lane.b32.xlu0 %v1687_v38, %s1746_s21 }
 0x2b8   :  { %v148_v39 = vpop.permute.xlu0 %147 }
 0x2b9   :  { %v1954_v43 = vmul.f32 %v1685_v32, %v148_v39 }
 0x2bb   :  { %203 = vrot.lane.b32.xlu0 %v1954_v43, %s1746_s21  ;;  %200 = vrot.lane.b32.xlu1 %v1954_v43, %s1750_s2 }
 0x2bf   :  { %208 = vrot.lane.b32.xlu1 %v1962_v44, %s1746_s21  ;;  %214 = vrot.lane.b32.xlu0 %v1965_v45, %s1747_s26 }
 0x32d   :  { %v204_v46 = vpop.permute.xlu0 %203  ;;  %v201_v47 = vpop.permute.xlu1 %200 }
 0x32e   :  { %v218_v48 = vsel %vm217_vm5, %v201_v47, %v204_v46 }
 0x331   :  { %v209_v49 = vpop.permute.xlu1 %208  ;;  %v215_v50 = vpop.permute.xlu0 %214 }
 0x332   :  { %v219_v51 = vsel %vm43_vm2, %v218_v48, %v209_v49 }
 0x333   :  { %v220_v52 = vsel %vm45_vm3, %v219_v51, %v215_v50 }
 0x334   :  { %1508 = vmatmul.mubr.msk.f32.vlgmr.msra.gmra.mxu1 %vm53_vm4, %v220_v52 }
 0x335   :  { %1538 = vmatpush3.msra.mxu1 %v1786_v3  ;;  %1561 = vmatprep.mubr.msk.f32.mxu1 %vm1745_vm1, %v1744_v2 }
 0x336   :  { %1539 = vmatprep.subr.mxu1 %v1744_v2 }
 0x337   :  { %1540 = vmatpush3.msra.mxu1 %v1796_v7 }
 0x338   :  { %1541 = vmatprep.subr.mxu1 %v1744_v2 }
 0x339   :  { %1542 = vmatpush3.msra.mxu1 %v1804_v8 }
 0x33a   :  { %1543 = vmatprep.subr.mxu1 %v1744_v2 }
 0x33b   :  { %1544 = vmatpush3.msra.mxu1 %v1819_v10 }
 0x33c   :  { %1545 = vmatprep.subr.mxu1 %v1744_v2 }
 0x33d   :  { %1546 = vmatpush3.msra.mxu1 %v1830_v12 }
 0x33e   :  { %1547 = vmatprep.subr.mxu1 %v1744_v2 }
 0x33f   :  { %1548 = vmatpush3.msra.mxu1 %v1841_v13 }
 0x340   :  { %1549 = vmatprep.subr.mxu1 %v1744_v2 }
 0x341   :  { %1550 = vmatpush3.msra.mxu1 %v1849_v14 }
 0x342   :  { %1551 = vmatprep.subr.mxu1 %v1744_v2 }
 0x343   :  { %1552 = vmatpush3.msra.mxu1 %v1858_v15 }
 0x344   :  { %1553 = vmatprep.subr.mxu1 %v1744_v2 }
 0x345   :  { %1554 = vmatpush3.msra.mxu1 %v1867_v16 }
 0x346   :  { %1555 = vmatprep.subr.mxu1 %v1744_v2 }
 0x347   :  { %1556 = vmatpush3.msra.mxu1 %v1876_v17 }
 0x348   :  { %1557 = vmatprep.subr.mxu1 %v1744_v2 }
 0x349   :  { %1558 = vmatpush3.msra.mxu1 %v1885_v18 }
 0x34a   :  { %1559 = vmatprep.subr.mxu1 %v1744_v2 }
 0x34b   :  { %1560 = vmatpush3.msra.mxu1 %v1894_v19 }
 0x34c   :  { %1591 = vmatprep.subr.mxu1 %v1744_v2 }
 0x3f4   :  { %v290_v53 = vpop.f32.mrf.mxu1 }
 0x3f5   :  { %v291_v54 = vadd.f32 %v1942_v24, %v290_v53 }
 0x3f6   :  { %v1509_v55 = vpop.f32.mrf.mxu1 }
 0x3f7   :  { %1688 = vtanh.f32 %v291_v54  ;;  %v1339_v57 = vmul.f32 -1.442695, %v291_v54  ;;  %v536_v54 = vrot.slane %v1775_v0, 3  ;;  %v537_v55 = vrot.slane %v1780_v1, 2 }
 0x3f9   :  { %1690 = vpow2.f32 %v1339_v57  ;;  %v543_v57 = vrot.slane %v1780_v1, 3 }
 0x404   :  { %v1689_v56 = vpop.eup %1688 }
 0x405   :  { %303 = vrot.lane.b32.xlu1 %v1689_v56, %s1748_s15  ;;  %v542_v56 = vrot.slane %v1775_v0, 4 }
 0x406   :  { %v1691_v58 = vpop.eup %1690 }
 0x407   :  { %v297_v59 = vadd.f32 1.0, %v1691_v58 }
 0x409   :  { %1692 = vrcp.f32 %v297_v59  ;;  %v538_v59 = vsel %vm32_vm0, %v537_v55, %v536_v54 }
 0x416   :  { %v1693_v60 = vpop.eup %1692 }
 0x417   :  { %v301_v63 = vmul.f32 %v1693_v60, %v1947_v37 }
 0x477   :  { %v304_v61 = vpop.permute.xlu1 %303 }
 0x478   :  { %v306_v62 = vmul.f32 %v1693_v60, %v304_v61 }
 0x47a   :  { %308 = vrot.lane.b32.xlu0 %v306_v62, %s1749_s16 }
 0x4ec   :  { %v309_v4 = vpop.permute.xlu0 %308 }
 0x4ed   :  { %v2005_v5 = vadd.f32 %v309_v4, %v301_v63 }
 0x4ef   :  { %1694 = vtanh.f32 %v2005_v5 }
 0x4fc   :  { %v1695_v6 = vpop.eup %1694 }
 0x4fd   :  { %314 = vrot.lane.b32.xlu1 %v1695_v6, %s1746_s21 }
 0x56f   :  { %v315_v20 = vpop.permute.xlu1 %314 }
 0x570   :  { %v2013_v26 = vmul.f32 %v1693_v60, %v315_v20  ;;  %v544_v60 = vsel %vm32_vm0, %v543_v57, %v542_v56 }
 0x572   :  { %368 = vrot.lane.b32.xlu1 %v2013_v26, %s1746_s21  ;;  %365 = vrot.lane.b32.xlu0 %v2013_v26, %s1750_s2 }
 0x576   :  { %374 = vrot.lane.b32.xlu0 %v2020_v27, %s1746_s21  ;;  %380 = vrot.lane.b32.xlu1 %v2023_v28, %s1747_s26 }
 0x5e4   :  { %v369_v29 = vpop.permute.xlu1 %368  ;;  %v366_v30 = vpop.permute.xlu0 %365 }
 0x5e5   :  { %v383_v31 = vsel %vm217_vm5, %v366_v30, %v369_v29 }
 0x5e8   :  { %v375_v32 = vpop.permute.xlu0 %374  ;;  %v381_v33 = vpop.permute.xlu1 %380 }
 0x5e9   :  { %v384_v34 = vsel %vm43_vm2, %v383_v31, %v375_v32 }
 0x5ea   :  { %v385_v35 = vsel %vm45_vm3, %v384_v34, %v381_v33 }
 0x5eb   :  { %1535 = vmatmul.mubr.msk.f32.vlgmr.msra.gmra.mxu0 %vm53_vm4, %v385_v35 }
 0x5ec   :  { %1565 = vmatpush3.msra.mxu0 %v1786_v3  ;;  %1588 = vmatprep.mubr.msk.f32.mxu0 %vm1745_vm1, %v1744_v2 }
 0x5ed   :  { %1566 = vmatprep.subr.mxu0 %v1744_v2 }
 0x5ee   :  { %1567 = vmatpush3.msra.mxu0 %v1796_v7 }
 0x5ef   :  { %1568 = vmatprep.subr.mxu0 %v1744_v2 }
 0x5f0   :  { %1569 = vmatpush3.msra.mxu0 %v1804_v8 }
 0x5f1   :  { %1570 = vmatprep.subr.mxu0 %v1744_v2 }
 0x5f2   :  { %1571 = vmatpush3.msra.mxu0 %v1819_v10 }
 0x5f3   :  { %1572 = vmatprep.subr.mxu0 %v1744_v2 }
 0x5f4   :  { %1573 = vmatpush3.msra.mxu0 %v1830_v12 }
 0x5f5   :  { %1574 = vmatprep.subr.mxu0 %v1744_v2 }
 0x5f6   :  { %1575 = vmatpush3.msra.mxu0 %v1841_v13 }
 0x5f7   :  { %1576 = vmatprep.subr.mxu0 %v1744_v2 }
 0x5f8   :  { %1577 = vmatpush3.msra.mxu0 %v1849_v14 }
 0x5f9   :  { %1578 = vmatprep.subr.mxu0 %v1744_v2 }
 0x5fa   :  { %1579 = vmatpush3.msra.mxu0 %v1858_v15 }
 0x5fb   :  { %1580 = vmatprep.subr.mxu0 %v1744_v2 }
 0x5fc   :  { %1581 = vmatpush3.msra.mxu0 %v1867_v16 }
 0x5fd   :  { %1582 = vmatprep.subr.mxu0 %v1744_v2 }
 0x5fe   :  { %1583 = vmatpush3.msra.mxu0 %v1876_v17 }
 0x5ff   :  { %1584 = vmatprep.subr.mxu0 %v1744_v2 }
 0x600   :  { %1585 = vmatpush3.msra.mxu0 %v1885_v18 }
 0x601   :  { %1586 = vmatprep.subr.mxu0 %v1744_v2 }
 0x602   :  { %1587 = vmatpush3.msra.mxu0 %v1894_v19 }
 0x603   :  { %1618 = vmatprep.subr.mxu0 %v1744_v2 }
 0x6ab   :  { %v455_v36 = vpop.f32.mrf.mxu0 }
 0x6ac   :  { %v456_v37 = vadd.f32 %v1942_v24, %v455_v36 }
 0x6ad   :  { %v1536_v38 = vpop.f32.mrf.mxu0 }
 0x6ae   :  { %1696 = vtanh.f32 %v456_v37  ;;  %v1341_v40 = vmul.f32 -1.442695, %v456_v37 }
 0x6b0   :  { %1698 = vpow2.f32 %v1341_v40 }
 0x6bb   :  { %v1697_v39 = vpop.eup %1696 }
 0x6bc   :  { %468 = vrot.lane.b32.xlu0 %v1697_v39, %s1748_s15 }
 0x6bd   :  { %v1699_v41 = vpop.eup %1698 }
 0x6be   :  { %v462_v42 = vadd.f32 1.0, %v1699_v41 }
 0x6c0   :  { %1700 = vrcp.f32 %v462_v42 }
 0x6cd   :  { %v1701_v46 = vpop.eup %1700 }
 0x6ce   :  { %v466_v49 = vmul.f32 %v1701_v46, %v2005_v5 }
 0x72e   :  { %v469_v47 = vpop.permute.xlu0 %468 }
 0x72f   :  { %v471_v48 = vmul.f32 %v1701_v46, %v469_v47 }
 0x731   :  { %473 = vrot.lane.b32.xlu1 %v471_v48, %s1749_s16 }
 0x7a3   :  { %v474_v50 = vpop.permute.xlu1 %473 }
 0x7a4   :  { %v2063_v51 = vadd.f32 %v474_v50, %v466_v49 }
 0x7a6   :  { %1702 = vtanh.f32 %v2063_v51 }
 0x7b3   :  { %v1703_v52 = vpop.eup %1702 }
 0x7b4   :  { %479 = vrot.lane.b32.xlu0 %v1703_v52, %s1746_s21 }
 0x826   :  { %v480_v53 = vpop.permute.xlu0 %479 }
 0x827   :  { %v2071_v58 = vmul.f32 %v1701_v46, %v480_v53 }
 0x829   :  { %533 = vrot.lane.b32.xlu0 %v2071_v58, %s1746_s21  ;;  %530 = vrot.lane.b32.xlu1 %v2071_v58, %s1750_s2 }
 0x82d   :  { %539 = vrot.lane.b32.xlu1 %v538_v59, %s1746_s21  ;;  %545 = vrot.lane.b32.xlu0 %v544_v60, %s1747_s26 }
 0x89b   :  { %v534_v61 = vpop.permute.xlu0 %533  ;;  %v531_v0 = vpop.permute.xlu1 %530 }
 0x89c   :  { %v548_v1 = vsel %vm217_vm5, %v531_v0, %v534_v61 }
 0x89f   :  { %v540_v62 = vpop.permute.xlu1 %539  ;;  %v546_v63 = vpop.permute.xlu0 %545 }
 0x8a0   :  { %v549_v4 = vsel %vm43_vm2, %v548_v1, %v540_v62 }
 0x8a1   :  { %v550_v5 = vsel %vm45_vm3, %v549_v4, %v546_v63 }
 0x8a2   :  { %1562 = vmatmul.mubr.msk.f32.vlgmr.msra.gmra.mxu1 %vm53_vm4, %v550_v5 }
 0x8a3   :  { %1592 = vmatpush3.msra.mxu1 %v1786_v3  ;;  %1615 = vmatprep.mubr.msk.f32.mxu1 %vm1745_vm1, %v1744_v2 }
 0x8a4   :  { %1593 = vmatprep.subr.mxu1 %v1744_v2 }
 0x8a5   :  { %1594 = vmatpush3.msra.mxu1 %v1796_v7 }
 0x8a6   :  { %1595 = vmatprep.subr.mxu1 %v1744_v2 }
 0x8a7   :  { %1596 = vmatpush3.msra.mxu1 %v1804_v8 }
 0x8a8   :  { %1597 = vmatprep.subr.mxu1 %v1744_v2 }
 0x8a9   :  { %1598 = vmatpush3.msra.mxu1 %v1819_v10 }
 0x8aa   :  { %1599 = vmatprep.subr.mxu1 %v1744_v2 }
 0x8ab   :  { %1600 = vmatpush3.msra.mxu1 %v1830_v12 }
 0x8ac   :  { %1601 = vmatprep.subr.mxu1 %v1744_v2 }
 0x8ad   :  { %1602 = vmatpush3.msra.mxu1 %v1841_v13 }
 0x8ae   :  { %1603 = vmatprep.subr.mxu1 %v1744_v2 }
 0x8af   :  { %1604 = vmatpush3.msra.mxu1 %v1849_v14 }
 0x8b0   :  { %1605 = vmatprep.subr.mxu1 %v1744_v2 }
 0x8b1   :  { %1606 = vmatpush3.msra.mxu1 %v1858_v15 }
 0x8b2   :  { %1607 = vmatprep.subr.mxu1 %v1744_v2 }
 0x8b3   :  { %1608 = vmatpush3.msra.mxu1 %v1867_v16 }
 0x8b4   :  { %1609 = vmatprep.subr.mxu1 %v1744_v2 }
 0x8b5   :  { %1610 = vmatpush3.msra.mxu1 %v1876_v17 }
 0x8b6   :  { %1611 = vmatprep.subr.mxu1 %v1744_v2 }
 0x8b7   :  { %1612 = vmatpush3.msra.mxu1 %v1885_v18 }
 0x8b8   :  { %1613 = vmatprep.subr.mxu1 %v1744_v2 }
 0x8b9   :  { %1614 = vmatpush3.msra.mxu1 %v1894_v19 }
 0x8ba   :  { %1645 = vmatprep.subr.mxu1 %v1744_v2 }
 0x962   :  { %v620_v6 = vpop.f32.mrf.mxu1 }
 0x963   :  { %v621_v20 = vadd.f32 %v1942_v24, %v620_v6 }
 0x964   :  { %v1563_v21 = vpop.f32.mrf.mxu1 }
 0x965   :  { %1704 = vtanh.f32 %v621_v20  ;;  %v1343_v23 = vmul.f32 -1.442695, %v621_v20 }
 0x967   :  { %1706 = vpow2.f32 %v1343_v23 }
 0x972   :  { %v1705_v22 = vpop.eup %1704 }
 0x973   :  { %633 = vrot.lane.b32.xlu1 %v1705_v22, %s1748_s15 }
 0x974   :  { %v1707_v25 = vpop.eup %1706 }
 0x975   :  { %v627_v29 = vadd.f32 1.0, %v1707_v25 }
 0x977   :  { %1708 = vrcp.f32 %v627_v29 }
 0x984   :  { %v1709_v30 = vpop.eup %1708 }
 0x985   :  { %v631_v33 = vmul.f32 %v1709_v30, %v2063_v51 }
 0x9e5   :  { %v634_v31 = vpop.permute.xlu1 %633 }
 0x9e6   :  { %v636_v32 = vmul.f32 %v1709_v30, %v634_v31 }
 0x9e8   :  { %638 = vrot.lane.b32.xlu0 %v636_v32, %s1749_s16 }
 0xa5a   :  { %v639_v34 = vpop.permute.xlu0 %638 }
 0xa5b   :  { %v641_v35 = vadd.f32 %v639_v34, %v631_v33 }
 0xa5d   :  { %1710 = vtanh.f32 %v641_v35 }
 0xa6a   :  { %v1711_v36 = vpop.eup %1710 }
 0xa6b   :  { %644 = vrot.lane.b32.xlu1 %v1711_v36, %s1746_s21 }
 0xadd   :  { %v645_v37 = vpop.permute.xlu1 %644 }
 0xade   :  { %v2116_v38 = vmul.f32 %v1709_v30, %v645_v37 }
 0xae0   :  { %698 = vrot.lane.b32.xlu1 %v2116_v38, %s1746_s21  ;;  %695 = vrot.lane.b32.xlu0 %v2116_v38, %s1750_s2 }
 0xae4   :  { %701 = vrot.lane.b32.xlu0 %v544_v60, %s1746_s21  ;;  %704 = vrot.lane.b32.xlu1 %v538_v59, %s1747_s26 }
 0xb52   :  { %v699_v39 = vpop.permute.xlu1 %698  ;;  %v696_v40 = vpop.permute.xlu0 %695 }
 0xb53   :  { %v707_v41 = vsel %vm217_vm5, %v696_v40, %v699_v39 }
 0xb56   :  { %v702_v42 = vpop.permute.xlu0 %701  ;;  %v705_v46 = vpop.permute.xlu1 %704 }
 0xb57   :  { %v708_v47 = vsel %vm43_vm2, %v707_v41, %v702_v42 }
 0xb58   :  { %v709_v48 = vsel %vm45_vm3, %v708_v47, %v705_v46 }
 0xb59   :  { %1589 = vmatmul.mubr.msk.f32.vlgmr.msra.gmra.mxu0 %vm53_vm4, %v709_v48 }
 0xb5a   :  { %1619 = vmatpush3.msra.mxu0 %v1786_v3  ;;  %1642 = vmatprep.mubr.msk.f32.mxu0 %vm1745_vm1, %v1744_v2 }
 0xb5b   :  { %1620 = vmatprep.subr.mxu0 %v1744_v2 }
 0xb5c   :  { %1621 = vmatpush3.msra.mxu0 %v1796_v7 }
 0xb5d   :  { %1622 = vmatprep.subr.mxu0 %v1744_v2 }
 0xb5e   :  { %1623 = vmatpush3.msra.mxu0 %v1804_v8 }
 0xb5f   :  { %1624 = vmatprep.subr.mxu0 %v1744_v2 }
 0xb60   :  { %1625 = vmatpush3.msra.mxu0 %v1819_v10 }
 0xb61   :  { %1626 = vmatprep.subr.mxu0 %v1744_v2 }
 0xb62   :  { %1627 = vmatpush3.msra.mxu0 %v1830_v12 }
 0xb63   :  { %1628 = vmatprep.subr.mxu0 %v1744_v2 }
 0xb64   :  { %1629 = vmatpush3.msra.mxu0 %v1841_v13 }
 0xb65   :  { %1630 = vmatprep.subr.mxu0 %v1744_v2 }
 0xb66   :  { %1631 = vmatpush3.msra.mxu0 %v1849_v14 }
 0xb67   :  { %1632 = vmatprep.subr.mxu0 %v1744_v2 }
 0xb68   :  { %1633 = vmatpush3.msra.mxu0 %v1858_v15 }
 0xb69   :  { %1634 = vmatprep.subr.mxu0 %v1744_v2 }
 0xb6a   :  { %1635 = vmatpush3.msra.mxu0 %v1867_v16 }
 0xb6b   :  { %1636 = vmatprep.subr.mxu0 %v1744_v2 }
 0xb6c   :  { %1637 = vmatpush3.msra.mxu0 %v1876_v17 }
 0xb6d   :  { %1638 = vmatprep.subr.mxu0 %v1744_v2 }
 0xb6e   :  { %1639 = vmatpush3.msra.mxu0 %v1885_v18 }
 0xb6f   :  { %1640 = vmatprep.subr.mxu0 %v1744_v2 }
 0xb70   :  { %1641 = vmatpush3.msra.mxu0 %v1894_v19 }
 0xc19   :  { %v779_v49 = vpop.f32.mrf.mxu0 }
 0xc1a   :  { %v780_v50 = vadd.f32 %v1942_v24, %v779_v49 }
 0xc1b   :  { %v1590_v51 = vpop.f32.mrf.mxu0 }
 0xc1c   :  { %1712 = vtanh.f32 %v780_v50  ;;  %v1345_v53 = vmul.f32 -1.442695, %v780_v50 }
 0xc1e   :  { %1714 = vpow2.f32 %v1345_v53 }
 0xc29   :  { %v1713_v52 = vpop.eup %1712 }
 0xc2a   :  { %792 = vrot.lane.b32.xlu0 %v1713_v52, %s1748_s15 }
 0xc2b   :  { %v1715_v54 = vpop.eup %1714 }
 0xc2c   :  { %v786_v55 = vadd.f32 1.0, %v1715_v54 }
 0xc2e   :  { %1716 = vrcp.f32 %v786_v55 }
 0xc3b   :  { %v1717_v56 = vpop.eup %1716 }
 0xc3c   :  { %v790_v60 = vmul.f32 %v1717_v56, %v641_v35 }
 0xc9c   :  { %v793_v57 = vpop.permute.xlu0 %792 }
 0xc9d   :  { %v795_v59 = vmul.f32 %v1717_v56, %v793_v57 }
 0xc9f   :  { %797 = vrot.lane.b32.xlu1 %v795_v59, %s1749_s16 }
 0xd11   :  { %v798_v61 = vpop.permute.xlu1 %797 }
 0xd12   :  { %v800_v0 = vadd.f32 %v798_v61, %v790_v60 }
 0xd14   :  { %1718 = vtanh.f32 %v800_v0 }
 0xd21   :  { %v1719_v1 = vpop.eup %1718 }
 0xd22   :  { %803 = vrot.lane.b32.xlu0 %v1719_v1, %s1746_s21 }
 0xd94   :  { %v804_v62 = vpop.permute.xlu0 %803 }
 0xd95   :  { %v2157_v63 = vmul.f32 %v1717_v56, %v804_v62 }
 0xd97   :  { %857 = vrot.lane.b32.xlu0 %v2157_v63, %s1746_s21  ;;  %854 = vrot.lane.b32.xlu1 %v2157_v63, %s1750_s2 }
 0xd9b   :  { %860 = vrot.lane.b32.xlu1 %v2023_v28, %s1746_s21  ;;  %863 = vrot.lane.b32.xlu0 %v2020_v27, %s1747_s26 }
 0xe09   :  { %v858_v4 = vpop.permute.xlu0 %857  ;;  %v855_v5 = vpop.permute.xlu1 %854 }
 0xe0a   :  { %v866_v6 = vsel %vm217_vm5, %v855_v5, %v858_v4 }
 0xe0d   :  { %v861_v20 = vpop.permute.xlu1 %860  ;;  %v864_v21 = vpop.permute.xlu0 %863 }
 0xe0e   :  { %v867_v22 = vsel %vm43_vm2, %v866_v6, %v861_v20  ;;  %v1751_v6 = vmov 1966171168  }
 0xe0f   :  { %v868_v23 = vsel %vm45_vm3, %v867_v22, %v864_v21  ;;  %v153_v20 = vunpack.c.l.s4 %v1751_v6  ;;  %v155_v21 = vlaneseq }
 0xe10   :  { %1616 = vmatmul.mubr.msk.f32.vlgmr.msra.gmra.mxu1 %vm53_vm4, %v868_v23 }
 0xe11   :  { %1646 = vmatpush3.msra.mxu1 %v1786_v3  ;;  %1669 = vmatprep.mubr.msk.f32.mxu1 %vm1745_vm1, %v1744_v2  ;;  %v154_v22 = vunpack.c.0.s8 %v153_v20  ;;  %v156_v23 = vshrl.u32 %v155_v21, 7 }
 0xe12   :  { %1647 = vmatprep.subr.mxu1 %v1744_v2 }
 0xe13   :  { %1648 = vmatpush3.msra.mxu1 %v1796_v7 }
 0xe14   :  { %1649 = vmatprep.subr.mxu1 %v1744_v2 }
 0xe15   :  { %1650 = vmatpush3.msra.mxu1 %v1804_v8 }
 0xe16   :  { %1651 = vmatprep.subr.mxu1 %v1744_v2 }
 0xe17   :  { %1652 = vmatpush3.msra.mxu1 %v1819_v10 }
 0xe18   :  { %1653 = vmatprep.subr.mxu1 %v1744_v2 }
 0xe19   :  { %1654 = vmatpush3.msra.mxu1 %v1830_v12 }
 0xe1a   :  { %1655 = vmatprep.subr.mxu1 %v1744_v2 }
 0xe1b   :  { %1656 = vmatpush3.msra.mxu1 %v1841_v13 }
 0xe1c   :  { %1657 = vmatprep.subr.mxu1 %v1744_v2 }
 0xe1d   :  { %1658 = vmatpush3.msra.mxu1 %v1849_v14 }
 0xe1e   :  { %1659 = vmatprep.subr.mxu1 %v1744_v2 }
 0xe1f   :  { %1660 = vmatpush3.msra.mxu1 %v1858_v15 }
 0xe20   :  { %1661 = vmatprep.subr.mxu1 %v1744_v2 }
 0xe21   :  { %1662 = vmatpush3.msra.mxu1 %v1867_v16 }
 0xe22   :  { %1663 = vmatprep.subr.mxu1 %v1744_v2 }
 0xe23   :  { %1664 = vmatpush3.msra.mxu1 %v1876_v17 }
 0xe24   :  { %1665 = vmatprep.subr.mxu1 %v1744_v2 }
 0xe25   :  { %1666 = vmatpush3.msra.mxu1 %v1885_v18 }
 0xe26   :  { %1667 = vmatprep.subr.mxu1 %v1744_v2 }
 0xe27   :  { %1668 = vmatpush3.msra.mxu1 %v1894_v19 }
 0xed0   :  { %v938_v3 = vpop.f32.mrf.mxu1 }
 0xed1   :  { %v939_v7 = vadd.f32 %v1942_v24, %v938_v3  ;;  %v2233_v3 = vsub.s32 %v154_v22, %v156_v23 }
 0xed2   :  { %v1617_v8 = vpop.f32.mrf.mxu1 }
 0xed3   :  { %1720 = vtanh.f32 %v939_v7  ;;  %v1347_v12 = vmul.f32 -1.442695, %v939_v7 }
 0xed5   :  { %1722 = vpow2.f32 %v1347_v12 }
 0xee0   :  { %v1721_v10 = vpop.eup %1720 }
 0xee1   :  { %951 = vrot.lane.b32.xlu1 %v1721_v10, %s1748_s15 }
 0xee2   :  { %v1723_v13 = vpop.eup %1722 }
 0xee3   :  { %v945_v14 = vadd.f32 1.0, %v1723_v13  ;;  %v2241_v13 = vsub.s32 0, %v156_v23 }
 0xee5   :  { %1724 = vrcp.f32 %v945_v14  ;;  %v325_v14 = vrot.slane %v2013_v26, %v2233_v3  ;;  %v2258_v26 = vrot.slane %v2116_v38, %v2233_v3 }
 0xef2   :  { %v1725_v15 = vpop.eup %1724 }
 0xef3   :  { %v949_v2 = vmul.f32 %v1725_v15, %v800_v0 }
 0xf53   :  { %v952_v16 = vpop.permute.xlu1 %951 }
 0xf54   :  { %v954_v17 = vmul.f32 %v1725_v15, %v952_v16  ;;  %v490_v16 = vrot.slane %v2071_v58, %v2233_v3  ;;  %v2267_v58 = vrot.slane %v2157_v63, %v2233_v3 }
 0xf56   :  { %956 = vrot.lane.b32.xlu0 %v954_v17, %s1749_s16  ;;  %v822_v38 = vrot.slane %v2267_v58, %v2233_v3 }
 0xfc8   :  { %v957_v18 = vpop.permute.xlu0 %956 }
 0xfc9   :  { %v959_v19 = vadd.f32 %v957_v18, %v949_v2  ;;  %v498_v2 = vrot.slane %v490_v16, %v2233_v3 }
 0xfcb   :  { %1726 = vtanh.f32 %v959_v19  ;;  %v509_v18 = vrot.slane %v498_v2, %v2241_v13 }
 0xfd8   :  { %v1727_v27 = vpop.eup %1726 }
 0xfd9   :  { %962 = vrot.lane.b32.xlu1 %v1727_v27, %s1746_s21 }
0x104b   :  { %v963_v28 = vpop.permute.xlu1 %962 }
0x104c   :  { %v2200_v25 = vmul.f32 %v1725_v15, %v963_v28 }
0x104e   :  { %1016 = vrot.lane.b32.xlu1 %v2200_v25, %s1746_s21  ;;  %1013 = vrot.lane.b32.xlu0 %v2200_v25, %s1750_s2  ;;  %v2276_v28 = vrot.slane %v2200_v25, %v2233_v3 }
0x1050   :  { %v981_v63 = vrot.slane %v2276_v28, %v2233_v3 }
0x1052   :  { %1019 = vrot.lane.b32.xlu0 %v1965_v45, %s1746_s21  ;;  %1022 = vrot.lane.b32.xlu1 %v1962_v44, %s1747_s26 }
0x10c0   :  { %v1017_v29 = vpop.permute.xlu1 %1016  ;;  %v1014_v30 = vpop.permute.xlu0 %1013 }
0x10c1   :  { %v1025_v31 = vsel %vm217_vm5, %v1014_v30, %v1017_v29  ;;  %v833_v29 = vrot.slane %v822_v38, %v2241_v13 }
0x10c4   :  { %v1020_v32 = vpop.permute.xlu0 %1019  ;;  %v1023_v33 = vpop.permute.xlu1 %1022 }
0x10c5   :  { %v1026_v34 = vsel %vm43_vm2, %v1025_v31, %v1020_v32  ;;  %v992_v31 = vrot.slane %v981_v63, %v2241_v13 }
0x10c6   :  { %v1027_v35 = vsel %vm45_vm3, %v1026_v34, %v1023_v33 }
0x10c7   :  { %1643 = vmatmul.mubr.msk.f32.vlgmr.msra.gmra.mxu0 %vm53_vm4, %v1027_v35 }
0x1187   :  { %v1097_v36 = vpop.f32.mrf.mxu0 }
0x1188   :  { %v1098_v37 = vadd.f32 %v1942_v24, %v1097_v36 }
0x1189   :  { %v1644_v39 = vpop.f32.mrf.mxu0 }
0x118a   :  { %1728 = vtanh.f32 %v1098_v37  ;;  %v1349_v44 = vmul.f32 -1.442695, %v1098_v37 }
0x118c   :  { %1730 = vpow2.f32 %v1349_v44 }
0x1197   :  { %v1729_v45 = vpop.eup %1728 }
0x1198   :  { %1110 = vrot.lane.b32.xlu0 %v1729_v45, %s1748_s15 }
0x1199   :  { %v1731_v40 = vpop.eup %1730 }
0x119a   :  { %v1104_v41 = vadd.f32 1.0, %v1731_v40 }
0x119c   :  { %1732 = vrcp.f32 %v1104_v41 }
0x11a9   :  { %v1733_v42 = vpop.eup %1732 }
0x11aa   :  { %v1108_v48 = vmul.f32 %v1733_v42, %v959_v19  ;;  %v663_v19 = vrot.slane %v2258_v26, %v2233_v3 }
0x11ac   :  { %v674_v27 = vrot.slane %v663_v19, %v2241_v13 }
0x120a   :  { %v1111_v46 = vpop.permute.xlu0 %1110 }
0x120b   :  { %v1113_v47 = vmul.f32 %v1733_v42, %v1111_v46 }
0x120d   :  { %1115 = vrot.lane.b32.xlu1 %v1113_v47, %s1749_s16 }
0x127f   :  { %v1116_v49 = vpop.permute.xlu1 %1115 }
0x1280   :  { %v2217_v50 = vadd.f32 %v1116_v49, %v1108_v48 }
0x1282   :  { %1734 = vtanh.f32 %v2217_v50 }
0x128f   :  { %v1735_v51 = vpop.eup %1734 }
0x1290   :  { %1121 = vrot.lane.b32.xlu0 %v1735_v51, %s1746_s21 }
0x1302   :  { %v1122_v52 = vpop.permute.xlu0 %1121 }
0x1303   :  { %v1124_v53 = vmul.f32 %v1733_v42, %v1122_v52  ;;  %v326_v42 = vcombine.high %v325_v14, %v325_v14 }
0x1305   :  { %1175 = vrot.lane.b32.xlu0 %v1124_v53, %s1746_s21  ;;  %1172 = vrot.lane.b32.xlu1 %v1124_v53, %s1750_s2  ;;  %v2284_v30 = vrot.slane %v1124_v53, %v2233_v3  ;;  %v340_v48 = vrot.slane %v326_v42, %v2233_v3 }
0x1307   :  { %v1140_v25 = vrot.slane %v2284_v30, %v2233_v3  ;;  %v348_v51 = vrot.slane %v340_v48, %v2241_v13  ;;  %v1133_v21 = vcombine.high %v2284_v30, %v2284_v30 }
0x1309   :  { %1178 = vrot.lane.b32.xlu1 %v1822_v11, %s1746_s21  ;;  %1181 = vrot.lane.b32.xlu0 %v1809_v9, %s1747_s26  ;;  %v1151_v32 = vrot.slane %v1140_v25, %v2241_v13  ;;  %v1147_v23 = vrot.slane %v1133_v21, %v2233_v3 }
0x1377   :  { %v1176_v54 = vpop.permute.xlu0 %1175  ;;  %v1173_v55 = vpop.permute.xlu1 %1172 }
0x1378   :  { %v1184_v56 = vsel %vm217_vm5, %v1173_v55, %v1176_v54  ;;  %v656_v55 = vcombine.high %v2258_v26, %v2258_v26 }
0x137b   :  { %v1179_v57 = vpop.permute.xlu1 %1178  ;;  %v1182_v59 = vpop.permute.xlu0 %1181 }
0x137c   :  { %v1185_v60 = vsel %vm43_vm2, %v1184_v56, %v1179_v57 }
0x137d   :  { %v1186_v61 = vsel %vm45_vm3, %v1185_v60, %v1182_v59  ;;  %v670_v59 = vrot.slane %v656_v55, %v2233_v3 }
0x137e   :  { %1670 = vmatmul.mubr.msk.f32.vlgmr.msra.gmra.mxu1 %vm53_vm4, %v1186_v61  ;;  %v815_v61 = vcombine.high %v2267_v58, %v2267_v58 }
0x143e   :  { %v1256_v0 = vpop.f32.mrf.mxu1 }
0x143f   :  { %v1257_v1 = vadd.f32 %v1942_v24, %v1256_v0  ;;  %v158_v24 = vrot.slane %v1954_v43, %v2233_v3  ;;  %v333_v43 = vrot.slane %v325_v14, %v2233_v3  ;;  %v678_v0 = vrot.slane %v670_v59, %v2241_v13 }
0x1440   :  { %v1671_v62 = vpop.f32.mrf.mxu1 }
0x1441   :  { %1736 = vtanh.f32 %v1257_v1  ;;  %v1351_v9 = vmul.f32 -1.442695, %v1257_v1  ;;  %v166_v12 = vrot.slane %v158_v24, %v2233_v3  ;;  %v344_v17 = vrot.slane %v333_v43, %v2241_v13 }
0x1442   :  { %v159_v39 = vcombine.high %v158_v24, %v158_v24  ;;  %v829_v62 = vrot.slane %v815_v61, %v2233_v3  ;;  %v1155_v24 = vrot.slane %v1147_v23, %v2241_v13 }
0x1443   :  { %1738 = vpow2.f32 %v1351_v9  ;;  %v177_v15 = vrot.slane %v166_v12, %v2241_v13  ;;  %v974_v9 = vcombine.high %v2276_v28, %v2276_v28 }
0x1444   :  { %v173_v44 = vrot.slane %v159_v39, %v2233_v3 }
0x1445   :  { %v988_v6 = vrot.slane %v974_v9, %v2233_v3 }
0x1446   :  { %v181_v46 = vrot.slane %v173_v44, %v2241_v13 }
0x1447   :  { %v996_v22 = vrot.slane %v988_v6, %v2241_v13 }
0x144e   :  { %v1737_v11 = vpop.eup %1736 }
0x144f   :  { %1269 = vrot.lane.b32.xlu1 %v1737_v11, %s1748_s15 }
0x1450   :  { %v1739_v4 = vpop.eup %1738 }
0x1451   :  { %v1263_v5 = vadd.f32 1.0, %v1739_v4  ;;  %v837_v4 = vrot.slane %v829_v62, %v2241_v13 }
0x1453   :  { %1740 = vrcp.f32 %v1263_v5 }
0x1460   :  { %v2237_v7 = vpop.eup %1740 }
0x1461   :  { %v1267_v33 = vmul.f32 %v2237_v7, %v2217_v50  ;;  %v491_v50 = vcombine.high %v490_v16, %v490_v16 }
0x1463   :  { %v505_v53 = vrot.slane %v491_v50, %v2233_v3 }
0x1465   :  { %v513_v56 = vrot.slane %v505_v53, %v2241_v13 }
0x14c1   :  { %v1270_v8 = vpop.permute.xlu1 %1269 }
0x14c2   :  { %v1272_v10 = vmul.f32 %v2237_v7, %v1270_v8 }
0x14c4   :  { %1274 = vrot.lane.b32.xlu0 %v1272_v10, %s1749_s16 }
0x14c8   :  { %182 = vrot.lane.b32.xlu0 %v177_v15, %s1750_s2 }
0x14cc   :  { %191 = vrot.lane.b32.xlu0 %v177_v15, %s1746_s21 }
0x14d0   :  { %349 = vrot.lane.b32.xlu0 %v344_v17, %s1750_s2 }
0x14d4   :  { %357 = vrot.lane.b32.xlu0 %v344_v17, %s1746_s21 }
0x14d8   :  { %514 = vrot.lane.b32.xlu0 %v509_v18, %s1750_s2 }
0x14dc   :  { %522 = vrot.lane.b32.xlu0 %v509_v18, %s1746_s21 }
0x14e0   :  { %679 = vrot.lane.b32.xlu0 %v674_v27, %s1750_s2 }
0x14e4   :  { %687 = vrot.lane.b32.xlu0 %v674_v27, %s1746_s21 }
0x14e8   :  { %838 = vrot.lane.b32.xlu0 %v833_v29, %s1750_s2 }
0x14ec   :  { %846 = vrot.lane.b32.xlu0 %v833_v29, %s1746_s21 }
0x14f0   :  { %997 = vrot.lane.b32.xlu0 %v992_v31, %s1750_s2 }
0x14f4   :  { %1005 = vrot.lane.b32.xlu0 %v992_v31, %s1746_s21 }
0x14f8   :  { %1156 = vrot.lane.b32.xlu0 %v1151_v32, %s1750_s2 }
0x14fc   :  { %1164 = vrot.lane.b32.xlu0 %v1151_v32, %s1746_s21 }
0x1536   :  { %v1275_v34 = vpop.permute.xlu0 %1274 }
0x1537   :  { %v1277_v35 = vadd.f32 %v1275_v34, %v1267_v33 }
0x1539   :  { %1742 = vtanh.f32 %v1277_v35 }
0x153a   :  { %v183_v36 = vpop.permute.xlu0 %182 }
0x153b   :  { %189 = vst.msk [vmem:[%s2474_s3] sm:$0x1] %vm188_vm6, %v183_v36 }
0x153e   :  { %v192_v37 = vpop.permute.xlu0 %191 }
0x153f   :  { %198 = vst.msk [vmem:[%s2474_s3 + $0x7] sm:$0x1] %vm197_vm7, %v192_v37 }
0x1542   :  { %v350_v45 = vpop.permute.xlu0 %349 }
0x1543   :  { %355 = vst.msk [vmem:[%s2474_s3 + $0x1] sm:$0x1] %vm188_vm6, %v350_v45 }
0x1546   :  { %v1743_v40 = vpop.eup %1742  ;;  %v358_v41 = vpop.permute.xlu0 %357 }
0x1547   :  { %363 = vst.msk [vmem:[%s2474_s3 + $0x6] sm:$0x1] %vm197_vm7, %v358_v41  ;;  %1280 = vrot.lane.b32.xlu1 %v1743_v40, %s1746_s21 }
0x154a   :  { %v515_v47 = vpop.permute.xlu0 %514 }
0x154b   :  { %520 = vst.msk [vmem:[%s2474_s3 + $0x2] sm:$0x1] %vm188_vm6, %v515_v47  ;;  %184 = vrot.lane.b32.xlu1 %v181_v46, %s1750_s2 }
0x154e   :  { %v523_v49 = vpop.permute.xlu0 %522 }
0x154f   :  { %528 = vst.msk [vmem:[%s2474_s3 + $0x5] sm:$0x1] %vm197_vm7, %v523_v49  ;;  %193 = vrot.lane.b32.xlu1 %v181_v46, %s1746_s21 }
0x1552   :  { %v680_v52 = vpop.permute.xlu0 %679 }
0x1553   :  { %685 = vst.msk [vmem:[%s2474_s3 + $0x3] sm:$0x1] %vm188_vm6, %v680_v52  ;;  %351 = vrot.lane.b32.xlu1 %v348_v51, %s1750_s2 }
0x1556   :  { %v688_v54 = vpop.permute.xlu0 %687 }
0x1557   :  { %693 = vst.msk [vmem:[%s2474_s3 + $0x4] sm:$0x1] %vm197_vm7, %v688_v54  ;;  %359 = vrot.lane.b32.xlu1 %v348_v51, %s1746_s21 }
0x155a   :  { %v839_v57 = vpop.permute.xlu0 %838 }
0x155b   :  { %844 = vst.msk [vmem:[%s2474_s3 + $0x4] sm:$0x1] %vm188_vm6, %v839_v57  ;;  %516 = vrot.lane.b32.xlu1 %v513_v56, %s1750_s2 }
0x155e   :  { %v847_v60 = vpop.permute.xlu0 %846 }
0x155f   :  { %852 = vst.msk [vmem:[%s2474_s3 + $0x3] sm:$0x1] %vm197_vm7, %v847_v60  ;;  %524 = vrot.lane.b32.xlu1 %v513_v56, %s1746_s21 }
0x1562   :  { %v998_v1 = vpop.permute.xlu0 %997 }
0x1563   :  { %1003 = vst.msk [vmem:[%s2474_s3 + $0x5] sm:$0x1] %vm188_vm6, %v998_v1  ;;  %681 = vrot.lane.b32.xlu1 %v678_v0, %s1750_s2 }
0x1566   :  { %v1006_v11 = vpop.permute.xlu0 %1005 }
0x1567   :  { %1011 = vst.msk [vmem:[%s2474_s3 + $0x2] sm:$0x1] %vm197_vm7, %v1006_v11  ;;  %689 = vrot.lane.b32.xlu1 %v678_v0, %s1746_s21 }
0x156a   :  { %v1157_v5 = vpop.permute.xlu0 %1156 }
0x156b   :  { %1162 = vst.msk [vmem:[%s2474_s3 + $0x6] sm:$0x1] %vm188_vm6, %v1157_v5  ;;  %840 = vrot.lane.b32.xlu1 %v837_v4, %s1750_s2 }
0x156e   :  { %v1165_v20 = vpop.permute.xlu0 %1164 }
0x156f   :  { %1170 = vst.msk [vmem:[%s2474_s3 + $0x1] sm:$0x1] %vm197_vm7, %v1165_v20  ;;  %848 = vrot.lane.b32.xlu1 %v837_v4, %s1746_s21 }
0x1573   :  { %999 = vrot.lane.b32.xlu1 %v996_v22, %s1750_s2 }
0x1577   :  { %1007 = vrot.lane.b32.xlu1 %v996_v22, %s1746_s21 }
0x157b   :  { %1158 = vrot.lane.b32.xlu1 %v1155_v24, %s1750_s2 }
0x157f   :  { %1166 = vrot.lane.b32.xlu1 %v1155_v24, %s1746_s21 }
0x15b9   :  { %v1281_v8 = vpop.permute.xlu1 %1280 }
0x15ba   :  { %v1283_v10 = vmul.f32 %v2237_v7, %v1281_v8 }
0x15bc   :  { %v1291_v12 = vrot.slane %v1283_v10, %v2233_v3 }
0x15bd   :  { %v185_v14 = vpop.permute.xlu1 %184 }
0x15be   :  { %v1292_v15 = vcombine.high %v1291_v12, %v1291_v12  ;;  %v1299_v43 = vrot.slane %v1291_v12, %v2233_v3  ;;  %190 = vst.msk [vmem:[%s2474_s3 + $0x8] sm:$0x1] %vm188_vm6, %v185_v14 }
0x15c0   :  { %v1310_v16 = vrot.slane %v1299_v43, %v2241_v13  ;;  %v1306_v17 = vrot.slane %v1292_v15, %v2233_v3 }
0x15c1   :  { %v194_v2 = vpop.permute.xlu1 %193 }
0x15c2   :  { %199 = vst.msk [vmem:[%s2474_s3 + $0xf] sm:$0x1] %vm197_vm7, %v194_v2  ;;  %1315 = vrot.lane.b32.xlu0 %v1310_v16, %s1750_s2  ;;  %v1314_v7 = vrot.slane %v1306_v17, %v2241_v13 }
0x15c4   :  { %1317 = vrot.lane.b32.xlu1 %v1314_v7, %s1750_s2 }
0x15c5   :  { %v352_v26 = vpop.permute.xlu1 %351 }
0x15c6   :  { %356 = vst.msk [vmem:[%s2474_s3 + $0x9] sm:$0x1] %vm188_vm6, %v352_v26  ;;  %1323 = vrot.lane.b32.xlu0 %v1310_v16, %s1746_s21 }
0x15c8   :  { %1325 = vrot.lane.b32.xlu1 %v1314_v7, %s1746_s21 }
0x15c9   :  { %v360_v3 = vpop.permute.xlu1 %359 }
0x15ca   :  { %364 = vst.msk [vmem:[%s2474_s3 + $0xe] sm:$0x1] %vm197_vm7, %v360_v3 }
0x15cd   :  { %v517_v18 = vpop.permute.xlu1 %516 }
0x15ce   :  { %521 = vst.msk [vmem:[%s2474_s3 + $0xa] sm:$0x1] %vm188_vm6, %v517_v18 }
0x15d1   :  { %v525_v13 = vpop.permute.xlu1 %524 }
0x15d2   :  { %529 = vst.msk [vmem:[%s2474_s3 + $0xd] sm:$0x1] %vm197_vm7, %v525_v13 }
0x15d5   :  { %v682_v19 = vpop.permute.xlu1 %681 }
0x15d6   :  { %686 = vst.msk [vmem:[%s2474_s3 + $0xb] sm:$0x1] %vm188_vm6, %v682_v19 }
0x15d9   :  { %v690_v58 = vpop.permute.xlu1 %689 }
0x15da   :  { %694 = vst.msk [vmem:[%s2474_s3 + $0xc] sm:$0x1] %vm197_vm7, %v690_v58 }
0x15dd   :  { %v841_v27 = vpop.permute.xlu1 %840 }
0x15de   :  { %845 = vst.msk [vmem:[%s2474_s3 + $0xc] sm:$0x1] %vm188_vm6, %v841_v27 }
0x15e1   :  { %v849_v38 = vpop.permute.xlu1 %848 }
0x15e2   :  { %853 = vst.msk [vmem:[%s2474_s3 + $0xb] sm:$0x1] %vm197_vm7, %v849_v38 }
0x15e5   :  { %v1000_v28 = vpop.permute.xlu1 %999 }
0x15e6   :  { %1004 = vst.msk [vmem:[%s2474_s3 + $0xd] sm:$0x1] %vm188_vm6, %v1000_v28 }
0x15e9   :  { %v1008_v29 = vpop.permute.xlu1 %1007 }
0x15ea   :  { %1012 = vst.msk [vmem:[%s2474_s3 + $0xa] sm:$0x1] %vm197_vm7, %v1008_v29 }
0x15ed   :  { %v1159_v63 = vpop.permute.xlu1 %1158 }
0x15ee   :  { %1163 = vst.msk [vmem:[%s2474_s3 + $0xe] sm:$0x1] %vm188_vm6, %v1159_v63 }
0x15f1   :  { %v1167_v30 = vpop.permute.xlu1 %1166 }
0x15f2   :  { %1171 = vst.msk [vmem:[%s2474_s3 + $0x9] sm:$0x1] %vm197_vm7, %v1167_v30 }
0x1634   :  { %v1316_v31 = vpop.permute.xlu0 %1315 }
0x1635   :  { %1321 = vst.msk [vmem:[%s2474_s3 + $0x7] sm:$0x1] %vm188_vm6, %v1316_v31 }
0x1636   :  { %v1318_v25 = vpop.permute.xlu1 %1317 }
0x1637   :  { %1322 = vst.msk [vmem:[%s2474_s3 + $0xf] sm:$0x1] %vm188_vm6, %v1318_v25 }
0x1638   :  { %v1324_v32 = vpop.permute.xlu0 %1323 }
0x1639   :  { %1329 = vst.msk [vmem:[%s2474_s3] sm:$0x1] %vm197_vm7, %v1324_v32 }
0x163a   :  { %v1326_v33 = vpop.permute.xlu1 %1325 }
0x163b   :  { %1330 = vst.msk [vmem:[%s2474_s3 + $0x8] sm:$0x1] %vm197_vm7, %v1326_v33 }

</bundles_post_ra>
